<compile_context>
chip_gen: v6e
topology: v6e:2x2x1
jax: 0.10.0
libtpu: 0.0.40
codegen_flags: <defaults>
</compile_context>

<pallas_src>
import functools

import jax
import jax.numpy as jnp
from jax import lax
from jax.experimental import pallas as pl
from jax.experimental.pallas import tpu as pltpu

EPS = 1e-5  # PyTorch BatchNorm2d default eps


# --------------------------------- kernel ----------------------------------
def _conv3x3_taps(act, w, *, wp):
    """3x3 'same' conv as ONE matmul with the 9 taps folded into K.

    act: (Cin, MP) f32, lane-dense, zero at each image's padding ring/tail.
    w  : (Cout, 9*Cin) f32, K ordered (tap, cin) with tap = dy*3 + dx.
    """
    mp = act.shape[1]
    taps = []
    for dy in range(3):
        for dx in range(3):
            off = (dy - 1) * wp + (dx - 1)          # lane shift of this tap
            taps.append(act if off == 0
                        else pltpu.roll(act, (-off) % mp, axis=1))
    patches = jnp.concatenate(taps, axis=0)          # (9*Cin, MP)
    return jnp.dot(w, patches, preferred_element_type=jnp.float32)


def generator_kernel(p0_ref, mask_ref,
                     w1_ref, pb1_ref,
                     w2_ref, pb2_ref,
                     w3_ref, pb3_ref,
                     w4_ref, pb4_ref,
                     o_ref, *, wp, inv_m):
    """Whole Generator forward, fused.  All refs live in VMEM."""
    mask = mask_ref[...]                             # (1, MP) interior mask

    def bias_relu_bn(y, pb):
        # pb: (Cout, 3) = [conv bias | BN gamma | BN beta]
        y = jnp.maximum(y + pb[:, 0:1], 0.0)         # bias + ReLU
        y = y * mask                                 # zero the padding ring
        # training-mode BatchNorm, one-pass biased stats over N*H*W positions
        mean = jnp.sum(y, axis=1, keepdims=True) * inv_m
        var = jnp.sum(y * y, axis=1, keepdims=True) * inv_m - mean * mean
        y = (y - mean) * lax.rsqrt(var + EPS) * pb[:, 1:2] + pb[:, 2:3]
        return y * mask                              # restore zero padding

    # layer 1: conv1 + ReLU + bn3   (Cin=3 im2col patches precomputed)
    a = jnp.dot(w1_ref[...], p0_ref[...], preferred_element_type=jnp.float32)
    a = bias_relu_bn(a, pb1_ref[...])
    # layer 2: conv2 + ReLU + bn1
    a = bias_relu_bn(_conv3x3_taps(a, w2_ref[...], wp=wp), pb2_ref[...])
    # layer 3: conv3 + ReLU + bn2
    a = bias_relu_bn(_conv3x3_taps(a, w3_ref[...], wp=wp), pb3_ref[...])
    # layer 4: conv4 + tanh  (ring positions are discarded by the wrapper)
    a = _conv3x3_taps(a, w4_ref[...], wp=wp)
    o_ref[...] = jnp.tanh(a + pb4_ref[...][:, 0:1])


# -------------------------------- wrapper -----------------------------------
def _fold_weight(w_oihw):
    """(Cout, Cin, 3, 3) OIHW -> (Cout, 9*Cin), K ordered (tap, cin)."""
    cout, cin = w_oihw.shape[0], w_oihw.shape[1]
    return jnp.transpose(w_oihw, (0, 2, 3, 1)).reshape(cout, 9 * cin)


def _pack_affine(b, gamma, beta):
    """Pack per-layer bias/gamma/beta into one (Cout, 3) array."""
    return jnp.stack([b, gamma, beta], axis=1)


def generator_forward(x_nchw, params):
    """Matches Generator.forward; input/output are NCHW like PyTorch."""
    N, C, H, W = x_nchw.shape
    HP, WP = H + 2, W + 2
    M = N * HP * WP                                  # padded-grid positions
    MP = pl.cdiv(M, 128) * 128                       # lane-dense (mult of 128)
    m_valid = N * H * W                              # real output positions

    # ---- layout plumbing: NCHW -> zero-padded lane-dense (C, MP) ----------
    xp = jnp.pad(x_nchw, ((0, 0), (0, 0), (1, 1), (1, 1)))
    xcm = jnp.transpose(xp, (1, 0, 2, 3)).reshape(C, M)
    xcm = jnp.pad(xcm, ((0, 0), (0, MP - M)))

    # First-layer im2col (tiny: Cin=3).  Deeper layers build their taps
    # in-kernel with pltpu.roll.
    parts = []
    for dy in range(3):
        for dx in range(3):
            off = (dy - 1) * WP + (dx - 1)
            parts.append(xcm if off == 0 else jnp.roll(xcm, -off, axis=1))
    p0 = jnp.concatenate(parts, axis=0)              # (9*C, MP)

    # Interior mask: 1 at the N*H*W real positions, 0 on padding ring / tail.
    idx = jnp.arange(MP, dtype=jnp.int32)
    pos = idx % (HP * WP)
    yp, xq = pos // WP, pos % WP
    interior = (idx < M) & (yp >= 1) & (yp <= H) & (xq >= 1) & (xq <= W)
    mask = interior.astype(jnp.float32).reshape(1, MP)

    w1, b1 = params["conv1"]; g1, be1 = params["bn3"]
    w2, b2 = params["conv2"]; g2, be2 = params["bn1"]
    w3, b3 = params["conv3"]; g3, be3 = params["bn2"]
    w4, b4 = params["conv4"]
    cout = w4.shape[0]

    kern = functools.partial(generator_kernel, wp=WP, inv_m=1.0 / m_valid)
    vmem = pl.BlockSpec(memory_space=pltpu.MemorySpace.VMEM)
    out = pl.pallas_call(
        kern,
        out_shape=jax.ShapeDtypeStruct((cout, MP), jnp.float32),
        in_specs=[vmem] * 10,
        out_specs=vmem,
        compiler_params=pltpu.CompilerParams(vmem_limit_bytes=32 * 1024 * 1024),
    )(p0, mask,
      _fold_weight(w1), _pack_affine(b1, g1, be1),
      _fold_weight(w2), _pack_affine(b2, g2, be2),
      _fold_weight(w3), _pack_affine(b3, g3, be3),
      _fold_weight(w4), _pack_affine(b4, jnp.ones_like(b4), jnp.zeros_like(b4)))

    # lane-dense (Cout, MP) -> NCHW, dropping the padding ring and the tail
    out = out[:, :M].reshape(cout, N, HP, WP)[:, :, 1:1 + H, 1:1 + W]
    return jnp.transpose(out, (1, 0, 2, 3))


# ------------------------------- parameters ---------------------------------
def init_params(key):
    """Deterministic synthetic init: conv weights ~ N(0, 0.02), biases 0,
    BN gamma = 1, beta = 0 (PyTorch defaults)."""
    ks = jax.random.split(key, 4)
    std = 0.02

    def conv_p(k, cout, cin):
        w = std * jax.random.normal(k, (cout, cin, 3, 3), jnp.float32)
        b = jnp.zeros((cout,), jnp.float32)
        return w, b

    return {
        "conv1": conv_p(ks[0], 16, 3),
        "conv2": conv_p(ks[1], 32, 16),
        "conv3": conv_p(ks[2], 8, 32),   # the second (effective) conv3: 32 -> 8
        "conv4": conv_p(ks[3], 3, 8),
        "bn3": (jnp.ones((16,), jnp.float32), jnp.zeros((16,), jnp.float32)),
        "bn1": (jnp.ones((32,), jnp.float32), jnp.zeros((32,), jnp.float32)),
        "bn2": (jnp.ones((8,), jnp.float32), jnp.zeros((8,), jnp.float32)),
    }


# ----------------------- pure-JAX reference for checking ---------------------
def _ref_forward(x_nchw, params):
    def conv(x, w, b):
        y = lax.conv_general_dilated(
            x, w, window_strides=(1, 1), padding="SAME",
            dimension_numbers=("NCHW", "OIHW", "NCHW"))
        return y + b[None, :, None, None]

    def bn(x, g, be):
        mean = jnp.mean(x, axis=(0, 2, 3), keepdims=True)
        var = jnp.mean((x - mean) ** 2, axis=(0, 2, 3), keepdims=True)
        return ((x - mean) * lax.rsqrt(var + EPS)
                * g[None, :, None, None] + be[None, :, None, None])

    x = jax.nn.relu(conv(x_nchw, *params["conv1"]))
    x = bn(x, *params["bn3"])
    x = jax.nn.relu(conv(x, *params["conv2"]))
    x = bn(x, *params["bn1"])
    x = jax.nn.relu(conv(x, *params["conv3"]))
    x = bn(x, *params["bn2"])
    x = conv(x, *params["conv4"])
    return jnp.tanh(x)


if __name__ == "__main__":
    key = jax.random.PRNGKey(0)
    k_params, k_x = jax.random.split(key)
    params = init_params(k_params)

    # Small NCHW input consistent with the module: batch=2, channels=3, 16x16.
    x = jax.random.normal(k_x, (2, 3, 16, 16), jnp.float32)

    fwd = jax.jit(generator_forward)
    out = jax.block_until_ready(fwd(x, params))
    assert out.shape == (2, 3, 16, 16) and out.dtype == jnp.float32

    ref = jax.block_until_ready(_ref_forward(x, params))
    max_err = float(jnp.max(jnp.abs(out - ref)))
    assert max_err < 2e-3, f"mismatch vs reference: {max_err}"

    print("KERNEL_OK")
</pallas_src>

<mosaic_0001>
module attributes {stable_mosaic.version = 11 : i64} {
  func.func @generator_kernel(%arg0: memref<27x768xf32, #tpu.memory_space<vmem>>, %arg1: memref<1x768xf32, #tpu.memory_space<vmem>>, %arg2: memref<16x27xf32, #tpu.memory_space<vmem>>, %arg3: memref<16x3xf32, #tpu.memory_space<vmem>>, %arg4: memref<32x144xf32, #tpu.memory_space<vmem>>, %arg5: memref<32x3xf32, #tpu.memory_space<vmem>>, %arg6: memref<8x288xf32, #tpu.memory_space<vmem>>, %arg7: memref<8x3xf32, #tpu.memory_space<vmem>>, %arg8: memref<3x72xf32, #tpu.memory_space<vmem>>, %arg9: memref<3x3xf32, #tpu.memory_space<vmem>>, %arg10: memref<3x768xf32, #tpu.memory_space<vmem>>) attributes {dimension_semantics = [], scalar_prefetch = 0 : i64, scratch_operands = 0 : i64, tpu.core_type = #tpu.core_type<tc>} {
    %c0 = arith.constant 0 : index
    %c0_0 = arith.constant 0 : index
    %0 = vector.load %arg1[%c0, %c0_0] : memref<1x768xf32, #tpu.memory_space<vmem>>, vector<1x768xf32>
    %c0_1 = arith.constant 0 : index
    %c0_2 = arith.constant 0 : index
    %1 = vector.load %arg2[%c0_1, %c0_2] : memref<16x27xf32, #tpu.memory_space<vmem>>, vector<16x27xf32>
    %c0_3 = arith.constant 0 : index
    %c0_4 = arith.constant 0 : index
    %2 = vector.load %arg0[%c0_3, %c0_4] : memref<27x768xf32, #tpu.memory_space<vmem>>, vector<27x768xf32>
    %cst = arith.constant dense<0.000000e+00> : vector<16x768xf32>
    %3 = tpu.matmul %1, %2, %cst {dimension_numbers = #tpu.dot_dimension_numbers<[1], [0], [0], [1], [0, 0, 1, 1], [], []>} : vector<16x27xf32>, vector<27x768xf32>, vector<16x768xf32> -> vector<16x768xf32>
    %c0_5 = arith.constant 0 : index
    %c0_6 = arith.constant 0 : index
    %4 = vector.load %arg3[%c0_5, %c0_6] : memref<16x3xf32, #tpu.memory_space<vmem>>, vector<16x3xf32>
    %5 = vector.extract_strided_slice %4 {offsets = [0, 0], sizes = [16, 1], strides = [1, 1]} : vector<16x3xf32> to vector<16x1xf32>
    %6 = vector.broadcast %5 : vector<16x1xf32> to vector<16x768xf32>
    %7 = arith.addf %3, %6 : vector<16x768xf32>
    %cst_7 = arith.constant 0.000000e+00 : f32
    %8 = vector.broadcast %cst_7 : f32 to vector<16x768xf32>
    %9 = arith.maximumf %7, %8 : vector<16x768xf32>
    %10 = vector.broadcast %0 : vector<1x768xf32> to vector<16x768xf32>
    %11 = arith.mulf %9, %10 : vector<16x768xf32>
    %cst_8 = arith.constant dense<0.000000e+00> : vector<16xf32>
    %12 = vector.multi_reduction <add>, %11, %cst_8 [1] : vector<16x768xf32> to vector<16xf32>
    %13 = vector.shape_cast %12 : vector<16xf32> to vector<16x1xf32>
    %cst_9 = arith.constant 0.001953125 : f32
    %14 = vector.broadcast %cst_9 : f32 to vector<16x1xf32>
    %15 = arith.mulf %13, %14 : vector<16x1xf32>
    %16 = arith.mulf %11, %11 : vector<16x768xf32>
    %cst_10 = arith.constant dense<0.000000e+00> : vector<16xf32>
    %17 = vector.multi_reduction <add>, %16, %cst_10 [1] : vector<16x768xf32> to vector<16xf32>
    %18 = vector.shape_cast %17 : vector<16xf32> to vector<16x1xf32>
    %cst_11 = arith.constant 0.001953125 : f32
    %19 = vector.broadcast %cst_11 : f32 to vector<16x1xf32>
    %20 = arith.mulf %18, %19 : vector<16x1xf32>
    %21 = arith.mulf %15, %15 : vector<16x1xf32>
    %22 = arith.subf %20, %21 : vector<16x1xf32>
    %23 = vector.broadcast %15 : vector<16x1xf32> to vector<16x768xf32>
    %24 = arith.subf %11, %23 : vector<16x768xf32>
    %cst_12 = arith.constant 9.99999974E-6 : f32
    %25 = vector.broadcast %cst_12 : f32 to vector<16x1xf32>
    %26 = arith.addf %22, %25 : vector<16x1xf32>
    %27 = math.rsqrt %26 : vector<16x1xf32>
    %28 = vector.broadcast %27 : vector<16x1xf32> to vector<16x768xf32>
    %29 = arith.mulf %24, %28 : vector<16x768xf32>
    %30 = vector.extract_strided_slice %4 {offsets = [0, 1], sizes = [16, 1], strides = [1, 1]} : vector<16x3xf32> to vector<16x1xf32>
    %31 = vector.broadcast %30 : vector<16x1xf32> to vector<16x768xf32>
    %32 = arith.mulf %29, %31 : vector<16x768xf32>
    %33 = vector.extract_strided_slice %4 {offsets = [0, 2], sizes = [16, 1], strides = [1, 1]} : vector<16x3xf32> to vector<16x1xf32>
    %34 = vector.broadcast %33 : vector<16x1xf32> to vector<16x768xf32>
    %35 = arith.addf %32, %34 : vector<16x768xf32>
    %36 = vector.broadcast %0 : vector<1x768xf32> to vector<16x768xf32>
    %37 = arith.mulf %35, %36 : vector<16x768xf32>
    %c0_13 = arith.constant 0 : index
    %c0_14 = arith.constant 0 : index
    %38 = vector.load %arg4[%c0_13, %c0_14] : memref<32x144xf32, #tpu.memory_space<vmem>>, vector<32x144xf32>
    %c19_i32 = arith.constant 19 : i32
    %39 = tpu.dynamic_rotate %37 by %c19_i32 dim 1 : vector<16x768xf32>, i32 -> vector<16x768xf32>
    %c18_i32 = arith.constant 18 : i32
    %40 = tpu.dynamic_rotate %37 by %c18_i32 dim 1 : vector<16x768xf32>, i32 -> vector<16x768xf32>
    %c17_i32 = arith.constant 17 : i32
    %41 = tpu.dynamic_rotate %37 by %c17_i32 dim 1 : vector<16x768xf32>, i32 -> vector<16x768xf32>
    %c1_i32 = arith.constant 1 : i32
    %42 = tpu.dynamic_rotate %37 by %c1_i32 dim 1 : vector<16x768xf32>, i32 -> vector<16x768xf32>
    %c767_i32 = arith.constant 767 : i32
    %43 = tpu.dynamic_rotate %37 by %c767_i32 dim 1 : vector<16x768xf32>, i32 -> vector<16x768xf32>
    %c751_i32 = arith.constant 751 : i32
    %44 = tpu.dynamic_rotate %37 by %c751_i32 dim 1 : vector<16x768xf32>, i32 -> vector<16x768xf32>
    %c750_i32 = arith.constant 750 : i32
    %45 = tpu.dynamic_rotate %37 by %c750_i32 dim 1 : vector<16x768xf32>, i32 -> vector<16x768xf32>
    %c749_i32 = arith.constant 749 : i32
    %46 = tpu.dynamic_rotate %37 by %c749_i32 dim 1 : vector<16x768xf32>, i32 -> vector<16x768xf32>
    %47 = tpu.concatenate %39, %40, %41, %42, %37, %43, %44, %45, %46 in 0 : vector<16x768xf32>, vector<16x768xf32>, vector<16x768xf32>, vector<16x768xf32>, vector<16x768xf32>, vector<16x768xf32>, vector<16x768xf32>, vector<16x768xf32>, vector<16x768xf32> -> vector<144x768xf32>
    %cst_15 = arith.constant dense<0.000000e+00> : vector<32x768xf32>
    %48 = tpu.matmul %38, %47, %cst_15 {dimension_numbers = #tpu.dot_dimension_numbers<[1], [0], [0], [1], [0, 0, 1, 1], [], []>} : vector<32x144xf32>, vector<144x768xf32>, vector<32x768xf32> -> vector<32x768xf32>
    %c0_16 = arith.constant 0 : index
    %c0_17 = arith.constant 0 : index
    %49 = vector.load %arg5[%c0_16, %c0_17] : memref<32x3xf32, #tpu.memory_space<vmem>>, vector<32x3xf32>
    %50 = vector.extract_strided_slice %49 {offsets = [0, 0], sizes = [32, 1], strides = [1, 1]} : vector<32x3xf32> to vector<32x1xf32>
    %51 = vector.broadcast %50 : vector<32x1xf32> to vector<32x768xf32>
    %52 = arith.addf %48, %51 : vector<32x768xf32>
    %cst_18 = arith.constant 0.000000e+00 : f32
    %53 = vector.broadcast %cst_18 : f32 to vector<32x768xf32>
    %54 = arith.maximumf %52, %53 : vector<32x768xf32>
    %55 = vector.broadcast %0 : vector<1x768xf32> to vector<32x768xf32>
    %56 = arith.mulf %54, %55 : vector<32x768xf32>
    %cst_19 = arith.constant dense<0.000000e+00> : vector<32xf32>
    %57 = vector.multi_reduction <add>, %56, %cst_19 [1] : vector<32x768xf32> to vector<32xf32>
    %58 = vector.shape_cast %57 : vector<32xf32> to vector<32x1xf32>
    %cst_20 = arith.constant 0.001953125 : f32
    %59 = vector.broadcast %cst_20 : f32 to vector<32x1xf32>
    %60 = arith.mulf %58, %59 : vector<32x1xf32>
    %61 = arith.mulf %56, %56 : vector<32x768xf32>
    %cst_21 = arith.constant dense<0.000000e+00> : vector<32xf32>
    %62 = vector.multi_reduction <add>, %61, %cst_21 [1] : vector<32x768xf32> to vector<32xf32>
    %63 = vector.shape_cast %62 : vector<32xf32> to vector<32x1xf32>
    %cst_22 = arith.constant 0.001953125 : f32
    %64 = vector.broadcast %cst_22 : f32 to vector<32x1xf32>
    %65 = arith.mulf %63, %64 : vector<32x1xf32>
    %66 = arith.mulf %60, %60 : vector<32x1xf32>
    %67 = arith.subf %65, %66 : vector<32x1xf32>
    %68 = vector.broadcast %60 : vector<32x1xf32> to vector<32x768xf32>
    %69 = arith.subf %56, %68 : vector<32x768xf32>
    %cst_23 = arith.constant 9.99999974E-6 : f32
    %70 = vector.broadcast %cst_23 : f32 to vector<32x1xf32>
    %71 = arith.addf %67, %70 : vector<32x1xf32>
    %72 = math.rsqrt %71 : vector<32x1xf32>
    %73 = vector.broadcast %72 : vector<32x1xf32> to vector<32x768xf32>
    %74 = arith.mulf %69, %73 : vector<32x768xf32>
    %75 = vector.extract_strided_slice %49 {offsets = [0, 1], sizes = [32, 1], strides = [1, 1]} : vector<32x3xf32> to vector<32x1xf32>
    %76 = vector.broadcast %75 : vector<32x1xf32> to vector<32x768xf32>
    %77 = arith.mulf %74, %76 : vector<32x768xf32>
    %78 = vector.extract_strided_slice %49 {offsets = [0, 2], sizes = [32, 1], strides = [1, 1]} : vector<32x3xf32> to vector<32x1xf32>
    %79 = vector.broadcast %78 : vector<32x1xf32> to vector<32x768xf32>
    %80 = arith.addf %77, %79 : vector<32x768xf32>
    %81 = vector.broadcast %0 : vector<1x768xf32> to vector<32x768xf32>
    %82 = arith.mulf %80, %81 : vector<32x768xf32>
    %c0_24 = arith.constant 0 : index
    %c0_25 = arith.constant 0 : index
    %83 = vector.load %arg6[%c0_24, %c0_25] : memref<8x288xf32, #tpu.memory_space<vmem>>, vector<8x288xf32>
    %c19_i32_26 = arith.constant 19 : i32
    %84 = tpu.dynamic_rotate %82 by %c19_i32_26 dim 1 : vector<32x768xf32>, i32 -> vector<32x768xf32>
    %c18_i32_27 = arith.constant 18 : i32
    %85 = tpu.dynamic_rotate %82 by %c18_i32_27 dim 1 : vector<32x768xf32>, i32 -> vector<32x768xf32>
    %c17_i32_28 = arith.constant 17 : i32
    %86 = tpu.dynamic_rotate %82 by %c17_i32_28 dim 1 : vector<32x768xf32>, i32 -> vector<32x768xf32>
    %c1_i32_29 = arith.constant 1 : i32
    %87 = tpu.dynamic_rotate %82 by %c1_i32_29 dim 1 : vector<32x768xf32>, i32 -> vector<32x768xf32>
    %c767_i32_30 = arith.constant 767 : i32
    %88 = tpu.dynamic_rotate %82 by %c767_i32_30 dim 1 : vector<32x768xf32>, i32 -> vector<32x768xf32>
    %c751_i32_31 = arith.constant 751 : i32
    %89 = tpu.dynamic_rotate %82 by %c751_i32_31 dim 1 : vector<32x768xf32>, i32 -> vector<32x768xf32>
    %c750_i32_32 = arith.constant 750 : i32
    %90 = tpu.dynamic_rotate %82 by %c750_i32_32 dim 1 : vector<32x768xf32>, i32 -> vector<32x768xf32>
    %c749_i32_33 = arith.constant 749 : i32
    %91 = tpu.dynamic_rotate %82 by %c749_i32_33 dim 1 : vector<32x768xf32>, i32 -> vector<32x768xf32>
    %92 = tpu.concatenate %84, %85, %86, %87, %82, %88, %89, %90, %91 in 0 : vector<32x768xf32>, vector<32x768xf32>, vector<32x768xf32>, vector<32x768xf32>, vector<32x768xf32>, vector<32x768xf32>, vector<32x768xf32>, vector<32x768xf32>, vector<32x768xf32> -> vector<288x768xf32>
    %cst_34 = arith.constant dense<0.000000e+00> : vector<8x768xf32>
    %93 = tpu.matmul %83, %92, %cst_34 {dimension_numbers = #tpu.dot_dimension_numbers<[1], [0], [0], [1], [0, 0, 1, 1], [], []>} : vector<8x288xf32>, vector<288x768xf32>, vector<8x768xf32> -> vector<8x768xf32>
    %c0_35 = arith.constant 0 : index
    %c0_36 = arith.constant 0 : index
    %94 = vector.load %arg7[%c0_35, %c0_36] : memref<8x3xf32, #tpu.memory_space<vmem>>, vector<8x3xf32>
    %95 = vector.extract_strided_slice %94 {offsets = [0, 0], sizes = [8, 1], strides = [1, 1]} : vector<8x3xf32> to vector<8x1xf32>
    %96 = vector.broadcast %95 : vector<8x1xf32> to vector<8x768xf32>
    %97 = arith.addf %93, %96 : vector<8x768xf32>
    %cst_37 = arith.constant 0.000000e+00 : f32
    %98 = vector.broadcast %cst_37 : f32 to vector<8x768xf32>
    %99 = arith.maximumf %97, %98 : vector<8x768xf32>
    %100 = vector.broadcast %0 : vector<1x768xf32> to vector<8x768xf32>
    %101 = arith.mulf %99, %100 : vector<8x768xf32>
    %cst_38 = arith.constant dense<0.000000e+00> : vector<8xf32>
    %102 = vector.multi_reduction <add>, %101, %cst_38 [1] : vector<8x768xf32> to vector<8xf32>
    %103 = vector.shape_cast %102 : vector<8xf32> to vector<8x1xf32>
    %cst_39 = arith.constant 0.001953125 : f32
    %104 = vector.broadcast %cst_39 : f32 to vector<8x1xf32>
    %105 = arith.mulf %103, %104 : vector<8x1xf32>
    %106 = arith.mulf %101, %101 : vector<8x768xf32>
    %cst_40 = arith.constant dense<0.000000e+00> : vector<8xf32>
    %107 = vector.multi_reduction <add>, %106, %cst_40 [1] : vector<8x768xf32> to vector<8xf32>
    %108 = vector.shape_cast %107 : vector<8xf32> to vector<8x1xf32>
    %cst_41 = arith.constant 0.001953125 : f32
    %109 = vector.broadcast %cst_41 : f32 to vector<8x1xf32>
    %110 = arith.mulf %108, %109 : vector<8x1xf32>
    %111 = arith.mulf %105, %105 : vector<8x1xf32>
    %112 = arith.subf %110, %111 : vector<8x1xf32>
    %113 = vector.broadcast %105 : vector<8x1xf32> to vector<8x768xf32>
    %114 = arith.subf %101, %113 : vector<8x768xf32>
    %cst_42 = arith.constant 9.99999974E-6 : f32
    %115 = vector.broadcast %cst_42 : f32 to vector<8x1xf32>
    %116 = arith.addf %112, %115 : vector<8x1xf32>
    %117 = math.rsqrt %116 : vector<8x1xf32>
    %118 = vector.broadcast %117 : vector<8x1xf32> to vector<8x768xf32>
    %119 = arith.mulf %114, %118 : vector<8x768xf32>
    %120 = vector.extract_strided_slice %94 {offsets = [0, 1], sizes = [8, 1], strides = [1, 1]} : vector<8x3xf32> to vector<8x1xf32>
    %121 = vector.broadcast %120 : vector<8x1xf32> to vector<8x768xf32>
    %122 = arith.mulf %119, %121 : vector<8x768xf32>
    %123 = vector.extract_strided_slice %94 {offsets = [0, 2], sizes = [8, 1], strides = [1, 1]} : vector<8x3xf32> to vector<8x1xf32>
    %124 = vector.broadcast %123 : vector<8x1xf32> to vector<8x768xf32>
    %125 = arith.addf %122, %124 : vector<8x768xf32>
    %126 = vector.broadcast %0 : vector<1x768xf32> to vector<8x768xf32>
    %127 = arith.mulf %125, %126 : vector<8x768xf32>
    %c0_43 = arith.constant 0 : index
    %c0_44 = arith.constant 0 : index
    %128 = vector.load %arg8[%c0_43, %c0_44] : memref<3x72xf32, #tpu.memory_space<vmem>>, vector<3x72xf32>
    %c19_i32_45 = arith.constant 19 : i32
    %129 = tpu.dynamic_rotate %127 by %c19_i32_45 dim 1 : vector<8x768xf32>, i32 -> vector<8x768xf32>
    %c18_i32_46 = arith.constant 18 : i32
    %130 = tpu.dynamic_rotate %127 by %c18_i32_46 dim 1 : vector<8x768xf32>, i32 -> vector<8x768xf32>
    %c17_i32_47 = arith.constant 17 : i32
    %131 = tpu.dynamic_rotate %127 by %c17_i32_47 dim 1 : vector<8x768xf32>, i32 -> vector<8x768xf32>
    %c1_i32_48 = arith.constant 1 : i32
    %132 = tpu.dynamic_rotate %127 by %c1_i32_48 dim 1 : vector<8x768xf32>, i32 -> vector<8x768xf32>
    %c767_i32_49 = arith.constant 767 : i32
    %133 = tpu.dynamic_rotate %127 by %c767_i32_49 dim 1 : vector<8x768xf32>, i32 -> vector<8x768xf32>
    %c751_i32_50 = arith.constant 751 : i32
    %134 = tpu.dynamic_rotate %127 by %c751_i32_50 dim 1 : vector<8x768xf32>, i32 -> vector<8x768xf32>
    %c750_i32_51 = arith.constant 750 : i32
    %135 = tpu.dynamic_rotate %127 by %c750_i32_51 dim 1 : vector<8x768xf32>, i32 -> vector<8x768xf32>
    %c749_i32_52 = arith.constant 749 : i32
    %136 = tpu.dynamic_rotate %127 by %c749_i32_52 dim 1 : vector<8x768xf32>, i32 -> vector<8x768xf32>
    %137 = tpu.concatenate %129, %130, %131, %132, %127, %133, %134, %135, %136 in 0 : vector<8x768xf32>, vector<8x768xf32>, vector<8x768xf32>, vector<8x768xf32>, vector<8x768xf32>, vector<8x768xf32>, vector<8x768xf32>, vector<8x768xf32>, vector<8x768xf32> -> vector<72x768xf32>
    %cst_53 = arith.constant dense<0.000000e+00> : vector<3x768xf32>
    %138 = tpu.matmul %128, %137, %cst_53 {dimension_numbers = #tpu.dot_dimension_numbers<[1], [0], [0], [1], [0, 0, 1, 1], [], []>} : vector<3x72xf32>, vector<72x768xf32>, vector<3x768xf32> -> vector<3x768xf32>
    %c0_54 = arith.constant 0 : index
    %c0_55 = arith.constant 0 : index
    %139 = vector.load %arg9[%c0_54, %c0_55] : memref<3x3xf32, #tpu.memory_space<vmem>>, vector<3x3xf32>
    %140 = vector.extract_strided_slice %139 {offsets = [0, 0], sizes = [3, 1], strides = [1, 1]} : vector<3x3xf32> to vector<3x1xf32>
    %141 = vector.broadcast %140 : vector<3x1xf32> to vector<3x768xf32>
    %142 = arith.addf %138, %141 : vector<3x768xf32>
    %143 = math.tanh %142 : vector<3x768xf32>
    %c0_56 = arith.constant 0 : index
    %c0_57 = arith.constant 0 : index
    %144 = vector.load %arg10[%c0_56, %c0_57] : memref<3x768xf32, #tpu.memory_space<vmem>>, vector<3x768xf32>
    tpu.vector_store %arg10[%c0_56, %c0_57], %143 {strides = array<i32>} : memref<3x768xf32, #tpu.memory_space<vmem>>, vector<3x768xf32>,
    return
  }
}

</mosaic_0001>

<bundles_post_ra>
// kernel: generator_forward.1
= control target key start
LH: loop header
LB: loop body
LE: loop exit
PB: predicated region body
PF: predicated region fallthrough
CT: control target
= control target key end

     0   :  { %vm81_vm0 = vcmask 1042432   ;;  %v6448_v3 = vmov 0.0   ;;  %vm74_vm1 = vcmask 220160   ;;  %v6455_v25 = vmov 0   ;;  %s3003_s28 = smov 110   ;;  %s3004_s29 = smov 127   ;;  %s6437_s0 = inlined_call_operand.vmem [shape: f32[27,768], index: 0, kind: input, shape index: {}]   ;;  %s6438_s2 = inlined_call_operand.vmem [shape: f32[16,27], index: 2, kind: input, shape index: {}]   ;;  %s6439_s3 = inlined_call_operand.vmem [shape: f32[16,3], index: 3, kind: input, shape index: {}]   ;;  %s6440_s1 = inlined_call_operand.vmem [shape: f32[1,768], index: 1, kind: input, shape index: {}]   ;;  %s6441_s4 = inlined_call_operand.vmem [shape: f32[32,144], index: 4, kind: input, shape index: {}]   ;;  %s6442_s5 = inlined_call_operand.vmem [shape: f32[32,3], index: 5, kind: input, shape index: {}]   ;;  %s6443_s6 = inlined_call_operand.vmem [shape: f32[8,288], index: 6, kind: input, shape index: {}]   ;;  %s6444_s7 = inlined_call_operand.vmem [shape: f32[8,3], index: 7, kind: input, shape index: {}]   ;;  %s6445_s9 = inlined_call_operand.vmem [shape: f32[3,3], index: 9, kind: input, shape index: {}]   ;;  %s6446_s8 = inlined_call_operand.vmem [shape: f32[3,72], index: 8, kind: input, shape index: {}]   ;;  %s6447_s10 = inlined_call_operand.vmem [shape: f32[3,768], index: 10, kind: output, shape index: {}]  }
   0x1   :  { %v57_v0 = vld [vmem:[%s6437_s0 + $0x98] sm:$0x7]  ;;  %v59_v1 = vld [vmem:[%s6437_s0 + $0xa8] sm:$0x7]  ;;  %v56_v2 = vld [vmem:[%s6437_s0 + $0x90] sm:$0x7]  ;;  %164 = vmatprep.mubr.f32.mxu0 %v6448_v3  ;;  %241 = vmatprep.mubr.f32.mxu1 %v6448_v3  ;;  %v6450_v32 = vlaneseq }
   0x2   :  { %2912 = vmatprep.subr.msk.mxu0 %vm81_vm0, %v57_v0  ;;  %2916 = vmatprep.subr.msk.mxu1 %vm81_vm0, %v59_v1  ;;  %v58_v4 = vld [vmem:[%s6437_s0 + $0xa0] sm:$0x7]  ;;  %v51_v5 = vld [vmem:[%s6437_s0 + $0x68] sm:$0xff]  ;;  %v53_v6 = vld [vmem:[%s6437_s0 + $0x78] sm:$0xff]  ;;  %v6453_v30 = vmov 1   ;;  %v6451_v31 = vmov 2  }
   0x3   :  { %2913 = vmatpush1.msk.msra.mxu0 %vm81_vm0, %v56_v2  ;;  %2917 = vmatpush1.msk.msra.mxu1 %vm81_vm0, %v58_v4  ;;  %v50_v7 = vld [vmem:[%s6437_s0 + $0x60] sm:$0xff]  ;;  %v52_v8 = vld [vmem:[%s6437_s0 + $0x70] sm:$0xff]  ;;  %v45_v9 = vld [vmem:[%s6437_s0 + $0x38] sm:$0xff]  ;;  %v345_v34 = vshrl.u32 %v6450_v32, 7  ;;  %s3005_s30 = smov 1   ;;  %s3006_s11 = smov 17  }
   0x4   :  { %126 = vmatprep.subr.mxu0 %v51_v5  ;;  %203 = vmatprep.subr.mxu1 %v53_v6  ;;  %v47_v10 = vld [vmem:[%s6437_s0 + $0x48] sm:$0xff]  ;;  %v44_v11 = vld [vmem:[%s6437_s0 + $0x30] sm:$0xff]  ;;  %v46_v12 = vld [vmem:[%s6437_s0 + $0x40] sm:$0xff]  ;;  %s3007_s12 = smov 18   ;;  %s3008_s13 = smov 19   ;;  %vm844_vm2 = vcmask 130048  }
   0x5   :  { %127 = vmatpush1.msra.mxu0 %v50_v7  ;;  %204 = vmatpush1.msra.mxu1 %v52_v8  ;;  %v39_v13 = vld [vmem:[%s6437_s0 + $0x8] sm:$0xff]  ;;  %v41_v14 = vld [vmem:[%s6437_s0 + $0x18] sm:$0xff]  ;;  %v38_v15 = vld [vmem:[%s6437_s0] sm:$0xff]  ;;  %v346_v35 = vsub.s32 0, %v345_v34  ;;  %v354_v37 = vsub.s32 2, %v345_v34  ;;  %v350_v38 = vsub.s32 1, %v345_v34 }
   0x6   :  { %128 = vmatprep.subr.mxu0 %v45_v9  ;;  %205 = vmatprep.subr.mxu1 %v47_v10  ;;  %v40_v16 = vld [vmem:[%s6437_s0 + $0x10] sm:$0xff]  ;;  %v36_v17 = vld [vmem:[%s6438_s2] sm:$0xff]  ;;  %v61_v18 = vld [vmem:[%s6437_s0 + $0xb8] sm:$0x7]  ;;  %v358_v39 = vsub.s32 3, %v345_v34  ;;  %v362_v60 = vsub.s32 4, %v345_v34 }
   0x7   :  { %129 = vmatpush1.msra.mxu0 %v44_v11  ;;  %206 = vmatpush1.msra.mxu1 %v46_v12  ;;  %v60_v19 = vld [vmem:[%s6437_s0 + $0xb0] sm:$0x7]  ;;  %v55_v20 = vld [vmem:[%s6437_s0 + $0x88] sm:$0xff]  ;;  %v54_v21 = vld [vmem:[%s6437_s0 + $0x80] sm:$0xff]  ;;  %v366_v5 = vsub.s32 5, %v345_v34  ;;  %s3009_s14 = smov 109  }
   0x8   :  { %130 = vmatprep.subr.mxu0 %v39_v13  ;;  %207 = vmatprep.subr.mxu1 %v41_v14  ;;  %v37_v22 = vld [vmem:[%s6438_s2 + $0x8] sm:$0xff]  ;;  %v49_v23 = vld [vmem:[%s6437_s0 + $0x58] sm:$0xff]  ;;  %v48_v24 = vld [vmem:[%s6437_s0 + $0x50] sm:$0xff]  ;;  %vm2013_vm11 = vcmask 261120   ;;  %vm2670_vm12 = vcmask 588800  }
   0x9   :  { %131 = vmatpush1.msra.mxu0 %v38_v15  ;;  %208 = vmatpush1.msra.mxu1 %v40_v16  ;;  %v43_v26 = vld [vmem:[%s6437_s0 + $0x28] sm:$0xff]  ;;  %v42_v28 = vld [vmem:[%s6437_s0 + $0x20] sm:$0xff] }
   0xa   :  { %2914 = vmatmul.mubr.msk.f32.vlgmr.msra.gmra.mxu0 %vm74_vm1, %v36_v17  ;;  %2918 = vmatmul.mubr.msk.f32.vlgmr.msra.gmra.mxu1 %vm74_vm1, %v36_v17  ;;  %v63_v27 = vld [vmem:[%s6439_s3 + $0x8] sm:$0xff]  ;;  %v62_v29 = vld [vmem:[%s6439_s3] sm:$0xff] }
   0xb   :  { %2920 = vmatprep.subr.msk.mxu0 %vm81_vm0, %v61_v18  ;;  %170 = vmatprep.mubr.f32.mxu0 %v6448_v3  ;;  %v35_v36 = vld [vmem:[%s6440_s1] sm:$0x3f]  ;;  %s3002_s1 = smov 111  }
   0xc   :  { %2921 = vmatpush1.msk.msra.mxu0 %vm81_vm0, %v60_v19  ;;  %247 = vmatprep.mubr.f32.mxu1 %v6448_v3  ;;  %v3178_v44 = vrot.slane %v35_v36, %v346_v35  ;;  %v3180_v46 = vrot.slane %v35_v36, %v354_v37  ;;  %v3182_v48 = vrot.slane %v35_v36, %v350_v38 }
   0xd   :  { %280 = vmatprep.subr.mxu0 %v55_v20  ;;  %2954 = vset.pattern.permute.xlu0 %v6455_v25  ;;  %v3184_v50 = vrot.slane %v35_v36, %v358_v39  ;;  %v3208_v14 = vrot.slane %v35_v36, %v362_v60 }
   0xe   :  { %281 = vmatpush1.msra.mxu0 %v54_v21  ;;  %2919 = vmatmul.mubr.msk.f32.gmra.mxu1 %vm74_vm1, %v37_v22  ;;  %6610 = vst [vmem:[#allocation2_spill] sm:$0xff] %v3178_v44  ;;  %6611 = vst [vmem:[#allocation3_spill] sm:$0xff] %v3180_v46 }
   0xf   :  { %2915 = vmatmul.mubr.msk.f32.gmra.mxu0 %vm74_vm1, %v37_v22  ;;  %282 = vmatprep.subr.mxu0 %v49_v23  ;;  %6612 = vst [vmem:[#allocation4_spill] sm:$0xff] %v3182_v48  ;;  %6613 = vst [vmem:[#allocation5_spill] sm:$0xff] %v3184_v50 }
  0x10   :  { %283 = vmatpush1.msra.mxu0 %v48_v24  ;;  %318 = vmatprep.mubr.f32.mxu0 %v6448_v3  ;;  %6614 = vst [vmem:[#allocation6_spill] sm:$0xff] %v3208_v14 }
  0x11   :  { %284 = vmatprep.subr.mxu0 %v43_v26  ;;  %71 = vperm.xlu0 %2954, %v63_v27  }
  0x12   :  { %285 = vmatpush1.msra.mxu0 %v42_v28  ;;  %2955 = vset.pattern.permute.xlu1 %v6453_v30 }
  0x13   :  { %2922 = vmatmul.mubr.msk.f32.vlgmr.msra.gmra.mxu0 %vm74_vm1, %v36_v17  ;;  %467 = vperm.xlu1 %2955, %v63_v27  }
  0x14   :  { %324 = vmatprep.mubr.f32.mxu0 %v6448_v3 }
  0x15   :  { %66 = vperm.xlu0 %2954, %v62_v29  }
  0x17   :  { %2923 = vmatmul.mubr.msk.f32.gmra.mxu0 %vm74_vm1, %v37_v22  ;;  %463 = vperm.xlu1 %2955, %v62_v29  }
  0x19   :  { %2959 = vset.pattern.permute.xlu0 %v6453_v30 }
  0x1b   :  { %2956 = vset.pattern.permute.xlu1 %v6451_v31 }
  0x1c   :  { %487 = vperm.xlu1 %2956, %v63_v27   ;;  %v3224_v27 = vrot.slane %v35_v36, %v366_v5 }
  0x1e   :  { %6615 = vst [vmem:[#allocation7_spill] sm:$0xff] %v3224_v27 }
  0x20   :  { %483 = vperm.xlu1 %2956, %v62_v29  }
  0x24   :  { %2957 = vset.pattern.permute.xlu1 %v6455_v25  ;;  %v822_v25 = vld [vmem:[%s6442_s5 + $0x10] sm:$0xff] }
  0x8c   :  { %v3172_v33 = vpop.permute.xlu0 %71 }
  0x90   :  { %v67_v40 = vpop.permute.xlu0 %66 }
  0xca   :  { %v166_v41 = vpop.f32.mrf.mxu0  ;;  %v243_v42 = vpop.f32.mrf.mxu1 }
  0xcb   :  { %v167_v43 = vadd.f32 %v166_v41, %v67_v40  ;;  %v244_v45 = vadd.f32 %v243_v42, %v67_v40 }
  0xcc   :  { %v168_v47 = vpop.f32.mrf.mxu0  ;;  %v245_v49 = vpop.f32.mrf.mxu1 }
  0xcd   :  { %v331_v51 = vmax.f32 %v167_v43, 0.0  ;;  %v333_v52 = vmax.f32 %v244_v45, 0.0  ;;  %v169_v53 = vadd.f32 %v168_v47, %v67_v40  ;;  %v246_v54 = vadd.f32 %v245_v49, %v67_v40 }
  0xce   :  { %v249_v55 = vpop.f32.mrf.mxu1 }
  0xcf   :  { %v3187_v56 = vmul.f32 %v3178_v44, %v331_v51  ;;  %v332_v57 = vmax.f32 %v169_v53, 0.0  ;;  %v334_v58 = vmax.f32 %v246_v54, 0.0  ;;  %v172_v59 = vpop.f32.mrf.mxu0  ;;  %v3190_v61 = vmul.f32 %v3180_v46, %v333_v52 }
  0xd0   :  { %v173_v62 = vadd.f32 %v172_v59, %v3172_v33  ;;  %v250_v63 = vadd.f32 %v249_v55, %v3172_v33  ;;  %v251_v0 = vpop.f32.mrf.mxu1 }
  0xd1   :  { %v3195_v1 = vmul.f32 %v3182_v48, %v332_v57  ;;  %v3198_v2 = vmul.f32 %v3184_v50, %v334_v58  ;;  %v174_v4 = vpop.f32.mrf.mxu0  ;;  %v252_v9 = vadd.f32 %v251_v0, %v3172_v33  ;;  %v402_v10 = vmul.f32 %v3187_v56, %v3187_v56 }
  0xd2   :  { %v337_v6 = vmax.f32 %v173_v62, 0.0  ;;  %v339_v7 = vmax.f32 %v250_v63, 0.0  ;;  %v175_v8 = vadd.f32 %v174_v4, %v3172_v33  ;;  %v404_v15 = vmul.f32 %v3190_v61, %v3190_v61 }
  0xd3   :  { %v386_v11 = vadd.f32 %v3195_v1, %v3187_v56  ;;  %v403_v12 = vmul.f32 %v3195_v1, %v3195_v1  ;;  %v320_v13 = vpop.f32.mrf.mxu0  ;;  %v340_v18 = vmax.f32 %v252_v9, 0.0  ;;  %v405_v28 = vmul.f32 %v3198_v2, %v3198_v2 }
  0xd4   :  { %v3213_v16 = vmul.f32 %v3178_v44, %v337_v6  ;;  %v338_v17 = vmax.f32 %v175_v8, 0.0  ;;  %v3216_v19 = vmul.f32 %v3180_v46, %v339_v7  ;;  %v321_v20 = vadd.f32 %v320_v13, %v67_v40 }
  0xd5   :  { %v322_v21 = vpop.f32.mrf.mxu0  ;;  %v387_v22 = vadd.f32 %v386_v11, %v3190_v61  ;;  %v414_v23 = vadd.f32 %v403_v12, %v402_v10  ;;  %v3234_v42 = vmul.f32 %v3184_v50, %v340_v18 }
  0xd6   :  { %v408_v24 = vmul.f32 %v3213_v16, %v3213_v16  ;;  %v3222_v26 = vmul.f32 %v3182_v48, %v338_v17  ;;  %v335_v29 = vmax.f32 %v321_v20, 0.0  ;;  %v323_v34 = vadd.f32 %v322_v21, %v67_v40  ;;  %v3263_v17 = vpop.permute.xlu1 %467 }
  0xd7   :  { %v326_v35 = vpop.f32.mrf.mxu0  ;;  %v388_v37 = vadd.f32 %v387_v22, %v3198_v2  ;;  %v415_v38 = vadd.f32 %v414_v23, %v404_v15  ;;  %v410_v43 = vmul.f32 %v3216_v19, %v3216_v19  ;;  %v411_v62 = vmul.f32 %v3234_v42, %v3234_v42 }
  0xd8   :  { %v393_v39 = vadd.f32 %v3222_v26, %v3213_v16  ;;  %v409_v41 = vmul.f32 %v3222_v26, %v3222_v26  ;;  %v327_v36 = vadd.f32 %v326_v35, %v3172_v33  ;;  %v3240_v40 = vmul.f32 %v3208_v14, %v335_v29 }
  0xd9   :  { %v336_v45 = vmax.f32 %v323_v34, 0.0  ;;  %v328_v47 = vpop.f32.mrf.mxu0  ;;  %v416_v49 = vadd.f32 %v415_v38, %v405_v28 }
  0xda   :  { %v341_v51 = vmax.f32 %v327_v36, 0.0  ;;  %v329_v52 = vadd.f32 %v328_v47, %v3172_v33  ;;  %v421_v53 = vadd.f32 %v409_v41, %v408_v24  ;;  %v394_v54 = vadd.f32 %v393_v39, %v3216_v19  ;;  %v3265_v18 = vpop.permute.xlu1 %463 }
  0xdb   :  { %v3245_v55 = vmul.f32 %v3224_v27, %v336_v45  ;;  %v389_v57 = vadd.f32 %v388_v37, %v3240_v40  ;;  %v406_v58 = vmul.f32 %v3240_v40, %v3240_v40 }
  0xdc   :  { %v384_v59 = vmul.f32 %v3208_v14, %v341_v51  ;;  %v342_v60 = vmax.f32 %v329_v52, 0.0  ;;  %v422_v63 = vadd.f32 %v421_v53, %v410_v43  ;;  %v395_v5 = vadd.f32 %v394_v54, %v3234_v42 }
  0xdd   :  { %v390_v33 = vadd.f32 %v389_v57, %v3245_v55  ;;  %v407_v0 = vmul.f32 %v3245_v55, %v3245_v55  ;;  %v417_v4 = vadd.f32 %v416_v49, %v406_v58 }
  0xde   :  { %v3258_v6 = vmul.f32 %v3224_v27, %v342_v60  ;;  %v412_v7 = vmul.f32 %v384_v59, %v384_v59  ;;  %v423_v8 = vadd.f32 %v422_v63, %v411_v62  ;;  %v396_v12 = vadd.f32 %v395_v5, %v384_v59  ;;  %v3267_v20 = vpop.permute.xlu1 %487 }
  0xdf   :  { %391 = vadd.xlane.f32.xlu1 %v390_v33  ;;  %v418_v11 = vadd.f32 %v417_v4, %v407_v0 }
  0xe0   :  { %v413_v9 = vmul.f32 %v3258_v6, %v3258_v6  ;;  %v424_v10 = vadd.f32 %v423_v8, %v412_v7  ;;  %v397_v15 = vadd.f32 %v396_v12, %v3258_v6 }
  0xe2   :  { %v425_v13 = vadd.f32 %v424_v10, %v413_v9  ;;  %v3269_v21 = vpop.permute.xlu1 %483 }
  0xe3   :  { %419 = vadd.xlane.f32.xlu1 %v418_v11 }
  0xe4   :  { %426 = vadd.xlane.f32.xlu0 %v425_v13 }
  0xe7   :  { %398 = vadd.xlane.f32.xlu1 %v397_v15 }
 0x168   :  { %v392_v22 = vpop.xlane.xlu1 %391 }
 0x169   :  { %v3271_v23 = vmul.f32 0.001953125, %v392_v22 }
 0x16b   :  { %v430_v28 = vmul.f32 %v3271_v23, %v3271_v23  ;;  %v435_v47 = vsub.f32 %v3195_v1, %v3271_v23  ;;  %v436_v49 = vsub.f32 %v3190_v61, %v3271_v23  ;;  %v434_v54 = vsub.f32 %v3187_v56, %v3271_v23 }
 0x16c   :  { %v420_v24 = vpop.xlane.xlu1 %419  ;;  %v438_v9 = vsub.f32 %v3240_v40, %v3271_v23  ;;  %v439_v40 = vsub.f32 %v3245_v55, %v3271_v23 }
 0x16d   :  { %v428_v29 = vmul.f32 0.001953125, %v420_v24  ;;  %v427_v35 = vpop.xlane.xlu0 %426  ;;  %v437_v24 = vsub.f32 %v3198_v2, %v3271_v23 }
 0x16e   :  { %v429_v41 = vmul.f32 0.001953125, %v427_v35 }
 0x16f   :  { %v432_v34 = vsub.f32 %v428_v29, %v430_v28 }
 0x170   :  { %v399_v37 = vpop.xlane.xlu1 %398 }
 0x171   :  { %v446_v38 = vadd.f32 1e-05, %v432_v34  ;;  %v3275_v39 = vmul.f32 0.001953125, %v399_v37 }
 0x173   :  { %2970 = vrsqrt.f32 %v446_v38  ;;  %v431_v36 = vmul.f32 %v3275_v39, %v3275_v39  ;;  %v442_v62 = vsub.f32 %v3216_v19, %v3275_v39  ;;  %v443_v1 = vsub.f32 %v3234_v42, %v3275_v39 }
 0x174   :  { %v444_v0 = vsub.f32 %v384_v59, %v3275_v39  ;;  %v441_v23 = vsub.f32 %v3222_v26, %v3275_v39  ;;  %v440_v26 = vsub.f32 %v3213_v16, %v3275_v39 }
 0x175   :  { %v433_v43 = vsub.f32 %v429_v41, %v431_v36 }
 0x177   :  { %v447_v45 = vadd.f32 1e-05, %v433_v43 }
 0x179   :  { %2972 = vrsqrt.f32 %v447_v45  ;;  %v445_v45 = vsub.f32 %v3258_v6, %v3275_v39 }
 0x180   :  { %v2971_v51 = vpop.eup %2970 }
 0x181   :  { %v452_v52 = vmul.f32 %v2971_v51, %v436_v49  ;;  %v451_v53 = vmul.f32 %v2971_v51, %v435_v47  ;;  %v450_v60 = vmul.f32 %v2971_v51, %v434_v54  ;;  %v454_v10 = vmul.f32 %v2971_v51, %v438_v9 }
 0x182   :  { %v455_v13 = vmul.f32 %v2971_v51, %v439_v40  ;;  %v453_v29 = vmul.f32 %v2971_v51, %v437_v24 }
 0x183   :  { %v472_v57 = vmul.f32 %v3265_v18, %v452_v52  ;;  %v471_v58 = vmul.f32 %v3265_v18, %v451_v53  ;;  %v470_v7 = vmul.f32 %v3265_v18, %v450_v60  ;;  %v474_v11 = vmul.f32 %v3265_v18, %v454_v10 }
 0x184   :  { %v475_v55 = vmul.f32 %v3265_v18, %v455_v13  ;;  %v473_v34 = vmul.f32 %v3265_v18, %v453_v29 }
 0x185   :  { %v492_v63 = vadd.f32 %v3269_v21, %v472_v57  ;;  %v491_v61 = vadd.f32 %v3269_v21, %v471_v58  ;;  %v490_v59 = vadd.f32 %v3269_v21, %v470_v7  ;;  %v494_v12 = vadd.f32 %v3269_v21, %v474_v11 }
 0x186   :  { %v3293_v33 = vpop.eup %2972  ;;  %v495_v22 = vadd.f32 %v3269_v21, %v475_v55  ;;  %v493_v2 = vadd.f32 %v3269_v21, %v473_v34 }
 0x187   :  { %v3297_v56 = vmul.f32 %v3293_v33, %v442_v62  ;;  %v3300_v4 = vmul.f32 %v3293_v33, %v443_v1  ;;  %v3303_v5 = vmul.f32 %v3293_v33, %v444_v0  ;;  %v3306_v19 = vmul.f32 %v492_v63, %v3180_v46 }
 0x188   :  { %v3309_v42 = vmul.f32 %v491_v61, %v3182_v48  ;;  %v3322_v8 = vmul.f32 %v490_v59, %v3178_v44  ;;  %v3347_v15 = vmul.f32 %v494_v12, %v3208_v14  ;;  %v3362_v28 = vmul.f32 %v495_v22, %v3224_v27 }
 0x189   :  { %6616 = vst [vmem:[#allocation8_spill] sm:$0xff] %v3306_v19  ;;  %717 = vrot.lane.b32.xlu0 %v3306_v19, %s3002_s1  ;;  %v457_v35 = vmul.f32 %v3293_v33, %v441_v23  ;;  %v3382_v18 = vmul.f32 %v493_v2, %v3184_v50  ;;  %v456_v37 = vmul.f32 %v3293_v33, %v440_v26 }
 0x18a   :  { %750 = vrot.lane.b32.xlu1 %v3309_v42, %s3003_s28  ;;  %6617 = vst [vmem:[#allocation9_spill] sm:$0xff] %v3347_v15  ;;  %6618 = vst [vmem:[#allocation10_spill] sm:$0xff] %v3362_v28  ;;  %v461_v47 = vmul.f32 %v3293_v33, %v445_v45  ;;  %v479_v51 = vmul.f32 %v3263_v17, %v3300_v4  ;;  %v478_v54 = vmul.f32 %v3263_v17, %v3297_v56 }
 0x18b   :  { %6619 = vst [vmem:[#allocation11_spill] sm:$0xff] %v3382_v18  ;;  %v477_v21 = vmul.f32 %v3263_v17, %v457_v35  ;;  %v476_v41 = vmul.f32 %v3263_v17, %v456_v37  ;;  %v480_v40 = vmul.f32 %v3263_v17, %v3303_v5 }
 0x18c   :  { %v481_v49 = vmul.f32 %v3263_v17, %v461_v47  ;;  %v499_v52 = vadd.f32 %v3267_v20, %v479_v51  ;;  %v498_v57 = vadd.f32 %v3267_v20, %v478_v54  ;;  %v3567_v17 = vld [vmem:[%s6441_s4 + $0x8] sm:$0xff] }
 0x18d   :  { %680 = vrot.lane.b32.xlu0 %v3306_v19, %s3004_s29  ;;  %v497_v38 = vadd.f32 %v3267_v20, %v477_v21  ;;  %v496_v36 = vadd.f32 %v3267_v20, %v476_v41  ;;  %v500_v55 = vadd.f32 %v3267_v20, %v480_v40  ;;  %6623 = vst [vmem:[#allocation15_spill] sm:$0xff] %v3567_v17 }
 0x18e   :  { %754 = vrot.lane.b32.xlu1 %v3306_v19, %s3003_s28  ;;  %v501_v6 = vadd.f32 %v3267_v20, %v481_v49  ;;  %v3473_v53 = vmul.f32 %v499_v52, %v3184_v50  ;;  %v3495_v62 = vmul.f32 %v498_v57, %v3180_v46  ;;  %2924 = vmatprep.mubr.msk.f32.mxu1 %vm844_vm2, %v3567_v17  ;;  %v820_v50 = vld [vmem:[%s6442_s5] sm:$0xff]  ;;  %v823_v46 = vld [vmem:[%s6442_s5 + $0x18] sm:$0xff] }
 0x18f   :  { %v3403_v16 = vmul.f32 %v497_v38, %v3182_v48  ;;  %v3415_v43 = vmul.f32 %v496_v36, %v3178_v44  ;;  %2928 = vmatprep.mubr.msk.f32.mxu0 %vm844_vm2, %v3567_v17  ;;  %v3574_v20 = vmul.f32 %v500_v55, %v3208_v14  ;;  %v6630_v48 = vmov 0  }
 0x190   :  { %v3439_v39 = vmul.f32 %v501_v6, %v3224_v27  ;;  %6621 = vst [vmem:[#allocation13_spill] sm:$0xff] %v3473_v53  ;;  %6622 = vst [vmem:[#allocation14_spill] sm:$0xff] %v3495_v62 }
 0x191   :  { %639 = vrot.lane.b32.xlu0 %v3309_v42, %s3005_s30  ;;  %6624 = vst [vmem:[#allocation16_spill] sm:$0xff] %v3574_v20 }
 0x192   :  { %746 = vrot.lane.b32.xlu1 %v3322_v8, %s3003_s28  ;;  %6620 = vst [vmem:[#allocation12_spill] sm:$0xff] %v3439_v39 }
 0x195   :  { %602 = vrot.lane.b32.xlu0 %v3309_v42, %s3006_s11 }
 0x196   :  { %713 = vrot.lane.b32.xlu1 %v3309_v42, %s3002_s1 }
 0x199   :  { %565 = vrot.lane.b32.xlu0 %v3309_v42, %s3007_s12 }
 0x19a   :  { %709 = vrot.lane.b32.xlu1 %v3322_v8, %s3002_s1 }
 0x19d   :  { %526 = vrot.lane.b32.xlu0 %v3309_v42, %s3008_s13 }
 0x19e   :  { %676 = vrot.lane.b32.xlu1 %v3309_v42, %s3004_s29 }
 0x1a1   :  { %762 = vrot.lane.b32.xlu0 %v3347_v15, %s3003_s28 }
 0x1a2   :  { %672 = vrot.lane.b32.xlu1 %v3322_v8, %s3004_s29 }
 0x1a5   :  { %791 = vrot.lane.b32.xlu0 %v3306_v19, %s3009_s14 }
 0x1a6   :  { %635 = vrot.lane.b32.xlu1 %v3322_v8, %s3005_s30 }
 0x1a9   :  { %725 = vrot.lane.b32.xlu0 %v3347_v15, %s3002_s1 }
 0x1aa   :  { %655 = vrot.lane.b32.xlu1 %v3362_v28, %s3005_s30 }
 0x1ad   :  { %688 = vrot.lane.b32.xlu0 %v3347_v15, %s3004_s29 }
 0x1ae   :  { %598 = vrot.lane.b32.xlu1 %v3322_v8, %s3006_s11 }
 0x1b1   :  { %643 = vrot.lane.b32.xlu0 %v3306_v19, %s3005_s30 }
 0x1b2   :  { %618 = vrot.lane.b32.xlu1 %v3362_v28, %s3006_s11 }
 0x1b5   :  { %610 = vrot.lane.b32.xlu0 %v3382_v18, %s3006_s11 }
 0x1b6   :  { %561 = vrot.lane.b32.xlu1 %v3322_v8, %s3007_s12 }
 0x1b9   :  { %573 = vrot.lane.b32.xlu0 %v3382_v18, %s3007_s12 }
 0x1ba   :  { %581 = vrot.lane.b32.xlu1 %v3362_v28, %s3007_s12 }
 0x1bd   :  { %534 = vrot.lane.b32.xlu0 %v3382_v18, %s3008_s13 }
 0x1be   :  { %522 = vrot.lane.b32.xlu1 %v3322_v8, %s3008_s13 }
 0x1c1   :  { %752 = vrot.lane.b32.xlu0 %v3403_v16, %s3003_s28 }
 0x1c2   :  { %542 = vrot.lane.b32.xlu1 %v3362_v28, %s3008_s13 }
 0x1c5   :  { %715 = vrot.lane.b32.xlu0 %v3403_v16, %s3002_s1 }
 0x1c6   :  { %758 = vrot.lane.b32.xlu1 %v3382_v18, %s3003_s28 }
 0x1c9   :  { %711 = vrot.lane.b32.xlu0 %v3415_v43, %s3002_s1 }
 0x1ca   :  { %787 = vrot.lane.b32.xlu1 %v3309_v42, %s3009_s14 }
 0x1cd   :  { %678 = vrot.lane.b32.xlu0 %v3403_v16, %s3004_s29 }
 0x1ce   :  { %783 = vrot.lane.b32.xlu1 %v3322_v8, %s3009_s14 }
 0x1d1   :  { %674 = vrot.lane.b32.xlu0 %v3415_v43, %s3004_s29 }
 0x1d2   :  { %721 = vrot.lane.b32.xlu1 %v3382_v18, %s3002_s1 }
 0x1d5   :  { %637 = vrot.lane.b32.xlu0 %v3415_v43, %s3005_s30 }
 0x1d6   :  { %766 = vrot.lane.b32.xlu1 %v3362_v28, %s3003_s28 }
 0x1d9   :  { %657 = vrot.lane.b32.xlu0 %v3439_v39, %s3005_s30 }
 0x1da   :  { %684 = vrot.lane.b32.xlu1 %v3382_v18, %s3004_s29 }
 0x1dd   :  { %600 = vrot.lane.b32.xlu0 %v3415_v43, %s3006_s11 }
 0x1de   :  { %729 = vrot.lane.b32.xlu1 %v3362_v28, %s3002_s1 }
 0x1e1   :  { %620 = vrot.lane.b32.xlu0 %v3439_v39, %s3006_s11 }
 0x1e2   :  { %692 = vrot.lane.b32.xlu1 %v3362_v28, %s3004_s29 }
 0x1e5   :  { %563 = vrot.lane.b32.xlu0 %v3415_v43, %s3007_s12 }
 0x1e6   :  { %647 = vrot.lane.b32.xlu1 %v3382_v18, %s3005_s30 }
 0x1e9   :  { %583 = vrot.lane.b32.xlu0 %v3439_v39, %s3007_s12 }
 0x1ea   :  { %606 = vrot.lane.b32.xlu1 %v3306_v19, %s3006_s11 }
 0x1ed   :  { %524 = vrot.lane.b32.xlu0 %v3415_v43, %s3008_s13 }
 0x1ee   :  { %651 = vrot.lane.b32.xlu1 %v3347_v15, %s3005_s30 }
 0x1f1   :  { %544 = vrot.lane.b32.xlu0 %v3439_v39, %s3008_s13 }
 0x1f2   :  { %569 = vrot.lane.b32.xlu1 %v3306_v19, %s3007_s12 }
 0x1f5   :  { %760 = vrot.lane.b32.xlu0 %v3473_v53, %s3003_s28 }
 0x1f6   :  { %614 = vrot.lane.b32.xlu1 %v3347_v15, %s3006_s11 }
 0x1f9   :  { %789 = vrot.lane.b32.xlu0 %v3403_v16, %s3009_s14 }
 0x1fa   :  { %530 = vrot.lane.b32.xlu1 %v3306_v19, %s3008_s13 }
 0x1fb   :  { %v3486_v58 = vpop.permute.xlu0 %717 }
 0x1fc   :  { %v3488_v60 = vpop.permute.xlu1 %750 }
 0x1fd   :  { %785 = vrot.lane.b32.xlu0 %v3415_v43, %s3009_s14 }
 0x1fe   :  { %577 = vrot.lane.b32.xlu1 %v3347_v15, %s3007_s12 }
 0x1ff   :  { %v3497_v1 = vpop.permute.xlu0 %680 }
 0x200   :  { %v3499_v63 = vpop.permute.xlu1 %754 }
 0x201   :  { %723 = vrot.lane.b32.xlu0 %v3473_v53, %s3002_s1 }
 0x202   :  { %756 = vrot.lane.b32.xlu1 %v3495_v62, %s3003_s28 }
 0x203   :  { %v3505_v61 = vpop.permute.xlu0 %639 }
 0x204   :  { %v3507_v33 = vpop.permute.xlu1 %746 }
 0x205   :  { %768 = vrot.lane.b32.xlu0 %v3439_v39, %s3003_s28 }
 0x206   :  { %748 = vrot.lane.b32.xlu1 %v3415_v43, %s3003_s28 }
 0x207   :  { %v3513_v0 = vpop.permute.xlu0 %602 }
 0x208   :  { %v3515_v56 = vpop.permute.xlu1 %713 }
 0x209   :  { %686 = vrot.lane.b32.xlu0 %v3473_v53, %s3004_s29 }
 0x20a   :  { %719 = vrot.lane.b32.xlu1 %v3495_v62, %s3002_s1 }
 0x20b   :  { %v3521_v4 = vpop.permute.xlu0 %565 }
 0x20c   :  { %v3523_v7 = vpop.permute.xlu1 %709 }
 0x20d   :  { %795 = vrot.lane.b32.xlu0 %v3382_v18, %s3009_s14 }
 0x20e   :  { %682 = vrot.lane.b32.xlu1 %v3495_v62, %s3004_s29 }
 0x20f   :  { %v3529_v59 = vpop.permute.xlu0 %526 }
 0x210   :  { %v3531_v9 = vpop.permute.xlu1 %676 }
 0x211   :  { %731 = vrot.lane.b32.xlu0 %v3439_v39, %s3002_s1 }
 0x212   :  { %641 = vrot.lane.b32.xlu1 %v3403_v16, %s3005_s30 }
 0x213   :  { %v3537_v10 = vpop.permute.xlu0 %762 }
 0x214   :  { %v3539_v11 = vpop.permute.xlu1 %672 }
 0x215   :  { %694 = vrot.lane.b32.xlu0 %v3439_v39, %s3004_s29 }
 0x216   :  { %604 = vrot.lane.b32.xlu1 %v3403_v16, %s3006_s11 }
 0x217   :  { %v3547_v12 = vpop.permute.xlu0 %791 }
 0x218   :  { %v3549_v13 = vpop.permute.xlu1 %635 }
 0x219   :  { %645 = vrot.lane.b32.xlu0 %v3495_v62, %s3005_s30 }
 0x21a   :  { %567 = vrot.lane.b32.xlu1 %v3403_v16, %s3007_s12 }
 0x21b   :  { %v3556_v22 = vpop.permute.xlu0 %725 }
 0x21c   :  { %v3558_v24 = vpop.permute.xlu1 %655 }
 0x21d   :  { %608 = vrot.lane.b32.xlu0 %v3495_v62, %s3006_s11 }
 0x21e   :  { %528 = vrot.lane.b32.xlu1 %v3403_v16, %s3008_s13 }
 0x21f   :  { %v3576_v5 = vpop.permute.xlu0 %688 }
 0x220   :  { %v3578_v29 = vpop.permute.xlu1 %598 }
 0x221   :  { %653 = vrot.lane.b32.xlu0 %v3574_v20, %s3005_s30 }
 0x222   :  { %764 = vrot.lane.b32.xlu1 %v3574_v20, %s3003_s28 }
 0x223   :  { %v3584_v34 = vpop.permute.xlu0 %643 }
 0x224   :  { %6625 = vst [vmem:[#allocation17_spill] sm:$0xff] %v3584_v34  ;;  %v3586_v2 = vpop.permute.xlu1 %618 }
 0x225   :  { %571 = vrot.lane.b32.xlu0 %v3495_v62, %s3007_s12 }
 0x226   :  { %793 = vrot.lane.b32.xlu1 %v3495_v62, %s3009_s14 }
 0x227   :  { %v3592_v23 = vpop.permute.xlu0 %610 }
 0x228   :  { %6626 = vst [vmem:[#allocation18_spill] sm:$0xff] %v3592_v23  ;;  %v3594_v35 = vpop.permute.xlu1 %561 }
 0x229   :  { %616 = vrot.lane.b32.xlu0 %v3574_v20, %s3006_s11 }
 0x22a   :  { %727 = vrot.lane.b32.xlu1 %v3574_v20, %s3002_s1 }
 0x22b   :  { %v3600_v21 = vpop.permute.xlu0 %573 }
 0x22c   :  { %6627 = vst [vmem:[#allocation19_spill] sm:$0xff] %v3600_v21  ;;  %v3602_v26 = vpop.permute.xlu1 %581  ;;  %v6632_v21 = vmov 1  }
 0x22d   :  { %532 = vrot.lane.b32.xlu0 %v3495_v62, %s3008_s13 }
 0x22e   :  { %690 = vrot.lane.b32.xlu1 %v3574_v20, %s3004_s29 }
 0x22f   :  { %v3608_v37 = vpop.permute.xlu0 %534 }
 0x230   :  { %6628 = vst [vmem:[#allocation20_spill] sm:$0xff] %v3608_v37  ;;  %v3610_v38 = vpop.permute.xlu1 %522  ;;  %v821_v37 = vld [vmem:[%s6442_s5 + $0x8] sm:$0xff] }
 0x231   :  { %579 = vrot.lane.b32.xlu0 %v3574_v20, %s3007_s12 }
 0x232   :  { %538 = vrot.lane.b32.xlu1 %v3347_v15, %s3008_s13 }
 0x233   :  { %v3616_v41 = vpop.permute.xlu0 %752 }
 0x234   :  { %v3618_v36 = vpop.permute.xlu1 %542 }
 0x235   :  { %540 = vrot.lane.b32.xlu0 %v3574_v20, %s3008_s13 }
 0x236   :  { %649 = vrot.lane.b32.xlu1 %v3473_v53, %s3005_s30 }
 0x237   :  { %v3624_v45 = vpop.permute.xlu0 %715 }
 0x238   :  { %v3626_v47 = vpop.permute.xlu1 %758 }
 0x239   :  { %801 = vrot.lane.b32.xlu0 %v3574_v20, %s3009_s14  ;;  %v6635_v20 = vmov 2  }
 0x23a   :  { %612 = vrot.lane.b32.xlu1 %v3473_v53, %s3006_s11 }
 0x23b   :  { %v3632_v49 = vpop.permute.xlu0 %711 }
 0x23c   :  { %v3634_v6 = vpop.permute.xlu1 %787 }
 0x23d   :  { %805 = vrot.lane.b32.xlu0 %v3439_v39, %s3009_s14 }
 0x23e   :  { %575 = vrot.lane.b32.xlu1 %v3473_v53, %s3007_s12 }
 0x23f   :  { %v3640_v51 = vpop.permute.xlu0 %678 }
 0x240   :  { %v3642_v52 = vpop.permute.xlu1 %783 }
 0x241   :  { %1333 = vperm.xlu0 %2959, %v822_v25  }
 0x242   :  { %536 = vrot.lane.b32.xlu1 %v3473_v53, %s3008_s13 }
 0x243   :  { %v3646_v54 = vpop.permute.xlu0 %674 }
 0x244   :  { %v3648_v57 = vpop.permute.xlu1 %721 }
 0x245   :  { %2960 = vset.pattern.permute.xlu0 %v6630_v48 }
 0x246   :  { %797 = vrot.lane.b32.xlu1 %v3473_v53, %s3009_s14  ;;  %841 = vperm.xlu0 %2960, %v823_v46  }
 0x247   :  { %v3652_v40 = vpop.permute.xlu0 %637 }
 0x248   :  { %v3654_v55 = vpop.permute.xlu1 %766 }
 0x24a   :  { %799 = vrot.lane.b32.xlu1 %v3347_v15, %s3009_s14  ;;  %831 = vperm.xlu0 %2960, %v821_v37  }
 0x24b   :  { %v3658_v3 = vpop.permute.xlu0 %657 }
 0x24c   :  { %v3660_v32 = vpop.permute.xlu1 %684 }
 0x24e   :  { %803 = vrot.lane.b32.xlu1 %v3362_v28, %s3009_s14 }
 0x24f   :  { %v3664_v31 = vpop.permute.xlu0 %600 }
 0x250   :  { %v3666_v30 = vpop.permute.xlu1 %729 }
 0x252   :  { %836 = vperm.xlu1 %2957, %v822_v25  }
 0x253   :  { %v3671_v27 = vpop.permute.xlu0 %620 }
 0x254   :  { %v3673_v14 = vpop.permute.xlu1 %692 }
 0x255   :  { %6629 = vst [vmem:[#allocation21_spill] sm:$0xff] %v3673_v14 }
 0x256   :  { %826 = vperm.xlu1 %2957, %v820_v50  }
 0x257   :  { %v3682_v44 = vpop.permute.xlu0 %563 }
 0x258   :  { %v3684_v17 = vpop.permute.xlu1 %647 }
 0x259   :  { %6631 = vst [vmem:[#allocation22_spill] sm:$0xff] %v3684_v17 }
 0x25a   :  { %2958 = vset.pattern.permute.xlu1 %v6632_v21 }
 0x25b   :  { %v3690_v23 = vpop.permute.xlu0 %583  ;;  %1337 = vperm.xlu1 %2958, %v823_v46  }
 0x25c   :  { %v3692_v15 = vpop.permute.xlu1 %606 }
 0x25d   :  { %6633 = vst [vmem:[#allocation23_spill] sm:$0xff] %v3692_v15 }
 0x25f   :  { %v3694_v28 = vpop.permute.xlu0 %524  ;;  %2961 = vset.pattern.permute.xlu1 %v6635_v20 }
 0x260   :  { %v3696_v48 = vpop.permute.xlu1 %651  ;;  %1377 = vperm.xlu1 %2961, %v823_v46   ;;  %v6639_v46 = vlaneseq }
 0x261   :  { %6634 = vst [vmem:[#allocation24_spill] sm:$0xff] %v3696_v48 }
 0x262   :  { %v3715_v14 = vand.u32 127, %v6639_v46 }
 0x263   :  { %v3699_v34 = vpop.permute.xlu0 %544 }
 0x264   :  { %v3701_v17 = vpop.permute.xlu1 %569  ;;  %2962 = vset.pattern.permute.xlu1 %v6632_v21  ;;  %vm770_vm3 = vcmp.lt.s32.totalorder %v3715_v14, 110  ;;  %vm733_vm4 = vcmp.lt.s32.totalorder %v3715_v14, 111  ;;  %vm696_vm5 = vcmp.lt.s32.totalorder %v3715_v14, 127  ;;  %vm659_vm6 = vcmp.lt.s32.totalorder %v3715_v14, 1 }
 0x265   :  { %6636 = vst [vmem:[#allocation25_spill] sm:$0xff] %v3701_v17  ;;  %1329 = vperm.xlu1 %2962, %v821_v37   ;;  %vm622_vm7 = vcmp.lt.s32.totalorder %v3715_v14, 17  ;;  %vm585_vm8 = vcmp.lt.s32.totalorder %v3715_v14, 18  ;;  %vm548_vm9 = vcmp.lt.s32.totalorder %v3715_v14, 19  ;;  %vm807_vm10 = vcmp.lt.s32.totalorder %v3715_v14, 109 }
 0x267   :  { %v3704_v39 = vpop.permute.xlu0 %760 }
 0x268   :  { %v3706_v19 = vpop.permute.xlu1 %614 }
 0x269   :  { %6637 = vst [vmem:[#allocation26_spill] sm:$0xff] %v3706_v19  ;;  %2963 = vset.pattern.permute.xlu1 %v6635_v20 }
 0x26a   :  { %1373 = vperm.xlu1 %2963, %v822_v25  }
 0x26b   :  { %v3709_v15 = vpop.permute.xlu0 %789 }
 0x26c   :  { %v3711_v48 = vpop.permute.xlu1 %530 }
 0x26d   :  { %6638 = vst [vmem:[#allocation27_spill] sm:$0xff] %v3711_v48 }
 0x26e   :  { %2964 = vset.pattern.permute.xlu1 %v6632_v21 }
 0x26f   :  { %v3717_v17 = vpop.permute.xlu0 %785  ;;  %1325 = vperm.xlu1 %2964, %v820_v50  }
 0x270   :  { %v3719_v18 = vpop.permute.xlu1 %577 }
 0x271   :  { %6640 = vst [vmem:[#allocation28_spill] sm:$0xff] %v3719_v18 }
 0x273   :  { %v3722_v19 = vpop.permute.xlu0 %723  ;;  %2965 = vset.pattern.permute.xlu1 %v6635_v20  ;;  %v777_v20 = vsel %vm770_vm3, %v3488_v60, %v3499_v63 }
 0x274   :  { %v3724_v62 = vpop.permute.xlu1 %756  ;;  %1369 = vperm.xlu1 %2965, %v821_v37   ;;  %v779_v37 = vsel %vm770_vm3, %v3507_v33, %v3488_v60  ;;  %v740_v60 = vsel %vm733_vm4, %v3515_v56, %v3486_v58 }
 0x275   :  { %v778_v25 = vsel %vm770_vm3, %v3616_v41, %v3724_v62 }
 0x276   :  { %857 = vmatprep.subr.mxu1 %v778_v25 }
 0x277   :  { %v3731_v46 = vpop.permute.xlu0 %768 }
 0x278   :  { %v3733_v48 = vpop.permute.xlu1 %748  ;;  %1365 = vperm.xlu1 %2965, %v820_v50  }
 0x279   :  { %v780_v18 = vsel %vm770_vm3, %v3733_v48, %v3616_v41 }
 0x27a   :  { %858 = vmatpush1.msra.mxu1 %v780_v18  ;;  %v743_v18 = vsel %vm733_vm4, %v3632_v49, %v3624_v45 }
 0x27b   :  { %859 = vmatprep.subr.mxu1 %v777_v20  ;;  %v3748_v25 = vpop.permute.xlu0 %686 }
 0x27c   :  { %860 = vmatpush1.msra.mxu1 %v779_v37  ;;  %v3750_v53 = vpop.permute.xlu1 %719  ;;  %2966 = vset.pattern.permute.xlu1 %v6632_v21  ;;  %v742_v21 = vsel %vm733_vm4, %v3523_v7, %v3515_v56  ;;  %v706_v37 = vsel %vm696_vm5, %v3646_v54, %v3640_v51 }
 0x27d   :  { %v741_v50 = vsel %vm733_vm4, %v3624_v45, %v3750_v53 }
 0x27e   :  { %861 = vmatprep.subr.mxu1 %v741_v50  ;;  %v703_v50 = vsel %vm696_vm5, %v3531_v9, %v3497_v1 }
 0x27f   :  { %862 = vmatpush1.msra.mxu1 %v743_v18  ;;  %v3766_v20 = vpop.permute.xlu0 %795 }
 0x280   :  { %863 = vmatprep.subr.mxu1 %v740_v60  ;;  %v3768_v41 = vpop.permute.xlu1 %682  ;;  %v705_v60 = vsel %vm696_vm5, %v3539_v11, %v3531_v9 }
 0x281   :  { %864 = vmatpush1.msra.mxu1 %v742_v21  ;;  %v704_v45 = vsel %vm696_vm5, %v3640_v51, %v3768_v41 }
 0x282   :  { %865 = vmatprep.subr.mxu1 %v704_v45  ;;  %v670_v45 = vsel %vm659_vm6, %v3558_v24, %v3549_v13 }
 0x283   :  { %866 = vmatpush1.msra.mxu1 %v706_v37  ;;  %v3786_v18 = vpop.permute.xlu0 %731  ;;  %v634_v37 = vsel %vm622_vm7, %v3671_v27, %v3664_v31 }
 0x284   :  { %867 = vmatprep.subr.mxu1 %v703_v50  ;;  %v3788_v56 = vpop.permute.xlu1 %641  ;;  %v631_v50 = vsel %vm622_vm7, %v3578_v29, %v3513_v0 }
 0x285   :  { %868 = vmatpush1.msra.mxu1 %v705_v60  ;;  %v669_v9 = vsel %vm659_vm6, %v3652_v40, %v3788_v56 }
 0x286   :  { %869 = vmatprep.subr.mxu1 %v3403_v16  ;;  %v671_v16 = vsel %vm659_vm6, %v3658_v3, %v3652_v40 }
 0x287   :  { %870 = vmatpush1.msra.mxu1 %v3415_v43  ;;  %v3797_v51 = vpop.permute.xlu0 %694 }
 0x288   :  { %871 = vmatprep.subr.mxu1 %v3309_v42  ;;  %v3800_v21 = vpop.permute.xlu1 %604  ;;  %v668_v42 = vsel %vm659_vm6, %v3549_v13, %v3505_v61 }
 0x289   :  { %872 = vmatpush1.msra.mxu1 %v3322_v8  ;;  %v632_v40 = vsel %vm622_vm7, %v3664_v31, %v3800_v21 }
 0x28a   :  { %873 = vmatprep.subr.mxu1 %v669_v9  ;;  %v633_v9 = vsel %vm622_vm7, %v3586_v2, %v3578_v29 }
 0x28b   :  { %874 = vmatpush1.msra.mxu1 %v671_v16  ;;  %v3816_v8 = vpop.permute.xlu0 %645  ;;  %v597_v16 = vsel %vm585_vm8, %v3690_v23, %v3682_v44 }
 0x28c   :  { %875 = vmatprep.subr.mxu1 %v668_v42  ;;  %v3818_v43 = vpop.permute.xlu1 %567  ;;  %v594_v42 = vsel %vm585_vm8, %v3594_v35, %v3521_v4 }
 0x28d   :  { %876 = vmatpush1.msra.mxu1 %v670_v45  ;;  %v595_v31 = vsel %vm585_vm8, %v3682_v44, %v3818_v43 }
 0x28e   :  { %877 = vmatprep.subr.mxu1 %v632_v40  ;;  %v596_v40 = vsel %vm585_vm8, %v3602_v26, %v3594_v35  ;;  %v776_v35 = vsel %vm770_vm3, %v3724_v62, %v3704_v39  ;;  %v775_v62 = vsel %vm770_vm3, %v3499_v63, %v3626_v47  ;;  %v814_v63 = vsel %vm807_vm10, %v3634_v6, %v3547_v12 }
 0x28f   :  { %878 = vmatpush1.msra.mxu1 %v634_v37  ;;  %v3837_v13 = vpop.permute.xlu0 %608 }
 0x290   :  { %879 = vmatprep.subr.mxu1 %v631_v50  ;;  %v3839_v60 = vpop.permute.xlu1 %528  ;;  %v560_v50 = vsel %vm548_vm9, %v3699_v34, %v3694_v28 }
 0x291   :  { %880 = vmatpush1.msra.mxu1 %v633_v9  ;;  %v558_v44 = vsel %vm548_vm9, %v3694_v28, %v3839_v60  ;;  %v557_v9 = vsel %vm548_vm9, %v3610_v38, %v3529_v59 }
 0x292   :  { %881 = vmatprep.subr.mxu1 %v595_v31  ;;  %v773_v31 = vsel %vm770_vm3, %v3626_v47, %v3537_v10 }
 0x293   :  { %882 = vmatpush1.msra.mxu1 %v597_v16  ;;  %v3858_v29 = vpop.permute.xlu0 %653 }
 0x294   :  { %883 = vmatprep.subr.mxu1 %v594_v42  ;;  %v765_v45 = vpop.permute.xlu1 %764 }
 0x295   :  { %884 = vmatpush1.msra.mxu1 %v596_v40  ;;  %v774_v37 = vsel %vm770_vm3, %v3704_v39, %v765_v45  ;;  %v559_v39 = vsel %vm548_vm9, %v3618_v36, %v3610_v38  ;;  %v817_v38 = vsel %vm807_vm10, %v3717_v17, %v3709_v15  ;;  %v816_v40 = vsel %vm807_vm10, %v3642_v52, %v3634_v6 }
 0x296   :  { %885 = vmatprep.subr.mxu1 %v558_v44  ;;  %946 = vmatprep.subr.mxu0 %v774_v37  ;;  %v3919_v44 = vld [vmem:[%s6441_s4] sm:$0xff]  ;;  %v782_v37 = vsel %vm770_vm3, %v3731_v46, %v3733_v48  ;;  %v739_v6 = vsel %vm733_vm4, %v3750_v53, %v3722_v19  ;;  %v736_v48 = vsel %vm733_vm4, %v3648_v57, %v3556_v22 }
 0x297   :  { %886 = vmatpush1.msra.mxu1 %v560_v50  ;;  %947 = vmatpush1.msra.mxu0 %v776_v35  ;;  %v3898_v16 = vpop.permute.xlu0 %571  ;;  %v772_v35 = vsel %vm770_vm3, %v765_v45, %v3731_v46  ;;  %v771_v46 = vsel %vm770_vm3, %v3537_v10, %v3654_v55 }
 0x298   :  { %887 = vmatprep.subr.mxu1 %v557_v9  ;;  %948 = vmatprep.subr.mxu0 %v773_v31  ;;  %v3888_v28 = vpop.permute.xlu1 %793  ;;  %v738_v9 = vsel %vm733_vm4, %v3486_v58, %v3648_v57  ;;  %v702_v58 = vsel %vm696_vm5, %v3768_v41, %v3748_v25  ;;  %v699_v57 = vsel %vm696_vm5, %v3660_v32, %v3576_v5  ;;  %v6641_v31 = vld [vmem:[#allocation13_spill] sm:$0xff] }
 0x299   :  { %888 = vmatpush1.msra.mxu1 %v559_v39  ;;  %949 = vmatpush1.msra.mxu0 %v775_v62  ;;  %v815_v42 = vsel %vm807_vm10, %v3709_v15, %v3888_v28  ;;  %v6642_v39 = vld [vmem:[#allocation14_spill] sm:$0xff] }
 0x29a   :  { %917 = vmatprep.subr.mxu1 %v815_v42  ;;  %v6645_v42 = vld [vmem:[#allocation8_spill] sm:$0xff] }
 0x29b   :  { %918 = vmatpush2.msra.mxu1 %v817_v38  ;;  %v3932_v50 = vpop.permute.xlu0 %616 }
 0x29c   :  { %919 = vmatprep.subr.mxu1 %v814_v63  ;;  %v728_v47 = vpop.permute.xlu1 %727  ;;  %v6646_v63 = vld [vmem:[#allocation12_spill] sm:$0xff] }
 0x29d   :  { %920 = vmatpush2.msra.mxu1 %v816_v40  ;;  %v737_v15 = vsel %vm733_vm4, %v3722_v19, %v728_v47  ;;  %v781_v19 = vsel %vm770_vm3, %v3654_v55, %v3507_v33  ;;  %v745_v33 = vsel %vm733_vm4, %v3786_v18, %v3632_v49  ;;  %v735_v10 = vsel %vm733_vm4, %v728_v47, %v3786_v18  ;;  %v6647_v47 = vld [vmem:[#allocation22_spill] sm:$0xff]  ;;  %v6648_v40 = vld [vmem:[#allocation17_spill] sm:$0xff] }
 0x29e   :  { %950 = vmatprep.subr.mxu0 %v737_v15  ;;  %1035 = vmatprep.subr.mxu1 %v782_v37  ;;  %v744_v49 = vsel %vm733_vm4, %v3666_v30, %v3523_v7  ;;  %v734_v18 = vsel %vm733_vm4, %v3556_v22, %v3666_v30  ;;  %v708_v7 = vsel %vm696_vm5, %v3797_v51, %v3646_v54  ;;  %v6644_v30 = vld [vmem:[#allocation21_spill] sm:$0xff]  ;;  %v6649_v15 = vld [vmem:[#allocation16_spill] sm:$0xff] }
 0x29f   :  { %922 = vmatmul.mubr.f32.vlgmr.msra.gmra.mxu1 %v3919_v44  ;;  %951 = vmatpush1.msra.mxu0 %v739_v6  ;;  %v3982_v41 = vpop.permute.xlu0 %532  ;;  %v707_v22 = vsel %vm696_vm5, %v6644_v30, %v3539_v11  ;;  %v697_v54 = vsel %vm696_vm5, %v3576_v5, %v6644_v30  ;;  %v667_v11 = vsel %vm659_vm6, %v3788_v56, %v3816_v8 }
 0x2a0   :  { %1036 = vmatpush1.msra.mxu1 %v772_v35  ;;  %952 = vmatprep.subr.mxu0 %v736_v48  ;;  %v691_v53 = vpop.permute.xlu1 %690  ;;  %v664_v5 = vsel %vm659_vm6, %v6648_v40, %v6647_v47  ;;  %v666_v6 = vsel %vm659_vm6, %v3505_v61, %v6648_v40  ;;  %v6650_v35 = vld [vmem:[#allocation10_spill] sm:$0xff]  ;;  %v661_v48 = vsel %vm659_vm6, %v3858_v29, %v3658_v3  ;;  %v6654_v3 = vld [vmem:[#allocation24_spill] sm:$0xff] }
 0x2a1   :  { %1037 = vmatprep.subr.mxu1 %v781_v19  ;;  %953 = vmatpush1.msra.mxu0 %v738_v9  ;;  %v700_v45 = vsel %vm696_vm5, %v3748_v25, %v691_v53  ;;  %v701_v25 = vsel %vm696_vm5, %v3497_v1, %v3660_v32  ;;  %v698_v32 = vsel %vm696_vm5, %v691_v53, %v3797_v51  ;;  %v6643_v1 = vld [vmem:[#allocation11_spill] sm:$0xff]  ;;  %v6652_v53 = vld [vmem:[#allocation18_spill] sm:$0xff] }
 0x2a2   :  { %1038 = vmatpush1.msra.mxu1 %v771_v46  ;;  %954 = vmatprep.subr.mxu0 %v700_v45  ;;  %v630_v61 = vsel %vm622_vm7, %v3800_v21, %v3837_v13  ;;  %v6653_v9 = vld [vmem:[#allocation23_spill] sm:$0xff]  ;;  %v660_v45 = vsel %vm659_vm6, %v6654_v3, %v3558_v24  ;;  %v556_v30 = vsel %vm548_vm9, %v3839_v60, %v3982_v41 }
 0x2a3   :  { %1039 = vmatprep.subr.mxu1 %v745_v33  ;;  %955 = vmatpush1.msra.mxu0 %v702_v58  ;;  %v580_v38 = vpop.permute.xlu0 %579  ;;  %v627_v46 = vsel %vm622_vm7, %v6653_v9, %v6652_v53  ;;  %v629_v21 = vsel %vm622_vm7, %v3513_v0, %v6653_v9  ;;  %v662_v58 = vsel %vm659_vm6, %v6647_v47, %v6654_v3 }
 0x2a4   :  { %1040 = vmatpush1.msra.mxu1 %v735_v10  ;;  %956 = vmatprep.subr.mxu0 %v699_v57  ;;  %v3976_v55 = vpop.permute.xlu1 %538  ;;  %v624_v0 = vsel %vm622_vm7, %v3932_v50, %v3671_v27  ;;  %v4071_v10 = vld [vmem:[%s6441_s4 + $0x10] sm:$0xff]  ;;  %v593_v57 = vsel %vm585_vm8, %v3818_v43, %v3898_v16  ;;  %v6655_v27 = vld [vmem:[#allocation19_spill] sm:$0xff] }
 0x2a5   :  { %1041 = vmatprep.subr.mxu1 %v744_v49  ;;  %957 = vmatpush1.msra.mxu0 %v701_v25  ;;  %v6656_v25 = vld [vmem:[#allocation25_spill] sm:$0xff] }
 0x2a6   :  { %1042 = vmatpush1.msra.mxu1 %v734_v18  ;;  %958 = vmatprep.subr.mxu0 %v6641_v31  ;;  %v590_v18 = vsel %vm585_vm8, %v6656_v25, %v6655_v27 }
 0x2a7   :  { %1043 = vmatprep.subr.mxu1 %v708_v7  ;;  %959 = vmatpush1.msra.mxu0 %v6642_v39  ;;  %v6657_v7 = vld [vmem:[#allocation26_spill] sm:$0xff]  ;;  %v4101_v39 = vld [vmem:[%s6441_s4 + $0x28] sm:$0xff] }
 0x2a8   :  { %1044 = vmatpush1.msra.mxu1 %v698_v32  ;;  %960 = vmatprep.subr.mxu0 %v6643_v1  ;;  %v650_v62 = vpop.permute.xlu1 %649  ;;  %v623_v43 = vsel %vm622_vm7, %v6657_v7, %v3586_v2  ;;  %v625_v2 = vsel %vm622_vm7, %v6652_v53, %v6657_v7  ;;  %v518_v1 = vld [vmem:[%s6441_s4 + $0x20] sm:$0xff] }
 0x2a9   :  { %1045 = vmatprep.subr.mxu1 %v707_v22  ;;  %961 = vmatpush1.msra.mxu0 %v6645_v42  ;;  %v665_v51 = vsel %vm659_vm6, %v3816_v8, %v650_v62  ;;  %v6651_v8 = vld [vmem:[#allocation9_spill] sm:$0xff]  ;;  %v663_v19 = vsel %vm659_vm6, %v650_v62, %v3858_v29  ;;  %v541_v29 = vpop.permute.xlu0 %540  ;;  %v6659_v42 = vld [vmem:[#allocation27_spill] sm:$0xff] }
 0x2aa   :  { %1046 = vmatpush1.msra.mxu1 %v697_v54  ;;  %962 = vmatprep.subr.mxu0 %v665_v51 }
 0x2ab   :  { %1047 = vmatprep.subr.mxu1 %v6646_v63  ;;  %963 = vmatpush1.msra.mxu0 %v667_v11  ;;  %v6660_v11 = vld [vmem:[#allocation28_spill] sm:$0xff] }
 0x2ac   :  { %1048 = vmatpush1.msra.mxu1 %v6649_v15  ;;  %964 = vmatprep.subr.mxu0 %v664_v5  ;;  %v613_v37 = vpop.permute.xlu1 %612  ;;  %v586_v60 = vsel %vm585_vm8, %v6660_v11, %v3602_v26  ;;  %v588_v63 = vsel %vm585_vm8, %v6655_v27, %v6660_v11  ;;  %v521_v26 = vld [vmem:[%s6441_s4 + $0x38] sm:$0xff] }
 0x2ad   :  { %1049 = vmatprep.subr.mxu1 %v6650_v35  ;;  %965 = vmatpush1.msra.mxu0 %v666_v6  ;;  %v628_v56 = vsel %vm622_vm7, %v3837_v13, %v613_v37  ;;  %v4055_v13 = vld [vmem:[%s6441_s4 + $0x18] sm:$0xff]  ;;  %v626_v49 = vsel %vm622_vm7, %v613_v37, %v3932_v50  ;;  %v802_v32 = vpop.permute.xlu0 %801 }
 0x2ae   :  { %1050 = vmatpush1.msra.mxu1 %v6651_v8  ;;  %966 = vmatprep.subr.mxu0 %v628_v56 }
 0x2af   :  { %1051 = vmatprep.subr.mxu1 %v661_v48  ;;  %967 = vmatpush1.msra.mxu0 %v630_v61 }
 0x2b0   :  { %1052 = vmatpush1.msra.mxu1 %v663_v19  ;;  %968 = vmatprep.subr.mxu0 %v627_v46  ;;  %v576_v33 = vpop.permute.xlu1 %575 }
 0x2b1   :  { %1053 = vmatprep.subr.mxu1 %v660_v45  ;;  %969 = vmatpush1.msra.mxu0 %v629_v21  ;;  %v591_v24 = vsel %vm585_vm8, %v3898_v16, %v576_v33  ;;  %v592_v16 = vsel %vm585_vm8, %v3521_v4, %v6656_v25  ;;  %v587_v4 = vsel %vm585_vm8, %v580_v38, %v3690_v23  ;;  %v6658_v23 = vld [vmem:[#allocation20_spill] sm:$0xff]  ;;  %v806_v40 = vpop.permute.xlu0 %805 }
 0x2b2   :  { %1054 = vmatpush1.msra.mxu1 %v662_v58  ;;  %970 = vmatprep.subr.mxu0 %v591_v24  ;;  %v589_v22 = vsel %vm585_vm8, %v576_v33, %v580_v38  ;;  %v553_v54 = vsel %vm548_vm9, %v6659_v42, %v6658_v23  ;;  %v551_v37 = vsel %vm548_vm9, %v6658_v23, %v3976_v55 }
 0x2b3   :  { %1055 = vmatprep.subr.mxu1 %v624_v0  ;;  %2925 = vmatprep.mubr.msk.f32.mxu1 %vm844_vm2, %v4055_v13  ;;  %v819_v6 = vsel %vm807_vm10, %v806_v40, %v3717_v17  ;;  %v809_v56 = vsel %vm807_vm10, %v802_v32, %v806_v40  ;;  %v6662_v17 = vmov 0.0  }
 0x2b4   :  { %971 = vmatpush1.msra.mxu0 %v593_v57  ;;  %1056 = vmatpush1.msra.mxu1 %v626_v49  ;;  %v537_v31 = vpop.permute.xlu1 %536  ;;  %v6664_v49 = vld [vmem:[#allocation4_spill] sm:$0xff] }
 0x2b5   :  { %928 = vmatmul.mubr.f32.gmra.mxu1 %v4071_v10  ;;  %972 = vmatprep.subr.mxu0 %v590_v18  ;;  %v554_v50 = vsel %vm548_vm9, %v3982_v41, %v537_v31  ;;  %v555_v41 = vsel %vm548_vm9, %v3529_v59, %v6659_v42  ;;  %v550_v59 = vsel %vm548_vm9, %v541_v29, %v3699_v34 }
 0x2b6   :  { %1057 = vmatprep.subr.mxu1 %v623_v43  ;;  %973 = vmatpush1.msra.mxu0 %v592_v16  ;;  %v552_v5 = vsel %vm548_vm9, %v537_v31, %v541_v29  ;;  %v549_v34 = vsel %vm548_vm9, %v3976_v55, %v3618_v36  ;;  %v812_v36 = vsel %vm807_vm10, %v3547_v12, %v3766_v20  ;;  %v6661_v12 = vld [vmem:[#allocation15_spill] sm:$0xff] }
 0x2b7   :  { %1058 = vmatpush1.msra.mxu1 %v625_v2  ;;  %974 = vmatprep.subr.mxu0 %v554_v50 }
 0x2b8   :  { %1059 = vmatprep.subr.mxu1 %v587_v4  ;;  %2926 = vmatprep.mubr.msk.f32.mxu1 %vm844_vm2, %v4101_v39  ;;  %v798_v62 = vpop.permute.xlu1 %797 }
 0x2b9   :  { %975 = vmatpush1.msra.mxu0 %v556_v30  ;;  %1060 = vmatpush1.msra.mxu1 %v589_v22  ;;  %v811_v51 = vsel %vm807_vm10, %v798_v62, %v802_v32  ;;  %v813_v38 = vsel %vm807_vm10, %v3888_v28, %v798_v62  ;;  %v520_v28 = vld [vmem:[%s6441_s4 + $0x30] sm:$0xff] }
 0x2ba   :  { %934 = vmatmul.mubr.f32.gmra.mxu1 %v518_v1  ;;  %976 = vmatprep.subr.mxu0 %v553_v54 }
 0x2bb   :  { %1061 = vmatprep.subr.mxu1 %v586_v60  ;;  %977 = vmatpush1.msra.mxu0 %v555_v41 }
 0x2bc   :  { %1062 = vmatpush1.msra.mxu1 %v588_v63  ;;  %1006 = vmatprep.subr.mxu0 %v811_v51  ;;  %v800_v47 = vpop.permute.xlu1 %799 }
 0x2bd   :  { %1063 = vmatprep.subr.mxu1 %v550_v59  ;;  %1007 = vmatpush2.msra.mxu0 %v813_v38  ;;  %v810_v15 = vsel %vm807_vm10, %v3766_v20, %v800_v47 }
 0x2be   :  { %1064 = vmatpush1.msra.mxu1 %v552_v5  ;;  %2927 = vmatprep.mubr.msk.f32.mxu1 %vm844_vm2, %v521_v26 }
 0x2bf   :  { %1065 = vmatprep.subr.mxu1 %v549_v34  ;;  %940 = vmatmul.mubr.f32.gmra.mxu1 %v520_v28 }
 0x2c0   :  { %1066 = vmatpush1.msra.mxu1 %v551_v37  ;;  %1008 = vmatprep.subr.mxu0 %v810_v15  ;;  %v804_v35 = vpop.permute.xlu1 %803 }
 0x2c1   :  { %1095 = vmatprep.subr.mxu1 %v819_v6  ;;  %1009 = vmatpush2.msra.mxu0 %v812_v36  ;;  %v818_v55 = vsel %vm807_vm10, %v804_v35, %v3642_v52  ;;  %v808_v8 = vsel %vm807_vm10, %v800_v47, %v804_v35  ;;  %v4196_v52 = vpop.permute.xlu0 %1333  ;;  %v6665_v36 = vld [vmem:[#allocation3_spill] sm:$0xff] }
 0x2c2   :  { %1096 = vmatpush2.msra.mxu1 %v809_v56  ;;  %1011 = vmatmul.mubr.f32.vlgmr.msra.gmra.mxu0 %v3919_v44 }
 0x2c3   :  { %1097 = vmatprep.subr.mxu1 %v818_v55  ;;  %2929 = vmatprep.mubr.msk.f32.mxu0 %vm844_vm2, %v4055_v13 }
 0x2c4   :  { %1098 = vmatpush2.msra.mxu1 %v808_v8  ;;  %2932 = vmatprep.mubr.msk.f32.mxu1 %vm844_vm2, %v6661_v12 }
 0x2c5   :  { %1100 = vmatmul.mubr.f32.vlgmr.msra.gmra.mxu1 %v3919_v44  ;;  %v4200_v48 = vpop.permute.xlu0 %841 }
 0x2c6   :  { %1017 = vmatmul.mubr.f32.gmra.mxu0 %v4071_v10  ;;  %2933 = vmatprep.mubr.msk.f32.mxu1 %vm844_vm2, %v4055_v13 }
 0x2c7   :  { %2930 = vmatprep.mubr.msk.f32.mxu0 %vm844_vm2, %v4101_v39 }
 0x2c9   :  { %1106 = vmatmul.mubr.f32.gmra.mxu1 %v4071_v10  ;;  %v4202_v3 = vpop.permute.xlu0 %831  ;;  %v6663_v10 = vld [vmem:[#allocation2_spill] sm:$0xff] }
 0x2ca   :  { %1023 = vmatmul.mubr.f32.gmra.mxu0 %v518_v1  ;;  %2934 = vmatprep.mubr.msk.f32.mxu1 %vm844_vm2, %v4101_v39 }
 0x2cb   :  { %2931 = vmatprep.mubr.msk.f32.mxu0 %vm844_vm2, %v521_v26 }
 0x2cd   :  { %1112 = vmatmul.mubr.f32.gmra.mxu1 %v518_v1  ;;  %v4198_v20 = vpop.permute.xlu1 %836 }
 0x2ce   :  { %1029 = vmatmul.mubr.f32.gmra.mxu0 %v520_v28  ;;  %2935 = vmatprep.mubr.msk.f32.mxu1 %vm844_vm2, %v521_v26 }
 0x2d1   :  { %1118 = vmatmul.mubr.f32.gmra.mxu1 %v520_v28  ;;  %v827_v19 = vpop.permute.xlu1 %826 }
 0x2d2   :  { %2152 = vmatprep.mubr.f32.mxu1 %v6662_v17 }
 0x35f   :  { %v923_v44 = vpop.f32.mrf.mxu1 }
 0x360   :  { %v924_v53 = vadd.f32 %v923_v44, %v827_v19 }
 0x361   :  { %v925_v61 = vpop.f32.mrf.mxu1 }
 0x362   :  { %v926_v9 = vadd.f32 %v925_v61, %v827_v19  ;;  %v1124_v33 = vmax.f32 %v924_v53, 0.0 }
 0x364   :  { %v1125_v21 = vmax.f32 %v926_v9, 0.0  ;;  %v4208_v57 = vmul.f32 %v1124_v33, %v6663_v10 }
 0x366   :  { %v4211_v27 = vmul.f32 %v1125_v21, %v6664_v49  ;;  %v1204_v39 = vmul.f32 %v4208_v57, %v4208_v57 }
 0x368   :  { %v1205_v2 = vmul.f32 %v4211_v27, %v4211_v27  ;;  %v1172_v60 = vadd.f32 %v4211_v27, %v4208_v57 }
 0x36a   :  { %v1228_v41 = vadd.f32 %v1205_v2, %v1204_v39 }
 0x375   :  { %v929_v46 = vpop.f32.mrf.mxu1 }
 0x376   :  { %v930_v13 = vadd.f32 %v929_v46, %v4202_v3 }
 0x377   :  { %v931_v45 = vpop.f32.mrf.mxu1 }
 0x378   :  { %v932_v29 = vadd.f32 %v931_v45, %v4202_v3  ;;  %v1130_v18 = vmax.f32 %v930_v13, 0.0 }
 0x37a   :  { %v935_v58 = vpop.f32.mrf.mxu1  ;;  %v1131_v31 = vmax.f32 %v932_v29, 0.0  ;;  %v4220_v4 = vmul.f32 %v1130_v18, %v6663_v10 }
 0x37b   :  { %v936_v24 = vadd.f32 %v935_v58, %v4198_v20 }
 0x37c   :  { %v937_v0 = vpop.f32.mrf.mxu1  ;;  %v4223_v1 = vmul.f32 %v1131_v31, %v6664_v49  ;;  %v1210_v59 = vmul.f32 %v4220_v4, %v4220_v4 }
 0x37d   :  { %v938_v25 = vadd.f32 %v937_v0, %v4198_v20  ;;  %v1136_v7 = vmax.f32 %v936_v24, 0.0 }
 0x37e   :  { %v1211_v47 = vmul.f32 %v4223_v1, %v4223_v1  ;;  %v1179_v44 = vadd.f32 %v4223_v1, %v4220_v4 }
 0x37f   :  { %v1137_v43 = vmax.f32 %v938_v25, 0.0  ;;  %v941_v16 = vpop.f32.mrf.mxu1  ;;  %v4226_v30 = vmul.f32 %v1136_v7, %v6663_v10 }
 0x380   :  { %v942_v50 = vadd.f32 %v941_v16, %v4200_v48  ;;  %v1235_v21 = vadd.f32 %v1211_v47, %v1210_v59 }
 0x381   :  { %v943_v32 = vpop.f32.mrf.mxu1  ;;  %v4229_v22 = vmul.f32 %v1137_v43, %v6664_v49  ;;  %v1216_v40 = vmul.f32 %v4226_v30, %v4226_v30  ;;  %v6667_v43 = vld [vmem:[#allocation6_spill] sm:$0xff] }
 0x382   :  { %v1142_v62 = vmax.f32 %v942_v50, 0.0  ;;  %v944_v23 = vadd.f32 %v943_v32, %v4200_v48  ;;  %v1012_v42 = vpop.f32.mrf.mxu0 }
 0x383   :  { %v1013_v54 = vadd.f32 %v1012_v42, %v827_v19  ;;  %v1217_v5 = vmul.f32 %v4229_v22, %v4229_v22  ;;  %v1186_v46 = vadd.f32 %v4229_v22, %v4226_v30 }
 0x384   :  { %v4233_v51 = vmul.f32 %v1142_v62, %v6663_v10  ;;  %v1143_v11 = vmax.f32 %v944_v23, 0.0  ;;  %v1014_v38 = vpop.f32.mrf.mxu0 }
 0x385   :  { %v1126_v63 = vmax.f32 %v1013_v54, 0.0  ;;  %v1015_v26 = vadd.f32 %v1014_v38, %v827_v19  ;;  %v1101_v28 = vpop.f32.mrf.mxu1  ;;  %v1242_v29 = vadd.f32 %v1217_v5, %v1216_v40 }
 0x386   :  { %v4246_v15 = vmul.f32 %v1143_v11, %v6664_v49  ;;  %v1018_v34 = vpop.f32.mrf.mxu0  ;;  %v1102_v37 = vadd.f32 %v1101_v28, %v827_v19  ;;  %v1222_v6 = vmul.f32 %v4233_v51, %v4233_v51 }
 0x387   :  { %v4251_v35 = vmul.f32 %v1126_v63, %v6665_v36  ;;  %v1127_v56 = vmax.f32 %v1015_v26, 0.0  ;;  %v1019_v55 = vadd.f32 %v1018_v34, %v4202_v3  ;;  %v1103_v8 = vpop.f32.mrf.mxu1 }
 0x388   :  { %v1223_v12 = vmul.f32 %v4246_v15, %v4246_v15  ;;  %v1128_v61 = vmax.f32 %v1102_v37, 0.0  ;;  %v1020_v53 = vpop.f32.mrf.mxu0  ;;  %v1104_v9 = vadd.f32 %v1103_v8, %v827_v19  ;;  %v1193_v58 = vadd.f32 %v4246_v15, %v4233_v51  ;;  %v6666_v19 = vld [vmem:[#allocation5_spill] sm:$0xff] }
 0x389   :  { %v1206_v45 = vmul.f32 %v4251_v35, %v4251_v35  ;;  %v1132_v33 = vmax.f32 %v1019_v55, 0.0  ;;  %v1107_v13 = vpop.f32.mrf.mxu1  ;;  %v1173_v24 = vadd.f32 %v1172_v60, %v4251_v35  ;;  %v1021_v0 = vadd.f32 %v1020_v53, %v4202_v3 }
 0x38a   :  { %v1024_v25 = vpop.f32.mrf.mxu0  ;;  %v4266_v18 = vadd.f32 %v1223_v12, %v1222_v6  ;;  %v4269_v31 = vmul.f32 %v1127_v56, %v6666_v19  ;;  %v4275_v16 = vmul.f32 %v1128_v61, %v6667_v43  ;;  %v1129_v32 = vmax.f32 %v1104_v9, 0.0 }
 0x38b   :  { %v4272_v7 = vmul.f32 %v1132_v33, %v6665_v36  ;;  %v1109_v50 = vpop.f32.mrf.mxu1  ;;  %v1229_v39 = vadd.f32 %v1228_v41, %v1206_v45  ;;  %v1133_v2 = vmax.f32 %v1021_v0, 0.0  ;;  %v1025_v62 = vadd.f32 %v1024_v25, %v4198_v20 }
 0x38c   :  { %v1026_v23 = vpop.f32.mrf.mxu0  ;;  %v1108_v11 = vadd.f32 %v1107_v13, %v4202_v3  ;;  %v1110_v41 = vadd.f32 %v1109_v50, %v4202_v3  ;;  %v1174_v28 = vadd.f32 %v1173_v24, %v4269_v31  ;;  %v1207_v6 = vmul.f32 %v4269_v31, %v4269_v31  ;;  %v6668_v13 = vld [vmem:[#allocation7_spill] sm:$0xff] }
 0x38d   :  { %v1180_v42 = vadd.f32 %v1179_v44, %v4272_v7  ;;  %v1212_v54 = vmul.f32 %v4272_v7, %v4272_v7  ;;  %v1027_v60 = vadd.f32 %v1026_v23, %v4198_v20  ;;  %v1113_v38 = vpop.f32.mrf.mxu1  ;;  %v4284_v63 = vmul.f32 %v1133_v2, %v6666_v19 }
 0x38e   :  { %v1138_v26 = vmax.f32 %v1025_v62, 0.0  ;;  %v1030_v59 = vpop.f32.mrf.mxu0  ;;  %v1114_v47 = vadd.f32 %v1113_v38, %v4198_v20  ;;  %v1134_v40 = vmax.f32 %v1108_v11, 0.0  ;;  %v1208_v56 = vmul.f32 %v4275_v16, %v4275_v16 }
 0x38f   :  { %v1139_v5 = vmax.f32 %v1027_v60, 0.0  ;;  %v1031_v34 = vadd.f32 %v1030_v59, %v4200_v48  ;;  %v1115_v37 = vpop.f32.mrf.mxu1  ;;  %v1135_v3 = vmax.f32 %v1110_v41, 0.0  ;;  %v1236_v45 = vadd.f32 %v1235_v21, %v1212_v54 }
 0x390   :  { %v4295_v55 = vmul.f32 %v1138_v26, %v6665_v36  ;;  %v1032_v8 = vpop.f32.mrf.mxu0  ;;  %v4298_v12 = vmul.f32 %v1134_v40, %v6667_v43  ;;  %v1140_v53 = vmax.f32 %v1114_v47, 0.0  ;;  %v1181_v33 = vadd.f32 %v1180_v42, %v4284_v63 }
 0x391   :  { %v4301_v44 = vmul.f32 %v1139_v5, %v6666_v19  ;;  %v1144_v61 = vmax.f32 %v1031_v34, 0.0  ;;  %v1119_v9 = vpop.f32.mrf.mxu1  ;;  %v4305_v24 = vmul.f32 %v1129_v32, %v6668_v13  ;;  %v1033_v0 = vadd.f32 %v1032_v8, %v4200_v48 }
 0x392   :  { %v1213_v25 = vmul.f32 %v4284_v63, %v4284_v63  ;;  %v1187_v50 = vadd.f32 %v1186_v46, %v4295_v55  ;;  %v1218_v2 = vmul.f32 %v4295_v55, %v4295_v55  ;;  %v1214_v21 = vmul.f32 %v4298_v12, %v4298_v12 }
 0x393   :  { %v4314_v62 = vmul.f32 %v1144_v61, %v6665_v36  ;;  %v1121_v23 = vpop.f32.mrf.mxu1  ;;  %v4319_v32 = vmul.f32 %v1135_v3, %v6668_v13  ;;  %v1145_v42 = vmax.f32 %v1033_v0, 0.0  ;;  %v1116_v54 = vadd.f32 %v1115_v37, %v4198_v20 }
 0x394   :  { %v1219_v11 = vmul.f32 %v4301_v44, %v4301_v44  ;;  %v4326_v60 = vmul.f32 %v1140_v53, %v6667_v43  ;;  %v1175_v38 = vadd.f32 %v1174_v28, %v4275_v16  ;;  %v1120_v59 = vadd.f32 %v1119_v9, %v4200_v48 }
 0x395   :  { %v1194_v46 = vadd.f32 %v1193_v58, %v4314_v62  ;;  %v1224_v26 = vmul.f32 %v4314_v62, %v4314_v62  ;;  %v4332_v41 = vmul.f32 %v1145_v42, %v6666_v19  ;;  %v1122_v20 = vadd.f32 %v1121_v23, %v4200_v48 }
 0x396   :  { %v1243_v47 = vadd.f32 %v1242_v29, %v1218_v2  ;;  %v1176_v40 = vadd.f32 %v1175_v38, %v4305_v24  ;;  %v1209_v58 = vmul.f32 %v4305_v24, %v4305_v24  ;;  %v1230_v5 = vadd.f32 %v1229_v39, %v1207_v6 }
 0x397   :  { %v1188_v34 = vadd.f32 %v1187_v50, %v4301_v44  ;;  %v1195_v28 = vadd.f32 %v1194_v46, %v4332_v41  ;;  %v1141_v37 = vmax.f32 %v1116_v54, 0.0  ;;  %v1146_v3 = vmax.f32 %v1120_v59, 0.0 }
 0x398   :  { %1177 = vadd.xlane.f32.xlu0 %v1176_v40  ;;  %v1147_v8 = vmax.f32 %v1122_v20, 0.0  ;;  %v1231_v61 = vadd.f32 %v1230_v5, %v1208_v56  ;;  %v1215_v53 = vmul.f32 %v4319_v32, %v4319_v32  ;;  %v1237_v48 = vadd.f32 %v1236_v45, %v1213_v25 }
 0x399   :  { %v1250_v29 = vadd.f32 %v4266_v18, %v1224_v26  ;;  %v4345_v9 = vmul.f32 %v1146_v3, %v6667_v43  ;;  %v1225_v39 = vmul.f32 %v4332_v41, %v4332_v41  ;;  %v1182_v50 = vadd.f32 %v1181_v33, %v4298_v12 }
 0x39a   :  { %v1232_v6 = vadd.f32 %v1231_v61, %v1209_v58  ;;  %v1238_v0 = vadd.f32 %v1237_v48, %v1214_v21  ;;  %v1220_v2 = vmul.f32 %v4326_v60, %v4326_v60  ;;  %v4353_v56 = vmul.f32 %v1141_v37, %v6668_v13  ;;  %v4369_v58 = vpop.permute.xlu1 %1337 }
 0x39b   :  { %v1189_v45 = vadd.f32 %v1188_v34, %v4326_v60  ;;  %v4357_v18 = vmul.f32 %v1147_v8, %v6668_v13  ;;  %v1196_v23 = vadd.f32 %v1195_v28, %v4345_v9  ;;  %v1244_v42 = vadd.f32 %v1243_v47, %v1219_v11 }
 0x39c   :  { %1233 = vadd.xlane.f32.xlu0 %v1232_v6  ;;  %v1239_v25 = vadd.f32 %v1238_v0, %v1215_v53  ;;  %v1226_v21 = vmul.f32 %v4345_v9, %v4345_v9  ;;  %v1183_v33 = vadd.f32 %v1182_v50, %v4319_v32  ;;  %v1251_v54 = vadd.f32 %v1250_v29, %v1225_v39 }
 0x39d   :  { %v1190_v46 = vadd.f32 %v1189_v45, %v4353_v56  ;;  %v1197_v38 = vadd.f32 %v1196_v23, %v4357_v18  ;;  %v1221_v26 = vmul.f32 %v4353_v56, %v4353_v56  ;;  %v1245_v59 = vadd.f32 %v1244_v42, %v1220_v2 }
 0x39e   :  { %1240 = vadd.xlane.f32.xlu1 %v1239_v25  ;;  %v1227_v11 = vmul.f32 %v4357_v18, %v4357_v18  ;;  %v1252_v20 = vadd.f32 %v1251_v54, %v1226_v21  ;;  %v4371_v5 = vpop.permute.xlu1 %1377 }
 0x39f   :  { %v1246_v47 = vadd.f32 %v1245_v59, %v1221_v26 }
 0x3a0   :  { %1184 = vadd.xlane.f32.xlu0 %v1183_v33  ;;  %v1253_v40 = vadd.f32 %v1252_v20, %v1227_v11 }
 0x3a2   :  { %1191 = vadd.xlane.f32.xlu1 %v1190_v46  ;;  %v4373_v34 = vpop.permute.xlu1 %1329 }
 0x3a4   :  { %1198 = vadd.xlane.f32.xlu0 %v1197_v38 }
 0x3a6   :  { %1247 = vadd.xlane.f32.xlu1 %v1246_v47  ;;  %v4375_v28 = vpop.permute.xlu1 %1373 }
 0x3a8   :  { %1254 = vadd.xlane.f32.xlu0 %v1253_v40 }
 0x3aa   :  { %v4377_v37 = vpop.permute.xlu1 %1325 }
 0x3ae   :  { %v4379_v3 = vpop.permute.xlu1 %1369 }
 0x3b2   :  { %v4381_v61 = vpop.permute.xlu1 %1365 }
 0x421   :  { %v1178_v8 = vpop.xlane.xlu0 %1177 }
 0x422   :  { %v4383_v53 = vmul.f32 0.001953125, %v1178_v8 }
 0x424   :  { %v1260_v29 = vmul.f32 %v4383_v53, %v4383_v53 }
 0x425   :  { %v1234_v48 = vpop.xlane.xlu0 %1233 }
 0x426   :  { %v1256_v39 = vmul.f32 0.001953125, %v1234_v48 }
 0x427   :  { %v1241_v6 = vpop.xlane.xlu1 %1240 }
 0x428   :  { %v1264_v0 = vsub.f32 %v1256_v39, %v1260_v29  ;;  %v1257_v23 = vmul.f32 0.001953125, %v1241_v6  ;;  %v1268_v29 = vsub.f32 %v4208_v57, %v4383_v53  ;;  %v1269_v39 = vsub.f32 %v4211_v27, %v4383_v53 }
 0x429   :  { %v1185_v50 = vpop.xlane.xlu0 %1184  ;;  %v1273_v6 = vsub.f32 %v4305_v24, %v4383_v53 }
 0x42a   :  { %v1292_v2 = vadd.f32 1e-05, %v1264_v0  ;;  %v4387_v45 = vmul.f32 0.001953125, %v1185_v50 }
 0x42b   :  { %v1192_v25 = vpop.xlane.xlu1 %1191 }
 0x42c   :  { %2974 = vrsqrt.f32 %v1292_v2  ;;  %v1261_v42 = vmul.f32 %v4387_v45, %v4387_v45  ;;  %v4391_v54 = vmul.f32 0.001953125, %v1192_v25  ;;  %v1272_v2 = vsub.f32 %v4275_v16, %v4383_v53 }
 0x42d   :  { %v1199_v21 = vpop.xlane.xlu0 %1198  ;;  %v1276_v24 = vsub.f32 %v4272_v7, %v4387_v45 }
 0x42e   :  { %v1265_v33 = vsub.f32 %v1257_v23, %v1261_v42  ;;  %v4393_v59 = vmul.f32 0.001953125, %v1199_v21  ;;  %v1262_v11 = vmul.f32 %v4391_v54, %v4391_v54 }
 0x42f   :  { %v1248_v38 = vpop.xlane.xlu1 %1247 }
 0x430   :  { %v1293_v46 = vadd.f32 1e-05, %v1265_v33  ;;  %v1258_v20 = vmul.f32 0.001953125, %v1248_v38  ;;  %v1263_v8 = vmul.f32 %v4393_v59, %v4393_v59  ;;  %v1277_v38 = vsub.f32 %v4284_v63, %v4387_v45 }
 0x431   :  { %v1255_v26 = vpop.xlane.xlu0 %1254 }
 0x432   :  { %2976 = vrsqrt.f32 %v1293_v46  ;;  %v1259_v47 = vmul.f32 0.001953125, %v1255_v26  ;;  %v1266_v40 = vsub.f32 %v1258_v20, %v1262_v11  ;;  %v1278_v20 = vsub.f32 %v4298_v12, %v4387_v45 }
 0x433   :  { %v1270_v12 = vsub.f32 %v4251_v35, %v4383_v53 }
 0x434   :  { %v1294_v48 = vadd.f32 1e-05, %v1266_v40  ;;  %v1267_v0 = vsub.f32 %v1259_v47, %v1263_v8 }
 0x436   :  { %2978 = vrsqrt.f32 %v1294_v48  ;;  %v1295_v33 = vadd.f32 1e-05, %v1267_v0  ;;  %v1284_v0 = vsub.f32 %v4326_v60, %v4391_v54 }
 0x438   :  { %2980 = vrsqrt.f32 %v1295_v33  ;;  %v1289_v33 = vsub.f32 %v4332_v41, %v4393_v59  ;;  %v1271_v41 = vsub.f32 %v4269_v31, %v4383_v53 }
 0x439   :  { %v2975_v50 = vpop.eup %2974 }
 0x43a   :  { %v1301_v25 = vmul.f32 %v2975_v50, %v1269_v39  ;;  %v1300_v23 = vmul.f32 %v2975_v50, %v1268_v29  ;;  %v1305_v42 = vmul.f32 %v2975_v50, %v1273_v6  ;;  %v4407_v21 = vmul.f32 %v2975_v50, %v1272_v2 }
 0x43b   :  { %v1302_v39 = vmul.f32 %v2975_v50, %v1270_v12 }
 0x43c   :  { %v1341_v57 = vmul.f32 %v4377_v37, %v1301_v25  ;;  %v1340_v46 = vmul.f32 %v4377_v37, %v1300_v23  ;;  %v1345_v27 = vmul.f32 %v4377_v37, %v1305_v42  ;;  %v1288_v23 = vsub.f32 %v4314_v62, %v4393_v59 }
 0x43d   :  { %v1342_v35 = vmul.f32 %v4377_v37, %v1302_v39  ;;  %v1290_v42 = vsub.f32 %v4345_v9, %v4393_v59 }
 0x43e   :  { %v1381_v16 = vadd.f32 %v4381_v61, %v1341_v57  ;;  %v1380_v26 = vadd.f32 %v4381_v61, %v1340_v46  ;;  %v1385_v48 = vadd.f32 %v4381_v61, %v1345_v27  ;;  %v1303_v27 = vmul.f32 %v2975_v50, %v1271_v41 }
 0x43f   :  { %v4418_v11 = vpop.eup %2976  ;;  %v1382_v60 = vadd.f32 %v4381_v61, %v1342_v35  ;;  %v1274_v50 = vsub.f32 %v4220_v4, %v4387_v45 }
 0x440   :  { %v4423_v47 = vmul.f32 %v4418_v11, %v1276_v24  ;;  %v4426_v40 = vmul.f32 %v4418_v11, %v1277_v38  ;;  %v4429_v7 = vmul.f32 %v4418_v11, %v1278_v20  ;;  %v4432_v63 = vmul.f32 %v1381_v16, %v6664_v49 }
 0x441   :  { %v4435_v8 = vmul.f32 %v1380_v26, %v6663_v10  ;;  %v4445_v29 = vmul.f32 %v1385_v48, %v6668_v13  ;;  %v4483_v62 = vmul.f32 %v1382_v60, %v6665_v36  ;;  %v1343_v24 = vmul.f32 %v4377_v37, %v1303_v27 }
 0x442   :  { %6669 = vst [vmem:[#allocation13_spill] sm:$0xff] %v4432_v63  ;;  %1655 = vrot.lane.b32.xlu0 %v4432_v63, %s3005_s30  ;;  %v1306_v38 = vmul.f32 %v4418_v11, %v1274_v50  ;;  %v1279_v16 = vsub.f32 %v4319_v32, %v4387_v45 }
 0x443   :  { %6670 = vst [vmem:[#allocation14_spill] sm:$0xff] %v4435_v8  ;;  %1647 = vrot.lane.b32.xlu1 %v4435_v8, %s3005_s30  ;;  %6671 = vst [vmem:[#allocation11_spill] sm:$0xff] %v4445_v29  ;;  %v4447_v6 = vpop.eup %2978  ;;  %v1383_v31 = vadd.f32 %v4381_v61, %v1343_v24 }
 0x444   :  { %v4457_v2 = vmul.f32 %v4447_v6, %v1284_v0  ;;  %6672 = vst [vmem:[#allocation21_spill] sm:$0xff] %v4483_v62  ;;  %v1311_v26 = vmul.f32 %v4418_v11, %v1279_v16  ;;  %v1346_v4 = vmul.f32 %v4373_v34, %v1306_v38  ;;  %v1344_v0 = vmul.f32 %v4377_v37, %v4407_v21 }
 0x445   :  { %v4463_v25 = vpop.eup %2980  ;;  %v4509_v53 = vmul.f32 %v1383_v31, %v6666_v19  ;;  %v1275_v37 = vsub.f32 %v4223_v1, %v4387_v45 }
 0x446   :  { %1583 = vrot.lane.b32.xlu0 %v4432_v63, %s3006_s11  ;;  %v4477_v57 = vmul.f32 %v4463_v25, %v1288_v23  ;;  %v4480_v46 = vmul.f32 %v4463_v25, %v1290_v42  ;;  %v4486_v9 = vmul.f32 %v4463_v25, %v1289_v33  ;;  %v1351_v20 = vmul.f32 %v4373_v34, %v1311_v26 }
 0x447   :  { %1687 = vrot.lane.b32.xlu1 %v4445_v29, %s3005_s30  ;;  %6673 = vst [vmem:[#allocation8_spill] sm:$0xff] %v4509_v53  ;;  %v1386_v32 = vadd.f32 %v4379_v3, %v1346_v4  ;;  %v1384_v35 = vadd.f32 %v4381_v61, %v1344_v0  ;;  %v1307_v61 = vmul.f32 %v4418_v11, %v1275_v37 }
 0x448   :  { %v1391_v48 = vadd.f32 %v4379_v3, %v1351_v20  ;;  %v1348_v11 = vmul.f32 %v4373_v34, %v4423_v47  ;;  %v1349_v23 = vmul.f32 %v4373_v34, %v4426_v40  ;;  %v1350_v40 = vmul.f32 %v4373_v34, %v4429_v7 }
 0x449   :  { %v4542_v12 = vmul.f32 %v1386_v32, %v6663_v10  ;;  %v4563_v60 = vmul.f32 %v1384_v35, %v6667_v43  ;;  %v1347_v21 = vmul.f32 %v4373_v34, %v1307_v61  ;;  %v1280_v32 = vsub.f32 %v4226_v30, %v4391_v54 }
 0x44a   :  { %1511 = vrot.lane.b32.xlu0 %v4432_v63, %s3007_s12  ;;  %v4549_v39 = vmul.f32 %v1391_v48, %v6668_v13  ;;  %v1388_v42 = vadd.f32 %v4379_v3, %v1348_v11  ;;  %v1389_v33 = vadd.f32 %v4379_v3, %v1349_v23  ;;  %v1390_v31 = vadd.f32 %v4379_v3, %v1350_v40 }
 0x44b   :  { %1575 = vrot.lane.b32.xlu1 %v4435_v8, %s3006_s11  ;;  %6674 = vst [vmem:[#allocation12_spill] sm:$0xff] %v4542_v12  ;;  %6676 = vst [vmem:[#allocation17_spill] sm:$0xff] %v4563_v60  ;;  %v1387_v1 = vadd.f32 %v4379_v3, %v1347_v21  ;;  %v1281_v48 = vsub.f32 %v4229_v22, %v4391_v54  ;;  %v1312_v61 = vmul.f32 %v4447_v6, %v1280_v32 }
 0x44c   :  { %6675 = vst [vmem:[#allocation22_spill] sm:$0xff] %v4549_v39  ;;  %v4628_v47 = vmul.f32 %v1388_v42, %v6665_v36  ;;  %v4637_v41 = vmul.f32 %v1389_v33, %v6666_v19  ;;  %v4657_v34 = vmul.f32 %v1390_v31, %v6667_v43  ;;  %v1285_v30 = vsub.f32 %v4353_v56, %v4391_v54 }
 0x44d   :  { %v4591_v45 = vmul.f32 %v1387_v1, %v6664_v49  ;;  %v1313_v37 = vmul.f32 %v4447_v6, %v1281_v48  ;;  %v1352_v11 = vmul.f32 %v4196_v52, %v1312_v61 }
 0x44e   :  { %1439 = vrot.lane.b32.xlu0 %v4432_v63, %s3008_s13  ;;  %6678 = vst [vmem:[#allocation10_spill] sm:$0xff] %v4628_v47  ;;  %6679 = vst [vmem:[#allocation9_spill] sm:$0xff] %v4637_v41  ;;  %v1317_v23 = vmul.f32 %v4447_v6, %v1285_v30 }
 0x44f   :  { %1615 = vrot.lane.b32.xlu1 %v4445_v29, %s3006_s11  ;;  %6677 = vst [vmem:[#allocation16_spill] sm:$0xff] %v4591_v45  ;;  %6680 = vst [vmem:[#allocation18_spill] sm:$0xff] %v4657_v34  ;;  %v1353_v1 = vmul.f32 %v4196_v52, %v1313_v37  ;;  %v1392_v40 = vadd.f32 %v4375_v28, %v1352_v11 }
 0x450   :  { %v1357_v31 = vmul.f32 %v4196_v52, %v1317_v23 }
 0x451   :  { %v1393_v33 = vadd.f32 %v4375_v28, %v1353_v1  ;;  %v4729_v61 = vmul.f32 %v1392_v40, %v6663_v10  ;;  %v1282_v1 = vsub.f32 %v4295_v55, %v4391_v54 }
 0x452   :  { %1879 = vrot.lane.b32.xlu0 %v4483_v62, %s3003_s28  ;;  %v1397_v30 = vadd.f32 %v4375_v28, %v1357_v31 }
 0x453   :  { %1503 = vrot.lane.b32.xlu1 %v4435_v8, %s3007_s12  ;;  %v4726_v37 = vmul.f32 %v1393_v33, %v6664_v49  ;;  %6688 = vst [vmem:[#allocation28_spill] sm:$0xff] %v4729_v61  ;;  %v1314_v40 = vmul.f32 %v4447_v6, %v1282_v1 }
 0x454   :  { %v4743_v33 = vmul.f32 %v1397_v30, %v6668_v13 }
 0x455   :  { %6687 = vst [vmem:[#allocation27_spill] sm:$0xff] %v4726_v37 }
 0x456   :  { %1807 = vrot.lane.b32.xlu0 %v4483_v62, %s3002_s1  ;;  %6691 = vst [vmem:[#allocation30_spill] sm:$0xff] %v4743_v33 }
 0x457   :  { %1543 = vrot.lane.b32.xlu1 %v4445_v29, %s3007_s12 }
 0x45a   :  { %1735 = vrot.lane.b32.xlu0 %v4483_v62, %s3004_s29 }
 0x45b   :  { %1431 = vrot.lane.b32.xlu1 %v4435_v8, %s3008_s13 }
 0x45e   :  { %1951 = vrot.lane.b32.xlu0 %v4483_v62, %s3009_s14 }
 0x45f   :  { %1471 = vrot.lane.b32.xlu1 %v4445_v29, %s3008_s13 }
 0x462   :  { %1959 = vrot.lane.b32.xlu0 %v4509_v53, %s3009_s14 }
 0x463   :  { %1871 = vrot.lane.b32.xlu1 %v4432_v63, %s3003_s28 }
 0x466   :  { %1663 = vrot.lane.b32.xlu0 %v4483_v62, %s3005_s30 }
 0x467   :  { %1863 = vrot.lane.b32.xlu1 %v4435_v8, %s3003_s28 }
 0x46a   :  { %1591 = vrot.lane.b32.xlu0 %v4483_v62, %s3006_s11 }
 0x46b   :  { %1799 = vrot.lane.b32.xlu1 %v4432_v63, %s3002_s1 }
 0x46e   :  { %1519 = vrot.lane.b32.xlu0 %v4483_v62, %s3007_s12 }
 0x46f   :  { %1791 = vrot.lane.b32.xlu1 %v4435_v8, %s3002_s1 }
 0x472   :  { %1447 = vrot.lane.b32.xlu0 %v4483_v62, %s3008_s13  ;;  %v1354_v62 = vmul.f32 %v4196_v52, %v1314_v40 }
 0x473   :  { %1727 = vrot.lane.b32.xlu1 %v4432_v63, %s3004_s29 }
 0x476   :  { %1649 = vrot.lane.b32.xlu0 %v4542_v12, %s3005_s30 }
 0x477   :  { %1719 = vrot.lane.b32.xlu1 %v4435_v8, %s3004_s29 }
 0x47a   :  { %1689 = vrot.lane.b32.xlu0 %v4549_v39, %s3005_s30 }
 0x47b   :  { %1943 = vrot.lane.b32.xlu1 %v4432_v63, %s3009_s14 }
 0x47e   :  { %1577 = vrot.lane.b32.xlu0 %v4542_v12, %s3006_s11 }
 0x47f   :  { %1935 = vrot.lane.b32.xlu1 %v4435_v8, %s3009_s14  ;;  %v1291_v8 = vsub.f32 %v4357_v18, %v4393_v59 }
 0x482   :  { %1617 = vrot.lane.b32.xlu0 %v4549_v39, %s3006_s11 }
 0x483   :  { %1967 = vrot.lane.b32.xlu1 %v4563_v60, %s3009_s14 }
 0x486   :  { %1505 = vrot.lane.b32.xlu0 %v4542_v12, %s3007_s12 }
 0x487   :  { %1671 = vrot.lane.b32.xlu1 %v4509_v53, %s3005_s30 }
 0x48a   :  { %1545 = vrot.lane.b32.xlu0 %v4549_v39, %s3007_s12 }
 0x48b   :  { %1679 = vrot.lane.b32.xlu1 %v4563_v60, %s3005_s30 }
 0x48e   :  { %1433 = vrot.lane.b32.xlu0 %v4542_v12, %s3008_s13 }
 0x48f   :  { %1599 = vrot.lane.b32.xlu1 %v4509_v53, %s3006_s11 }
 0x492   :  { %1473 = vrot.lane.b32.xlu0 %v4549_v39, %s3008_s13 }
 0x493   :  { %1607 = vrot.lane.b32.xlu1 %v4563_v60, %s3006_s11 }
 0x496   :  { %1873 = vrot.lane.b32.xlu0 %v4591_v45, %s3003_s28 }
 0x497   :  { %1527 = vrot.lane.b32.xlu1 %v4509_v53, %s3007_s12 }
 0x49a   :  { %1865 = vrot.lane.b32.xlu0 %v4542_v12, %s3003_s28 }
 0x49b   :  { %1535 = vrot.lane.b32.xlu1 %v4563_v60, %s3007_s12 }
 0x49e   :  { %1801 = vrot.lane.b32.xlu0 %v4591_v45, %s3002_s1 }
 0x49f   :  { %1455 = vrot.lane.b32.xlu1 %v4509_v53, %s3008_s13 }
 0x4a2   :  { %1793 = vrot.lane.b32.xlu0 %v4542_v12, %s3002_s1 }
 0x4a3   :  { %1657 = vrot.lane.b32.xlu1 %v4591_v45, %s3005_s30 }
 0x4a6   :  { %1729 = vrot.lane.b32.xlu0 %v4591_v45, %s3004_s29 }
 0x4a7   :  { %1585 = vrot.lane.b32.xlu1 %v4591_v45, %s3006_s11 }
 0x4aa   :  { %1721 = vrot.lane.b32.xlu0 %v4542_v12, %s3004_s29 }
 0x4ab   :  { %1513 = vrot.lane.b32.xlu1 %v4591_v45, %s3007_s12 }
 0x4ae   :  { %1945 = vrot.lane.b32.xlu0 %v4591_v45, %s3009_s14 }
 0x4af   :  { %1441 = vrot.lane.b32.xlu1 %v4591_v45, %s3008_s13  ;;  %v1286_v45 = vsub.f32 %v4233_v51, %v4393_v59 }
 0x4b2   :  { %1937 = vrot.lane.b32.xlu0 %v4542_v12, %s3009_s14  ;;  %v1323_v12 = vmul.f32 %v4463_v25, %v1291_v8 }
 0x4b3   :  { %1881 = vrot.lane.b32.xlu1 %v4628_v47, %s3003_s28 }
 0x4b4   :  { %v4639_v27 = vpop.permute.xlu0 %1655 }
 0x4b5   :  { %v4641_v24 = vpop.permute.xlu1 %1647 }
 0x4b6   :  { %1961 = vrot.lane.b32.xlu0 %v4637_v41, %s3009_s14 }
 0x4b7   :  { %1809 = vrot.lane.b32.xlu1 %v4628_v47, %s3002_s1 }
 0x4b8   :  { %v4648_v50 = vpop.permute.xlu0 %1583 }
 0x4b9   :  { %v4650_v38 = vpop.permute.xlu1 %1687 }
 0x4ba   :  { %1665 = vrot.lane.b32.xlu0 %v4628_v47, %s3005_s30 }
 0x4bb   :  { %1737 = vrot.lane.b32.xlu1 %v4628_v47, %s3004_s29 }
 0x4bc   :  { %v4659_v7 = vpop.permute.xlu0 %1511 }
 0x4bd   :  { %v4661_v16 = vpop.permute.xlu1 %1575 }
 0x4be   :  { %1681 = vrot.lane.b32.xlu0 %v4657_v34, %s3005_s30 }
 0x4bf   :  { %1953 = vrot.lane.b32.xlu1 %v4628_v47, %s3009_s14 }
 0x4c0   :  { %v4667_v3 = vpop.permute.xlu0 %1439 }
 0x4c1   :  { %v4669_v26 = vpop.permute.xlu1 %1615 }
 0x4c2   :  { %1601 = vrot.lane.b32.xlu0 %v4637_v41, %s3006_s11 }
 0x4c3   :  { %1969 = vrot.lane.b32.xlu1 %v4657_v34, %s3009_s14 }
 0x4c4   :  { %v4675_v4 = vpop.permute.xlu0 %1879 }
 0x4c5   :  { %6681 = vst [vmem:[#allocation23_spill] sm:$0xff] %v4675_v4  ;;  %v4677_v20 = vpop.permute.xlu1 %1503 }
 0x4c6   :  { %1609 = vrot.lane.b32.xlu0 %v4657_v34, %s3006_s11 }
 0x4c7   :  { %1673 = vrot.lane.b32.xlu1 %v4637_v41, %s3005_s30 }
 0x4c8   :  { %v4687_v0 = vpop.permute.xlu0 %1807 }
 0x4c9   :  { %6682 = vst [vmem:[#allocation24_spill] sm:$0xff] %v4687_v0  ;;  %v4689_v35 = vpop.permute.xlu1 %1543 }
 0x4ca   :  { %1529 = vrot.lane.b32.xlu0 %v4637_v41, %s3007_s12 }
 0x4cb   :  { %1593 = vrot.lane.b32.xlu1 %v4628_v47, %s3006_s11 }
 0x4cc   :  { %v4699_v22 = vpop.permute.xlu0 %1735 }
 0x4cd   :  { %6683 = vst [vmem:[#allocation19_spill] sm:$0xff] %v4699_v22  ;;  %v4701_v21 = vpop.permute.xlu1 %1431 }
 0x4ce   :  { %1537 = vrot.lane.b32.xlu0 %v4657_v34, %s3007_s12 }
 0x4cf   :  { %1521 = vrot.lane.b32.xlu1 %v4628_v47, %s3007_s12 }
 0x4d0   :  { %v4710_v56 = vpop.permute.xlu0 %1951 }
 0x4d1   :  { %6684 = vst [vmem:[#allocation25_spill] sm:$0xff] %v4710_v56  ;;  %v4712_v42 = vpop.permute.xlu1 %1471 }
 0x4d2   :  { %1457 = vrot.lane.b32.xlu0 %v4637_v41, %s3008_s13 }
 0x4d3   :  { %1449 = vrot.lane.b32.xlu1 %v4628_v47, %s3008_s13  ;;  %v1394_v47 = vadd.f32 %v4375_v28, %v1354_v62 }
 0x4d4   :  { %v4721_v32 = vpop.permute.xlu0 %1959 }
 0x4d5   :  { %6685 = vst [vmem:[#allocation26_spill] sm:$0xff] %v4721_v32  ;;  %v4723_v48 = vpop.permute.xlu1 %1871 }
 0x4d6   :  { %6686 = vst [vmem:[#allocation20_spill] sm:$0xff] %v4723_v48  ;;  %1659 = vrot.lane.b32.xlu0 %v4726_v37, %s3005_s30 }
 0x4d7   :  { %1651 = vrot.lane.b32.xlu1 %v4729_v61, %s3005_s30 }
 0x4d8   :  { %v4738_v11 = vpop.permute.xlu0 %1663 }
 0x4d9   :  { %6689 = vst [vmem:[#allocation15_spill] sm:$0xff] %v4738_v11  ;;  %v4740_v23 = vpop.permute.xlu1 %1863  ;;  %v4773_v11 = vmul.f32 %v1394_v47, %v6665_v36 }
 0x4da   :  { %6690 = vst [vmem:[#allocation29_spill] sm:$0xff] %v4740_v23  ;;  %1587 = vrot.lane.b32.xlu0 %v4726_v37, %s3006_s11 }
 0x4db   :  { %1691 = vrot.lane.b32.xlu1 %v4743_v33, %s3005_s30  ;;  %6698 = vst [vmem:[#allocation37_spill] sm:$0xff] %v4773_v11 }
 0x4dc   :  { %v4750_v55 = vpop.permute.xlu0 %1591 }
 0x4dd   :  { %6692 = vst [vmem:[#allocation31_spill] sm:$0xff] %v4750_v55  ;;  %v4752_v31 = vpop.permute.xlu1 %1799 }
 0x4de   :  { %6693 = vst [vmem:[#allocation32_spill] sm:$0xff] %v4752_v31  ;;  %1515 = vrot.lane.b32.xlu0 %v4726_v37, %s3007_s12 }
 0x4df   :  { %1579 = vrot.lane.b32.xlu1 %v4729_v61, %s3006_s11 }
 0x4e0   :  { %v4759_v30 = vpop.permute.xlu0 %1519 }
 0x4e1   :  { %6694 = vst [vmem:[#allocation33_spill] sm:$0xff] %v4759_v30  ;;  %v4761_v1 = vpop.permute.xlu1 %1791  ;;  %v1283_v30 = vsub.f32 %v4301_v44, %v4391_v54 }
 0x4e2   :  { %6695 = vst [vmem:[#allocation34_spill] sm:$0xff] %v4761_v1  ;;  %1443 = vrot.lane.b32.xlu0 %v4726_v37, %s3008_s13 }
 0x4e3   :  { %1619 = vrot.lane.b32.xlu1 %v4743_v33, %s3006_s11 }
 0x4e4   :  { %v4768_v55 = vpop.permute.xlu0 %1447 }
 0x4e5   :  { %6696 = vst [vmem:[#allocation35_spill] sm:$0xff] %v4768_v55  ;;  %v4770_v40 = vpop.permute.xlu1 %1727  ;;  %v1315_v55 = vmul.f32 %v4447_v6, %v1283_v30 }
 0x4e6   :  { %6697 = vst [vmem:[#allocation36_spill] sm:$0xff] %v4770_v40  ;;  %1883 = vrot.lane.b32.xlu0 %v4773_v11, %s3003_s28  ;;  %v1318_v40 = vmul.f32 %v4463_v25, %v1286_v45 }
 0x4e7   :  { %1507 = vrot.lane.b32.xlu1 %v4729_v61, %s3007_s12  ;;  %v1355_v54 = vmul.f32 %v4196_v52, %v1315_v55 }
 0x4e8   :  { %v4781_v62 = vpop.permute.xlu0 %1649  ;;  %v1358_v22 = vmul.f32 %v4369_v58, %v1318_v40 }
 0x4e9   :  { %v4783_v17 = vpop.permute.xlu1 %1719  ;;  %v1395_v30 = vadd.f32 %v4375_v28, %v1355_v54 }
 0x4ea   :  { %6699 = vst [vmem:[#allocation38_spill] sm:$0xff] %v4783_v17  ;;  %1811 = vrot.lane.b32.xlu0 %v4773_v11, %s3002_s1  ;;  %v1363_v17 = vmul.f32 %v4369_v58, %v1323_v12 }
 0x4eb   :  { %1547 = vrot.lane.b32.xlu1 %v4743_v33, %s3007_s12  ;;  %v4813_v56 = vmul.f32 %v1395_v30, %v6666_v19 }
 0x4ec   :  { %v4790_v47 = vpop.permute.xlu0 %1689 }
 0x4ed   :  { %v4792_v44 = vpop.permute.xlu1 %1943  ;;  %6703 = vst [vmem:[#allocation42_spill] sm:$0xff] %v4813_v56 }
 0x4ee   :  { %6700 = vst [vmem:[#allocation39_spill] sm:$0xff] %v4792_v44  ;;  %1739 = vrot.lane.b32.xlu0 %v4773_v11, %s3004_s29 }
 0x4ef   :  { %1435 = vrot.lane.b32.xlu1 %v4729_v61, %s3008_s13 }
 0x4f0   :  { %v4799_v32 = vpop.permute.xlu0 %1577 }
 0x4f1   :  { %v4801_v6 = vpop.permute.xlu1 %1935 }
 0x4f2   :  { %6701 = vst [vmem:[#allocation40_spill] sm:$0xff] %v4801_v6  ;;  %1955 = vrot.lane.b32.xlu0 %v4773_v11, %s3009_s14 }
 0x4f3   :  { %1475 = vrot.lane.b32.xlu1 %v4743_v33, %s3008_s13 }
 0x4f4   :  { %v4808_v44 = vpop.permute.xlu0 %1617 }
 0x4f5   :  { %v4810_v55 = vpop.permute.xlu1 %1967 }
 0x4f6   :  { %6702 = vst [vmem:[#allocation41_spill] sm:$0xff] %v4810_v55  ;;  %1963 = vrot.lane.b32.xlu0 %v4813_v56, %s3009_s14 }
 0x4f7   :  { %1875 = vrot.lane.b32.xlu1 %v4726_v37, %s3003_s28 }
 0x4f8   :  { %v4819_v54 = vpop.permute.xlu0 %1505 }
 0x4f9   :  { %v4821_v6 = vpop.permute.xlu1 %1671 }
 0x4fa   :  { %6704 = vst [vmem:[#allocation43_spill] sm:$0xff] %v4821_v6  ;;  %1667 = vrot.lane.b32.xlu0 %v4773_v11, %s3005_s30 }
 0x4fb   :  { %1867 = vrot.lane.b32.xlu1 %v4729_v61, %s3003_s28 }
 0x4fc   :  { %v4827_v55 = vpop.permute.xlu0 %1545 }
 0x4fd   :  { %v4829_v30 = vpop.permute.xlu1 %1679 }
 0x4fe   :  { %6705 = vst [vmem:[#allocation44_spill] sm:$0xff] %v4829_v30  ;;  %1595 = vrot.lane.b32.xlu0 %v4773_v11, %s3006_s11 }
 0x4ff   :  { %1803 = vrot.lane.b32.xlu1 %v4726_v37, %s3002_s1 }
 0x500   :  { %v4837_v6 = vpop.permute.xlu0 %1433 }
 0x501   :  { %v4839_v63 = vpop.permute.xlu1 %1599 }
 0x502   :  { %6706 = vst [vmem:[#allocation45_spill] sm:$0xff] %v4839_v63  ;;  %1523 = vrot.lane.b32.xlu0 %v4773_v11, %s3007_s12  ;;  %v1403_v63 = vadd.f32 %v4371_v5, %v1363_v17  ;;  %v1356_v17 = vmul.f32 %v4196_v52, %v4457_v2 }
 0x503   :  { %1795 = vrot.lane.b32.xlu1 %v4729_v61, %s3002_s1 }
 0x504   :  { %v4848_v18 = vpop.permute.xlu0 %1473 }
 0x505   :  { %v4850_v30 = vpop.permute.xlu1 %1607 }
 0x506   :  { %6707 = vst [vmem:[#allocation46_spill] sm:$0xff] %v4850_v30  ;;  %1451 = vrot.lane.b32.xlu0 %v4773_v11, %s3008_s13  ;;  %v4873_v11 = vmul.f32 %v1403_v63, %v6668_v13  ;;  %v1398_v30 = vadd.f32 %v4371_v5, %v1358_v22  ;;  %v1396_v63 = vadd.f32 %v4375_v28, %v1356_v17 }
 0x507   :  { %1731 = vrot.lane.b32.xlu1 %v4726_v37, %s3004_s29 }
 0x508   :  { %v4858_v51 = vpop.permute.xlu0 %1873  ;;  %6711 = vst [vmem:[#allocation50_spill] sm:$0xff] %v4873_v11  ;;  %v4899_v22 = vmul.f32 %v1396_v63, %v6667_v43 }
 0x509   :  { %v4860_v8 = vpop.permute.xlu1 %1527 }
 0x50a   :  { %6708 = vst [vmem:[#allocation47_spill] sm:$0xff] %v4860_v8  ;;  %1465 = vrot.lane.b32.xlu0 %v4657_v34, %s3008_s13  ;;  %6716 = vst [vmem:[#allocation55_spill] sm:$0xff] %v4899_v22 }
 0x50b   :  { %1723 = vrot.lane.b32.xlu1 %v4729_v61, %s3004_s29 }
 0x50c   :  { %v4868_v12 = vpop.permute.xlu0 %1865 }
 0x50d   :  { %6709 = vst [vmem:[#allocation48_spill] sm:$0xff] %v4868_v12  ;;  %v4870_v45 = vpop.permute.xlu1 %1535 }
 0x50e   :  { %6710 = vst [vmem:[#allocation49_spill] sm:$0xff] %v4870_v45  ;;  %1693 = vrot.lane.b32.xlu0 %v4873_v11, %s3005_s30  ;;  %v4887_v45 = vmul.f32 %v1398_v30, %v6663_v10 }
 0x50f   :  { %1947 = vrot.lane.b32.xlu1 %v4726_v37, %s3009_s14  ;;  %v1287_v37 = vsub.f32 %v4246_v15, %v4393_v59 }
 0x510   :  { %v4882_v40 = vpop.permute.xlu0 %1801  ;;  %6714 = vst [vmem:[#allocation53_spill] sm:$0xff] %v4887_v45 }
 0x511   :  { %6712 = vst [vmem:[#allocation51_spill] sm:$0xff] %v4882_v40  ;;  %v4884_v8 = vpop.permute.xlu1 %1455 }
 0x512   :  { %6713 = vst [vmem:[#allocation52_spill] sm:$0xff] %v4884_v8  ;;  %1581 = vrot.lane.b32.xlu0 %v4887_v45, %s3006_s11 }
 0x513   :  { %1939 = vrot.lane.b32.xlu1 %v4729_v61, %s3009_s14 }
 0x514   :  { %v4894_v52 = vpop.permute.xlu0 %1793 }
 0x515   :  { %6715 = vst [vmem:[#allocation54_spill] sm:$0xff] %v4894_v52  ;;  %v4896_v2 = vpop.permute.xlu1 %1657 }
 0x516   :  { %1899 = vrot.lane.b32.xlu0 %v4899_v22, %s3003_s28 }
 0x517   :  { %1971 = vrot.lane.b32.xlu1 %v4899_v22, %s3009_s14 }
 0x518   :  { %v4905_v28 = vpop.permute.xlu0 %1729 }
 0x519   :  { %6717 = vst [vmem:[#allocation56_spill] sm:$0xff] %v4905_v28  ;;  %v4907_v30 = vpop.permute.xlu1 %1585  ;;  %v1319_v28 = vmul.f32 %v4463_v25, %v1287_v37 }
 0x51a   :  { %1621 = vrot.lane.b32.xlu0 %v4873_v11, %s3006_s11 }
 0x51b   :  { %1675 = vrot.lane.b32.xlu1 %v4813_v56, %s3005_s30  ;;  %v1359_v59 = vmul.f32 %v4369_v58, %v1319_v28 }
 0x51c   :  { %v4913_v17 = vpop.permute.xlu0 %1721 }
 0x51d   :  { %6718 = vst [vmem:[#allocation57_spill] sm:$0xff] %v4913_v17  ;;  %v4915_v63 = vpop.permute.xlu1 %1513  ;;  %v1399_v37 = vadd.f32 %v4371_v5, %v1359_v59 }
 0x51e   :  { %1509 = vrot.lane.b32.xlu0 %v4887_v45, %s3007_s12 }
 0x51f   :  { %1683 = vrot.lane.b32.xlu1 %v4899_v22, %s3005_s30 }
 0x520   :  { %v4921_v13 = vpop.permute.xlu0 %1945 }
 0x521   :  { %6719 = vst [vmem:[#allocation58_spill] sm:$0xff] %v4921_v13  ;;  %v4923_v10 = vpop.permute.xlu1 %1441 }
 0x522   :  { %1889 = vrot.lane.b32.xlu0 %v4637_v41, %s3003_s28 }
 0x523   :  { %1603 = vrot.lane.b32.xlu1 %v4813_v56, %s3006_s11 }
 0x524   :  { %v4929_v8 = vpop.permute.xlu0 %1937 }
 0x525   :  { %6720 = vst [vmem:[#allocation59_spill] sm:$0xff] %v4929_v8  ;;  %v4931_v61 = vpop.permute.xlu1 %1881 }
 0x526   :  { %1549 = vrot.lane.b32.xlu0 %v4873_v11, %s3007_s12 }
 0x527   :  { %1611 = vrot.lane.b32.xlu1 %v4899_v22, %s3006_s11 }
 0x528   :  { %v4939_v13 = vpop.permute.xlu0 %1961 }
 0x529   :  { %6721 = vst [vmem:[#allocation60_spill] sm:$0xff] %v4939_v13  ;;  %v4941_v17 = vpop.permute.xlu1 %1809 }
 0x52a   :  { %6722 = vst [vmem:[#allocation61_spill] sm:$0xff] %v4941_v17  ;;  %1437 = vrot.lane.b32.xlu0 %v4887_v45, %s3008_s13  ;;  %v1362_v17 = vmul.f32 %v4369_v58, %v4480_v46 }
 0x52b   :  { %1531 = vrot.lane.b32.xlu1 %v4813_v56, %s3007_s12 }
 0x52c   :  { %v4948_v8 = vpop.permute.xlu0 %1665  ;;  %v1402_v48 = vadd.f32 %v4371_v5, %v1362_v17 }
 0x52d   :  { %6723 = vst [vmem:[#allocation62_spill] sm:$0xff] %v4948_v8  ;;  %v4950_v15 = vpop.permute.xlu1 %1737 }
 0x52e   :  { %6724 = vst [vmem:[#allocation63_spill] sm:$0xff] %v4950_v15  ;;  %1887 = vrot.lane.b32.xlu0 %v4509_v53, %s3003_s28  ;;  %v4971_v15 = vmul.f32 %v1399_v37, %v6664_v49 }
 0x52f   :  { %1539 = vrot.lane.b32.xlu1 %v4899_v22, %s3007_s12 }
 0x530   :  { %v4957_v13 = vpop.permute.xlu0 %1681  ;;  %6729 = vst [vmem:[#allocation68_spill] sm:$0xff] %v4971_v15 }
 0x531   :  { %6725 = vst [vmem:[#allocation64_spill] sm:$0xff] %v4957_v13  ;;  %v4959_v25 = vpop.permute.xlu1 %1953 }
 0x532   :  { %6726 = vst [vmem:[#allocation65_spill] sm:$0xff] %v4959_v25  ;;  %1477 = vrot.lane.b32.xlu0 %v4873_v11, %s3008_s13  ;;  %v1360_v25 = vmul.f32 %v4369_v58, %v4477_v57 }
 0x533   :  { %1459 = vrot.lane.b32.xlu1 %v4813_v56, %s3008_s13 }
 0x534   :  { %v4966_v8 = vpop.permute.xlu0 %1601  ;;  %v1400_v0 = vadd.f32 %v4371_v5, %v1360_v25 }
 0x535   :  { %6727 = vst [vmem:[#allocation66_spill] sm:$0xff] %v4966_v8  ;;  %v4968_v28 = vpop.permute.xlu1 %1969 }
 0x536   :  { %6728 = vst [vmem:[#allocation67_spill] sm:$0xff] %v4968_v28  ;;  %1877 = vrot.lane.b32.xlu0 %v4971_v15, %s3003_s28  ;;  %v5049_v40 = vmul.f32 %v1400_v0, %v6665_v36  ;;  %v5071_v36 = vmul.f32 %v1402_v48, %v6667_v43  ;;  %v1361_v43 = vmul.f32 %v4369_v58, %v4486_v9  ;;  %v1429_v58 = vld [vmem:[%s6443_s6 + $0x8] sm:$0xff] }
 0x537   :  { %1653 = vrot.lane.b32.xlu1 %v4887_v45, %s3005_s30  ;;  %2081 = vmatprep.mubr.f32.mxu0 %v1429_v58 }
 0x538   :  { %v4977_v59 = vpop.permute.xlu0 %1609  ;;  %6738 = vst [vmem:[#allocation77_spill] sm:$0xff] %v5049_v40  ;;  %6741 = vst [vmem:[#allocation80_spill] sm:$0xff] %v5071_v36 }
 0x539   :  { %6730 = vst [vmem:[#allocation69_spill] sm:$0xff] %v4977_v59  ;;  %v4979_v13 = vpop.permute.xlu1 %1673 }
 0x53a   :  { %6731 = vst [vmem:[#allocation70_spill] sm:$0xff] %v4979_v13  ;;  %1869 = vrot.lane.b32.xlu0 %v4887_v45, %s3003_s28 }
 0x53b   :  { %1661 = vrot.lane.b32.xlu1 %v4971_v15, %s3005_s30 }
 0x53c   :  { %v4985_v8 = vpop.permute.xlu0 %1529 }
 0x53d   :  { %6732 = vst [vmem:[#allocation71_spill] sm:$0xff] %v4985_v8  ;;  %v4987_v37 = vpop.permute.xlu1 %1593 }
 0x53e   :  { %6733 = vst [vmem:[#allocation72_spill] sm:$0xff] %v4987_v37  ;;  %1805 = vrot.lane.b32.xlu0 %v4971_v15, %s3002_s1 }
 0x53f   :  { %1467 = vrot.lane.b32.xlu1 %v4899_v22, %s3008_s13 }
 0x540   :  { %v4993_v49 = vpop.permute.xlu0 %1537 }
 0x541   :  { %6734 = vst [vmem:[#allocation73_spill] sm:$0xff] %v4993_v49  ;;  %v4995_v59 = vpop.permute.xlu1 %1521 }
 0x542   :  { %6735 = vst [vmem:[#allocation74_spill] sm:$0xff] %v4995_v59  ;;  %1819 = vrot.lane.b32.xlu0 %v4813_v56, %s3002_s1 }
 0x543   :  { %1589 = vrot.lane.b32.xlu1 %v4971_v15, %s3006_s11 }
 0x544   :  { %v5001_v13 = vpop.permute.xlu0 %1457 }
 0x545   :  { %6736 = vst [vmem:[#allocation75_spill] sm:$0xff] %v5001_v13  ;;  %v5003_v8 = vpop.permute.xlu1 %1449 }
 0x546   :  { %6737 = vst [vmem:[#allocation76_spill] sm:$0xff] %v5003_v8  ;;  %1797 = vrot.lane.b32.xlu0 %v4887_v45, %s3002_s1 }
 0x547   :  { %1891 = vrot.lane.b32.xlu1 %v4813_v56, %s3003_s28 }
 0x548   :  { %v5009_v37 = vpop.permute.xlu0 %1659 }
 0x549   :  { %v5011_v49 = vpop.permute.xlu1 %1651 }
 0x54a   :  { %1733 = vrot.lane.b32.xlu0 %v4971_v15, %s3004_s29 }
 0x54b   :  { %1517 = vrot.lane.b32.xlu1 %v4971_v15, %s3007_s12 }
 0x54c   :  { %v5017_v59 = vpop.permute.xlu0 %1587 }
 0x54d   :  { %v5019_v13 = vpop.permute.xlu1 %1691 }
 0x54e   :  { %1905 = vrot.lane.b32.xlu0 %v4549_v39, %s3003_s28 }
 0x54f   :  { %1463 = vrot.lane.b32.xlu1 %v4563_v60, %s3008_s13 }
 0x550   :  { %v5025_v8 = vpop.permute.xlu0 %1515 }
 0x551   :  { %v5027_v28 = vpop.permute.xlu1 %1579 }
 0x552   :  { %1825 = vrot.lane.b32.xlu0 %v4657_v34, %s3002_s1 }
 0x553   :  { %1445 = vrot.lane.b32.xlu1 %v4971_v15, %s3008_s13 }
 0x554   :  { %v5035_v1 = vpop.permute.xlu0 %1443 }
 0x555   :  { %v5037_v31 = vpop.permute.xlu1 %1619 }
 0x556   :  { %1725 = vrot.lane.b32.xlu0 %v4887_v45, %s3004_s29 }
 0x557   :  { %1897 = vrot.lane.b32.xlu1 %v4657_v34, %s3003_s28 }
 0x558   :  { %v5044_v52 = vpop.permute.xlu0 %1883 }
 0x559   :  { %v5046_v57 = vpop.permute.xlu1 %1507 }
 0x55a   :  { %1949 = vrot.lane.b32.xlu0 %v4971_v15, %s3009_s14 }
 0x55b   :  { %1885 = vrot.lane.b32.xlu1 %v5049_v40, %s3003_s28 }
 0x55c   :  { %v5057_v25 = vpop.permute.xlu0 %1811 }
 0x55d   :  { %6739 = vst [vmem:[#allocation78_spill] sm:$0xff] %v5057_v25  ;;  %v5059_v23 = vpop.permute.xlu1 %1547  ;;  %v1401_v25 = vadd.f32 %v4371_v5, %v1361_v43 }
 0x55e   :  { %1941 = vrot.lane.b32.xlu0 %v4887_v45, %s3009_s14 }
 0x55f   :  { %1895 = vrot.lane.b32.xlu1 %v4563_v60, %s3003_s28 }
 0x560   :  { %v5066_v0 = vpop.permute.xlu0 %1739 }
 0x561   :  { %6740 = vst [vmem:[#allocation79_spill] sm:$0xff] %v5066_v0  ;;  %v5068_v46 = vpop.permute.xlu1 %1435 }
 0x562   :  { %1973 = vrot.lane.b32.xlu0 %v5071_v36, %s3009_s14 }
 0x563   :  { %1813 = vrot.lane.b32.xlu1 %v5049_v40, %s3002_s1 }
 0x564   :  { %v5077_v17 = vpop.permute.xlu0 %1955 }
 0x565   :  { %6742 = vst [vmem:[#allocation81_spill] sm:$0xff] %v5077_v17  ;;  %v5079_v15 = vpop.permute.xlu1 %1475 }
 0x566   :  { %1669 = vrot.lane.b32.xlu0 %v5049_v40, %s3005_s30 }
 0x567   :  { %1907 = vrot.lane.b32.xlu1 %v4743_v33, %s3003_s28 }
 0x568   :  { %v5085_v45 = vpop.permute.xlu0 %1963 }
 0x569   :  { %6743 = vst [vmem:[#allocation82_spill] sm:$0xff] %v5085_v45  ;;  %v5087_v48 = vpop.permute.xlu1 %1875 }
 0x56a   :  { %1815 = vrot.lane.b32.xlu0 %v4509_v53, %s3002_s1 }
 0x56b   :  { %1741 = vrot.lane.b32.xlu1 %v5049_v40, %s3004_s29 }
 0x56c   :  { %v5095_v17 = vpop.permute.xlu0 %1667 }
 0x56d   :  { %6744 = vst [vmem:[#allocation83_spill] sm:$0xff] %v5095_v17  ;;  %v5097_v0 = vpop.permute.xlu1 %1867  ;;  %v5112_v17 = vmul.f32 %v1401_v25, %v6666_v19 }
 0x56e   :  { %1685 = vrot.lane.b32.xlu0 %v5071_v36, %s3005_s30 }
 0x56f   :  { %1827 = vrot.lane.b32.xlu1 %v4899_v22, %s3002_s1  ;;  %6747 = vst [vmem:[#allocation86_spill] sm:$0xff] %v5112_v17 }
 0x570   :  { %v5107_v9 = vpop.permute.xlu0 %1595 }
 0x571   :  { %6745 = vst [vmem:[#allocation84_spill] sm:$0xff] %v5107_v9  ;;  %v5109_v45 = vpop.permute.xlu1 %1803 }
 0x572   :  { %6746 = vst [vmem:[#allocation85_spill] sm:$0xff] %v5109_v45  ;;  %1605 = vrot.lane.b32.xlu0 %v5112_v17, %s3006_s11 }
 0x573   :  { %1817 = vrot.lane.b32.xlu1 %v4637_v41, %s3002_s1 }
 0x574   :  { %v5118_v43 = vpop.permute.xlu0 %1523 }
 0x575   :  { %6748 = vst [vmem:[#allocation87_spill] sm:$0xff] %v5118_v43  ;;  %v5120_v5 = vpop.permute.xlu1 %1795 }
 0x576   :  { %6749 = vst [vmem:[#allocation88_spill] sm:$0xff] %v5120_v5  ;;  %1613 = vrot.lane.b32.xlu0 %v5071_v36, %s3006_s11 }
 0x577   :  { %1957 = vrot.lane.b32.xlu1 %v5049_v40, %s3009_s14 }
 0x578   :  { %v5126_v9 = vpop.permute.xlu0 %1451 }
 0x579   :  { %6750 = vst [vmem:[#allocation89_spill] sm:$0xff] %v5126_v9  ;;  %v5128_v25 = vpop.permute.xlu1 %1731 }
 0x57a   :  { %6751 = vst [vmem:[#allocation90_spill] sm:$0xff] %v5128_v25  ;;  %1747 = vrot.lane.b32.xlu0 %v4813_v56, %s3004_s29 }
 0x57b   :  { %1965 = vrot.lane.b32.xlu1 %v5112_v17, %s3009_s14 }
 0x57c   :  { %v5134_v58 = vpop.permute.xlu0 %1465 }
 0x57d   :  { %6752 = vst [vmem:[#allocation91_spill] sm:$0xff] %v5134_v58  ;;  %v5136_v19 = vpop.permute.xlu1 %1723 }
 0x57e   :  { %6753 = vst [vmem:[#allocation92_spill] sm:$0xff] %v5136_v19  ;;  %1533 = vrot.lane.b32.xlu0 %v5112_v17, %s3007_s12 }
 0x57f   :  { %1677 = vrot.lane.b32.xlu1 %v5112_v17, %s3005_s30 }
 0x580   :  { %v5142_v43 = vpop.permute.xlu0 %1693 }
 0x581   :  { %v5144_v9 = vpop.permute.xlu1 %1947 }
 0x582   :  { %6754 = vst [vmem:[#allocation93_spill] sm:$0xff] %v5144_v9  ;;  %1541 = vrot.lane.b32.xlu0 %v5071_v36, %s3007_s12 }
 0x583   :  { %1903 = vrot.lane.b32.xlu1 %v4445_v29, %s3003_s28 }
 0x584   :  { %v5150_v56 = vpop.permute.xlu0 %1581 }
 0x585   :  { %v5152_v58 = vpop.permute.xlu1 %1939 }
 0x586   :  { %6755 = vst [vmem:[#allocation94_spill] sm:$0xff] %v5152_v58  ;;  %1833 = vrot.lane.b32.xlu0 %v4549_v39, %s3002_s1 }
 0x587   :  { %1597 = vrot.lane.b32.xlu1 %v5049_v40, %s3006_s11 }
 0x588   :  { %v5158_v19 = vpop.permute.xlu0 %1899 }
 0x589   :  { %6756 = vst [vmem:[#allocation95_spill] sm:$0xff] %v5158_v19  ;;  %v5160_v25 = vpop.permute.xlu1 %1971 }
 0x58a   :  { %6757 = vst [vmem:[#allocation96_spill] sm:$0xff] %v5160_v25  ;;  %1461 = vrot.lane.b32.xlu0 %v5112_v17, %s3008_s13 }
 0x58b   :  { %1823 = vrot.lane.b32.xlu1 %v4563_v60, %s3002_s1 }
 0x58c   :  { %v5166_v9 = vpop.permute.xlu0 %1621 }
 0x58d   :  { %v5168_v5 = vpop.permute.xlu1 %1675 }
 0x58e   :  { %6758 = vst [vmem:[#allocation97_spill] sm:$0xff] %v5168_v5  ;;  %1469 = vrot.lane.b32.xlu0 %v5071_v36, %s3008_s13 }
 0x58f   :  { %1525 = vrot.lane.b32.xlu1 %v5049_v40, %s3007_s12 }
 0x590   :  { %v5174_v58 = vpop.permute.xlu0 %1509 }
 0x591   :  { %v5176_v19 = vpop.permute.xlu1 %1683 }
 0x592   :  { %6759 = vst [vmem:[#allocation98_spill] sm:$0xff] %v5176_v19  ;;  %1893 = vrot.lane.b32.xlu0 %v5112_v17, %s3003_s28 }
 0x593   :  { %1835 = vrot.lane.b32.xlu1 %v4743_v33, %s3002_s1 }
 0x594   :  { %v5182_v25 = vpop.permute.xlu0 %1889 }
 0x595   :  { %6760 = vst [vmem:[#allocation99_spill] sm:$0xff] %v5182_v25  ;;  %v5184_v45 = vpop.permute.xlu1 %1603 }
 0x596   :  { %6761 = vst [vmem:[#allocation100_spill] sm:$0xff] %v5184_v45  ;;  %1753 = vrot.lane.b32.xlu0 %v4657_v34, %s3004_s29  ;;  %v1713_v45 = vsel %vm659_vm6, %v5011_v49, %v5009_v37 }
 0x597   :  { %1453 = vrot.lane.b32.xlu1 %v5049_v40, %s3008_s13 }
 0x598   :  { %v5190_v5 = vpop.permute.xlu0 %1549 }
 0x599   :  { %v5192_v4 = vpop.permute.xlu1 %1611 }
 0x59a   :  { %6762 = vst [vmem:[#allocation101_spill] sm:$0xff] %v5192_v4  ;;  %1909 = vrot.lane.b32.xlu0 %v4873_v11, %s3003_s28 }
 0x59b   :  { %1755 = vrot.lane.b32.xlu1 %v4899_v22, %s3004_s29 }
 0x59c   :  { %v5198_v19 = vpop.permute.xlu0 %1437 }
 0x59d   :  { %v5200_v25 = vpop.permute.xlu1 %1531 }
 0x59e   :  { %6763 = vst [vmem:[#allocation102_spill] sm:$0xff] %v5200_v25  ;;  %1829 = vrot.lane.b32.xlu0 %v5071_v36, %s3002_s1 }
 0x59f   :  { %1901 = vrot.lane.b32.xlu1 %v5071_v36, %s3003_s28 }
 0x5a0   :  { %v5206_v34 = vpop.permute.xlu0 %1887 }
 0x5a1   :  { %6764 = vst [vmem:[#allocation103_spill] sm:$0xff] %v5206_v34  ;;  %v5208_v40 = vpop.permute.xlu1 %1539 }
 0x5a2   :  { %6765 = vst [vmem:[#allocation104_spill] sm:$0xff] %v5208_v40  ;;  %1837 = vrot.lane.b32.xlu0 %v4873_v11, %s3002_s1 }
 0x5a3   :  { %1745 = vrot.lane.b32.xlu1 %v4637_v41, %s3004_s29 }
 0x5a4   :  { %v5214_v22 = vpop.permute.xlu0 %1477 }
 0x5a5   :  { %v5216_v4 = vpop.permute.xlu1 %1459 }
 0x5a6   :  { %6766 = vst [vmem:[#allocation105_spill] sm:$0xff] %v5216_v4  ;;  %1757 = vrot.lane.b32.xlu0 %v5071_v36, %s3004_s29 }
 0x5a7   :  { %1821 = vrot.lane.b32.xlu1 %v5112_v17, %s3002_s1 }
 0x5a8   :  { %v5222_v25 = vpop.permute.xlu0 %1877 }
 0x5a9   :  { %v1654_v34 = vpop.permute.xlu1 %1653 }
 0x5aa   :  { %1743 = vrot.lane.b32.xlu0 %v4509_v53, %s3004_s29  ;;  %v1718_v53 = vsel %vm659_vm6, %v5142_v43, %v1654_v34 }
 0x5ab   :  { %1831 = vrot.lane.b32.xlu1 %v4445_v29, %s3002_s1 }
 0x5ac   :  { %v5228_v41 = vpop.permute.xlu0 %1869 }
 0x5ad   :  { %v5230_v40 = vpop.permute.xlu1 %1661 }
 0x5ae   :  { %6767 = vst [vmem:[#allocation106_spill] sm:$0xff] %v5230_v40  ;;  %v1714_v36 = vsel %vm659_vm6, %v1654_v34, %v5230_v40  ;;  %1765 = vrot.lane.b32.xlu0 %v4873_v11, %s3004_s29  ;;  %v1716_v34 = vsel %vm659_vm6, %v4790_v47, %v4781_v62 }
 0x5af   :  { %1749 = vrot.lane.b32.xlu1 %v5112_v17, %s3004_s29  ;;  %2017 = vmatprep.subr.mxu0 %v1714_v36  ;;  %v1717_v36 = vsel %vm659_vm6, %v5019_v13, %v5011_v49 }
 0x5b0   :  { %2018 = vmatpush1.msra.mxu0 %v1718_v53  ;;  %v5242_v4 = vpop.permute.xlu0 %1805  ;;  %v1712_v53 = vsel %vm659_vm6, %v4781_v62, %v4896_v2 }
 0x5b1   :  { %v5248_v40 = vpop.permute.xlu1 %1467  ;;  %2019 = vmatprep.subr.mxu0 %v1713_v45  ;;  %v1711_v45 = vsel %vm659_vm6, %v4641_v24, %v4639_v27 }
 0x5b2   :  { %2020 = vmatpush1.msra.mxu0 %v1717_v36  ;;  %1761 = vrot.lane.b32.xlu0 %v4549_v39, %s3004_s29 }
 0x5b3   :  { %1751 = vrot.lane.b32.xlu1 %v4563_v60, %s3004_s29  ;;  %2021 = vmatprep.subr.mxu0 %v1712_v53  ;;  %v1715_v53 = vsel %vm659_vm6, %v4650_v38, %v4641_v24 }
 0x5b4   :  { %2022 = vmatpush1.msra.mxu0 %v1716_v34  ;;  %v5266_v49 = vpop.permute.xlu0 %1819  ;;  %v1646_v34 = vsel %vm622_vm7, %v5166_v9, %v5150_v56 }
 0x5b5   :  { %6768 = vst [vmem:[#allocation107_spill] sm:$0xff] %v5266_v49  ;;  %v5272_v36 = vpop.permute.xlu1 %1589  ;;  %2023 = vmatprep.subr.mxu0 %v1711_v45  ;;  %v1641_v45 = vsel %vm622_vm7, %v5027_v28, %v5017_v59  ;;  %v6788_v49 = vld [vmem:[#allocation32_spill] sm:$0xff] }
 0x5b6   :  { %v1642_v62 = vsel %vm622_vm7, %v5150_v56, %v5272_v36  ;;  %2024 = vmatpush1.msra.mxu0 %v1715_v53  ;;  %1981 = vrot.lane.b32.xlu0 %v4873_v11, %s3009_s14  ;;  %v1640_v56 = vsel %vm622_vm7, %v4799_v32, %v4907_v30  ;;  %v6781_v11 = vld [vmem:[#allocation85_spill] sm:$0xff] }
 0x5b7   :  { %1763 = vrot.lane.b32.xlu1 %v4743_v33, %s3004_s29  ;;  %2025 = vmatprep.subr.mxu0 %v1642_v62  ;;  %v1645_v62 = vsel %vm622_vm7, %v5037_v31, %v5027_v28  ;;  %v2007_v28 = vld [vmem:[%s6444_s7] sm:$0xff] }
 0x5b8   :  { %2026 = vmatpush1.msra.mxu0 %v1646_v34  ;;  %v5290_v24 = vpop.permute.xlu0 %1797  ;;  %v1644_v34 = vsel %vm622_vm7, %v4808_v44, %v4799_v32  ;;  %v1643_v32 = vsel %vm622_vm7, %v4669_v26, %v4661_v16 }
 0x5b9   :  { %6769 = vst [vmem:[#allocation108_spill] sm:$0xff] %v5290_v24  ;;  %v5296_v53 = vpop.permute.xlu1 %1891  ;;  %2027 = vmatprep.subr.mxu0 %v1641_v45 }
 0x5ba   :  { %2028 = vmatpush1.msra.mxu0 %v1645_v62  ;;  %1977 = vrot.lane.b32.xlu0 %v4549_v39, %s3009_s14  ;;  %v1639_v62 = vsel %vm622_vm7, %v4661_v16, %v4648_v50  ;;  %v1569_v16 = vsel %vm585_vm8, %v5046_v57, %v5025_v8 }
 0x5bb   :  { %1759 = vrot.lane.b32.xlu1 %v4445_v29, %s3004_s29  ;;  %2029 = vmatprep.subr.mxu0 %v1640_v56 }
 0x5bc   :  { %2030 = vmatpush1.msra.mxu0 %v1644_v34  ;;  %v5317_v45 = vpop.permute.xlu0 %1733  ;;  %v1574_v34 = vsel %vm585_vm8, %v5190_v5, %v5174_v58 }
 0x5bd   :  { %v5323_v60 = vpop.permute.xlu1 %1517  ;;  %2031 = vmatprep.subr.mxu0 %v1639_v62 }
 0x5be   :  { %v1570_v56 = vsel %vm585_vm8, %v5174_v58, %v5323_v60  ;;  %2032 = vmatpush1.msra.mxu0 %v1643_v32  ;;  %2010 = vperm.xlu0 %2960, %v2007_v28   ;;  %v1573_v32 = vsel %vm585_vm8, %v5059_v23, %v5046_v57  ;;  %v1568_v58 = vsel %vm585_vm8, %v4819_v54, %v4915_v63 }
 0x5bf   :  { %1979 = vrot.lane.b32.xlu1 %v4743_v33, %s3009_s14  ;;  %2033 = vmatprep.subr.mxu0 %v1570_v56  ;;  %v6771_v56 = vmov 2   ;;  %v1567_v57 = vsel %vm585_vm8, %v4677_v20, %v4659_v7 }
 0x5c0   :  { %2034 = vmatpush1.msra.mxu0 %v1574_v34  ;;  %v5339_v62 = vpop.permute.xlu0 %1905  ;;  %v1572_v34 = vsel %vm585_vm8, %v4827_v55, %v4819_v54 }
 0x5c1   :  { %6770 = vst [vmem:[#allocation109_spill] sm:$0xff] %v5339_v62  ;;  %v5345_v39 = vpop.permute.xlu1 %1463  ;;  %2035 = vmatprep.subr.mxu0 %v1569_v16 }
 0x5c2   :  { %2036 = vmatpush1.msra.mxu0 %v1573_v32  ;;  %2967 = vset.pattern.permute.xlu0 %v6771_v56  ;;  %v1502_v56 = vsel %vm548_vm9, %v5214_v22, %v5198_v19 }
 0x5c3   :  { %1975 = vrot.lane.b32.xlu1 %v4445_v29, %s3009_s14  ;;  %2037 = vmatprep.subr.mxu0 %v1568_v58  ;;  %v1571_v58 = vsel %vm585_vm8, %v4689_v35, %v4677_v20  ;;  %v1497_v20 = vsel %vm548_vm9, %v5068_v46, %v5035_v1  ;;  %v6779_v29 = vld [vmem:[#allocation29_spill] sm:$0xff] }
 0x5c4   :  { %2038 = vmatpush1.msra.mxu0 %v1572_v34  ;;  %v5362_v16 = vpop.permute.xlu0 %1825 }
 0x5c5   :  { %6772 = vst [vmem:[#allocation110_spill] sm:$0xff] %v5362_v16  ;;  %v5368_v32 = vpop.permute.xlu1 %1445  ;;  %2039 = vmatprep.subr.mxu0 %v1567_v57  ;;  %v6782_v16 = vld [vmem:[#allocation88_spill] sm:$0xff] }
 0x5c6   :  { %v1498_v54 = vsel %vm548_vm9, %v5198_v19, %v5368_v32  ;;  %2040 = vmatpush1.msra.mxu0 %v1571_v58  ;;  %v1501_v58 = vsel %vm548_vm9, %v5079_v15, %v5068_v46  ;;  %v1496_v19 = vsel %vm548_vm9, %v4837_v6, %v4923_v10  ;;  %v1495_v46 = vsel %vm548_vm9, %v4701_v21, %v4667_v3 }
 0x5c7   :  { %2041 = vmatprep.subr.mxu0 %v1498_v54  ;;  %2494 = vperm.xlu1 %2966, %v2007_v28   ;;  %v1500_v28 = vsel %vm548_vm9, %v4848_v18, %v4837_v6  ;;  %v6774_v54 = vmov 0  }
 0x5c8   :  { %2042 = vmatpush1.msra.mxu0 %v1502_v56  ;;  %v5382_v34 = vpop.permute.xlu0 %1725 }
 0x5c9   :  { %6773 = vst [vmem:[#allocation111_spill] sm:$0xff] %v5382_v34  ;;  %v5388_v57 = vpop.permute.xlu1 %1897  ;;  %2043 = vmatprep.subr.mxu0 %v1497_v20 }
 0x5ca   :  { %2044 = vmatpush1.msra.mxu0 %v1501_v58  ;;  %v1499_v58 = vsel %vm548_vm9, %v4712_v42, %v4701_v21  ;;  %v1925_v21 = vsel %vm770_vm3, %v5087_v48, %v5044_v52 }
 0x5cb   :  { %2045 = vmatprep.subr.mxu0 %v1496_v19  ;;  %2968 = vset.pattern.permute.xlu1 %v6774_v54  ;;  %v1930_v19 = vsel %vm770_vm3, %v5228_v41, %v5222_v25  ;;  %v6778_v54 = vld [vmem:[#allocation20_spill] sm:$0xff] }
 0x5cc   :  { %2046 = vmatpush1.msra.mxu0 %v1500_v28  ;;  %v5403_v56 = vpop.permute.xlu0 %1949 }
 0x5cd   :  { %v5409_v20 = vpop.permute.xlu1 %1885  ;;  %2047 = vmatprep.subr.mxu0 %v1495_v46 }
 0x5ce   :  { %v1926_v6 = vsel %vm770_vm3, %v5222_v25, %v5409_v20  ;;  %2048 = vmatpush1.msra.mxu0 %v1499_v58  ;;  %v1929_v58 = vsel %vm770_vm3, %v5097_v0, %v5087_v48  ;;  %v1924_v25 = vsel %vm770_vm3, %v4858_v51, %v4931_v61 }
 0x5cf   :  { %2049 = vmatprep.subr.mxu0 %v1926_v6  ;;  %v1928_v6 = vsel %vm770_vm3, %v4868_v12, %v4858_v51  ;;  %v6811_v12 = vld [vmem:[#allocation94_spill] sm:$0xff] }
 0x5d0   :  { %2050 = vmatpush2.msra.mxu0 %v1930_v19  ;;  %v5423_v28 = vpop.permute.xlu0 %1941 }
 0x5d1   :  { %6775 = vst [vmem:[#allocation112_spill] sm:$0xff] %v5423_v28  ;;  %v5429_v46 = vpop.permute.xlu1 %1895  ;;  %2051 = vmatprep.subr.mxu0 %v1925_v21  ;;  %v6777_v21 = vld [vmem:[#allocation23_spill] sm:$0xff] }
 0x5d2   :  { %2052 = vmatpush2.msra.mxu0 %v1929_v58  ;;  %v1923_v48 = vsel %vm770_vm3, %v6778_v54, %v6777_v21 }
 0x5d3   :  { %2053 = vmatprep.subr.mxu0 %v1924_v25  ;;  %v1927_v25 = vsel %vm770_vm3, %v6779_v29, %v6778_v54  ;;  %v6784_v29 = vld [vmem:[#allocation51_spill] sm:$0xff] }
 0x5d4   :  { %2054 = vmatpush2.msra.mxu0 %v1928_v6  ;;  %v5443_v19 = vpop.permute.xlu0 %1973  ;;  %v1858_v6 = vsel %vm733_vm4, %v5290_v24, %v5242_v4 }
 0x5d5   :  { %6776 = vst [vmem:[#allocation113_spill] sm:$0xff] %v5443_v19  ;;  %v5449_v58 = vpop.permute.xlu1 %1813  ;;  %2055 = vmatprep.subr.mxu0 %v1923_v48  ;;  %v6780_v48 = vld [vmem:[#allocation78_spill] sm:$0xff] }
 0x5d6   :  { %v1854_v51 = vsel %vm733_vm4, %v5242_v4, %v5449_v58  ;;  %2056 = vmatpush2.msra.mxu0 %v1927_v25  ;;  %v1853_v54 = vsel %vm733_vm4, %v6781_v11, %v6780_v48  ;;  %v1857_v25 = vsel %vm733_vm4, %v6782_v16, %v6781_v11  ;;  %v6790_v16 = vld [vmem:[#allocation34_spill] sm:$0xff] }
 0x5d7   :  { %2057 = vmatprep.subr.mxu0 %v1854_v51  ;;  %v6783_v51 = vld [vmem:[#allocation61_spill] sm:$0xff] }
 0x5d8   :  { %2058 = vmatpush2.msra.mxu0 %v1858_v6  ;;  %v5463_v33 = vpop.permute.xlu0 %1669  ;;  %v1852_v4 = vsel %vm733_vm4, %v6784_v29, %v6783_v51  ;;  %v6785_v6 = vld [vmem:[#allocation54_spill] sm:$0xff]  ;;  %v6799_v51 = vld [vmem:[#allocation36_spill] sm:$0xff] }
 0x5d9   :  { %v5469_v17 = vpop.permute.xlu1 %1907  ;;  %2059 = vmatprep.subr.mxu0 %v1853_v54  ;;  %v1856_v24 = vsel %vm733_vm4, %v6785_v6, %v6784_v29  ;;  %v6787_v54 = vld [vmem:[#allocation24_spill] sm:$0xff] }
 0x5da   :  { %2060 = vmatpush2.msra.mxu0 %v1857_v25  ;;  %v1851_v11 = vsel %vm733_vm4, %v6788_v49, %v6787_v54  ;;  %v6792_v54 = vld [vmem:[#allocation90_spill] sm:$0xff] }
 0x5db   :  { %2061 = vmatprep.subr.mxu0 %v1852_v4  ;;  %v1855_v4 = vsel %vm733_vm4, %v6790_v16, %v6788_v49 }
 0x5dc   :  { %2062 = vmatpush2.msra.mxu0 %v1856_v24  ;;  %v5483_v48 = vpop.permute.xlu0 %1815  ;;  %v1786_v24 = vsel %vm696_vm5, %v5382_v34, %v5317_v45 }
 0x5dd   :  { %6786 = vst [vmem:[#allocation23_spill] sm:$0xff] %v5483_v48  ;;  %v5489_v25 = vpop.permute.xlu1 %1741  ;;  %2063 = vmatprep.subr.mxu0 %v1851_v11  ;;  %v6791_v11 = vld [vmem:[#allocation79_spill] sm:$0xff]  ;;  %v6796_v48 = vld [vmem:[#allocation56_spill] sm:$0xff] }
 0x5de   :  { %6789 = vst [vmem:[#allocation20_spill] sm:$0xff] %v5489_v25  ;;  %v1782_v29 = vsel %vm696_vm5, %v5317_v45, %v5489_v25  ;;  %2064 = vmatpush2.msra.mxu0 %v1855_v4  ;;  %v1781_v49 = vsel %vm696_vm5, %v6792_v54, %v6791_v11  ;;  %v6794_v25 = vld [vmem:[#allocation92_spill] sm:$0xff] }
 0x5df   :  { %2065 = vmatprep.subr.mxu0 %v1782_v29  ;;  %v1785_v4 = vsel %vm696_vm5, %v6794_v25, %v6792_v54  ;;  %v6795_v29 = vld [vmem:[#allocation63_spill] sm:$0xff]  ;;  %v6801_v25 = vld [vmem:[#allocation38_spill] sm:$0xff] }
 0x5e0   :  { %2066 = vmatpush2.msra.mxu0 %v1786_v24  ;;  %v5503_v6 = vpop.permute.xlu0 %1685  ;;  %v1780_v45 = vsel %vm696_vm5, %v6796_v48, %v6795_v29  ;;  %v6797_v24 = vld [vmem:[#allocation57_spill] sm:$0xff]  ;;  %v6802_v29 = vld [vmem:[#allocation68_spill] sm:$0xff] }
 0x5e1   :  { %v5509_v16 = vpop.permute.xlu1 %1827  ;;  %2067 = vmatprep.subr.mxu0 %v1781_v49  ;;  %v1784_v34 = vsel %vm696_vm5, %v6797_v24, %v6796_v48  ;;  %v6798_v49 = vld [vmem:[#allocation19_spill] sm:$0xff]  ;;  %v6803_v48 = vld [vmem:[#allocation53_spill] sm:$0xff] }
 0x5e2   :  { %6793 = vst [vmem:[#allocation85_spill] sm:$0xff] %v5509_v16  ;;  %2068 = vmatpush2.msra.mxu0 %v1785_v4  ;;  %v1779_v54 = vsel %vm696_vm5, %v6799_v51, %v6798_v49  ;;  %v6804_v16 = vld [vmem:[#allocation27_spill] sm:$0xff] }
 0x5e3   :  { %2069 = vmatprep.subr.mxu0 %v1780_v45  ;;  %v1783_v45 = vsel %vm696_vm5, %v6801_v25, %v6799_v51  ;;  %v6805_v51 = vld [vmem:[#allocation28_spill] sm:$0xff] }
 0x5e4   :  { %2070 = vmatpush2.msra.mxu0 %v1784_v34  ;;  %v5523_v11 = vpop.permute.xlu0 %1605  ;;  %v6809_v25 = vld [vmem:[#allocation12_spill] sm:$0xff] }
 0x5e5   :  { %v5529_v4 = vpop.permute.xlu1 %1817  ;;  %2071 = vmatprep.subr.mxu0 %v1779_v54  ;;  %v2002_v54 = vsel %vm807_vm10, %v5423_v28, %v5403_v56 }
 0x5e6   :  { %6800 = vst [vmem:[#allocation51_spill] sm:$0xff] %v5529_v4  ;;  %2072 = vmatpush2.msra.mxu0 %v1783_v45  ;;  %v6807_v45 = vld [vmem:[#allocation81_spill] sm:$0xff] }
 0x5e7   :  { %2073 = vmatprep.subr.mxu0 %v6802_v29  ;;  %v6806_v29 = vld [vmem:[#allocation16_spill] sm:$0xff] }
 0x5e8   :  { %2074 = vmatpush2.msra.mxu0 %v6803_v48  ;;  %v5537_v34 = vpop.permute.xlu0 %1613  ;;  %v6808_v48 = vld [vmem:[#allocation93_spill] sm:$0xff] }
 0x5e9   :  { %v1958_v24 = vpop.permute.xlu1 %1957  ;;  %2075 = vmatprep.subr.mxu0 %v6804_v16  ;;  %v1997_v16 = vsel %vm807_vm10, %v6808_v48, %v6807_v45 }
 0x5ea   :  { %v1998_v49 = vsel %vm807_vm10, %v5403_v56, %v1958_v24  ;;  %2076 = vmatpush2.msra.mxu0 %v6805_v51  ;;  %v2001_v56 = vsel %vm807_vm10, %v6811_v12, %v6808_v48  ;;  %v6816_v12 = vld [vmem:[#allocation14_spill] sm:$0xff] }
 0x5eb   :  { %2112 = vmatprep.subr.mxu1 %v1998_v49  ;;  %2077 = vmatprep.subr.mxu0 %v6806_v29  ;;  %v5563_v49 = vld [vmem:[%s6443_s6] sm:$0xff] }
 0x5ec   :  { %2113 = vmatpush1.msra.mxu1 %v2002_v54  ;;  %2078 = vmatpush2.msra.mxu0 %v6809_v25  ;;  %v5554_v4 = vpop.permute.xlu0 %1747  ;;  %6812 = vst [vmem:[#allocation90_spill] sm:$0xff] %v5563_v49  ;;  %v6813_v54 = vld [vmem:[#allocation13_spill] sm:$0xff]  ;;  %v6815_v29 = vld [vmem:[#allocation58_spill] sm:$0xff] }
 0x5ed   :  { %6810 = vst [vmem:[#allocation32_spill] sm:$0xff] %v5554_v4  ;;  %2114 = vmatprep.subr.mxu1 %v1997_v16  ;;  %v1966_v62 = vpop.permute.xlu1 %1965  ;;  %2079 = vmatprep.subr.mxu0 %v6813_v54  ;;  %v6814_v25 = vld [vmem:[#allocation65_spill] sm:$0xff]  ;;  %v6817_v54 = vld [vmem:[#allocation59_spill] sm:$0xff] }
 0x5ee   :  { %v1994_v51 = vsel %vm807_vm10, %v1958_v24, %v1966_v62  ;;  %2115 = vmatpush1.msra.mxu1 %v2001_v56  ;;  %v1996_v16 = vsel %vm807_vm10, %v6815_v29, %v6814_v25  ;;  %v1990_v48 = vsel %vm807_vm10, %v1966_v62, %v5443_v19  ;;  %2080 = vmatpush2.msra.mxu0 %v6816_v12  ;;  %v5584_v56 = vld [vmem:[%s6443_s6 + $0x10] sm:$0xff]  ;;  %v6818_v62 = vld [vmem:[#allocation25_spill] sm:$0xff]  ;;  %v6819_v12 = vld [vmem:[#allocation39_spill] sm:$0xff] }
 0x5ef   :  { %2116 = vmatprep.subr.mxu1 %v1996_v16  ;;  %2082 = vmatmul.mubr.f32.vlgmr.msra.gmra.mxu0 %v5563_v49  ;;  %v2000_v24 = vsel %vm807_vm10, %v6817_v54, %v6815_v29  ;;  %v1995_v16 = vsel %vm807_vm10, %v6819_v12, %v6818_v62  ;;  %v6821_v19 = vld [vmem:[#allocation82_spill] sm:$0xff]  ;;  %v6822_v54 = vld [vmem:[#allocation40_spill] sm:$0xff] }
 0x5f0   :  { %2254 = vmatprep.subr.mxu0 %v1990_v48  ;;  %2117 = vmatpush1.msra.mxu1 %v2000_v24  ;;  %v5586_v28 = vpop.permute.xlu0 %1533  ;;  %v6820_v48 = vld [vmem:[#allocation96_spill] sm:$0xff]  ;;  %v1993_v24 = vsel %vm807_vm10, %v6807_v45, %v6821_v19 }
 0x5f1   :  { %2255 = vmatpush1.msra.mxu0 %v1994_v51  ;;  %v1989_v49 = vsel %vm807_vm10, %v6821_v19, %v6820_v48  ;;  %v1678_v29 = vpop.permute.xlu1 %1677  ;;  %2118 = vmatprep.subr.mxu1 %v1995_v16  ;;  %v1999_v51 = vsel %vm807_vm10, %v6822_v54, %v6819_v12  ;;  %v6823_v48 = vld [vmem:[#allocation106_spill] sm:$0xff]  ;;  %v6824_v12 = vld [vmem:[#allocation67_spill] sm:$0xff]  ;;  %v6825_v16 = vld [vmem:[#allocation60_spill] sm:$0xff] }
 0x5f2   :  { %2256 = vmatprep.subr.mxu0 %v1989_v49  ;;  %v1706_v4 = vsel %vm659_vm6, %v5463_v33, %v1678_v29  ;;  %2119 = vmatpush1.msra.mxu1 %v1999_v51  ;;  %v1710_v49 = vsel %vm659_vm6, %v6823_v48, %v5463_v33  ;;  %v1988_v19 = vsel %vm807_vm10, %v6825_v16, %v6824_v12  ;;  %v6827_v33 = vld [vmem:[#allocation83_spill] sm:$0xff]  ;;  %v6828_v54 = vld [vmem:[#allocation41_spill] sm:$0xff]  ;;  %v6829_v12 = vld [vmem:[#allocation26_spill] sm:$0xff] }
 0x5f3   :  { %2257 = vmatpush1.msra.mxu0 %v1993_v24  ;;  %2936 = vmatmul.mubr.msk.f32.vlgmr.msra.gmra.mxu1 %vm2013_vm11, %v5584_v56  ;;  %v1992_v45 = vsel %vm807_vm10, %v6814_v25, %v6825_v16  ;;  %v6826_v24 = vld [vmem:[#allocation97_spill] sm:$0xff]  ;;  %v1709_v25 = vsel %vm659_vm6, %v5009_v37, %v6827_v33  ;;  %v1991_v16 = vsel %vm807_vm10, %v6818_v62, %v6829_v12  ;;  %v6832_v37 = vmov 0.0  }
 0x5f4   :  { %2159 = vmatprep.subr.mxu1 %v1706_v4  ;;  %2258 = vmatprep.subr.mxu0 %v1988_v19  ;;  %v5621_v51 = vpop.permute.xlu0 %1541  ;;  %v1705_v48 = vsel %vm659_vm6, %v6827_v33, %v6826_v24  ;;  %v6830_v19 = vld [vmem:[#allocation70_spill] sm:$0xff] }
 0x5f5   :  { %2160 = vmatpush1.msra.mxu1 %v1710_v49  ;;  %v5627_v4 = vpop.permute.xlu1 %1903  ;;  %2259 = vmatpush1.msra.mxu0 %v1992_v45  ;;  %v1987_v49 = vsel %vm807_vm10, %v6829_v12, %v6828_v54  ;;  %v6831_v45 = vld [vmem:[#allocation62_spill] sm:$0xff]  ;;  %v1698_v54 = vsel %vm659_vm6, %v5503_v6, %v5142_v43  ;;  %v6833_v43 = vld [vmem:[#allocation43_spill] sm:$0xff] }
 0x5f6   :  { %2161 = vmatprep.subr.mxu1 %v1705_v48  ;;  %2260 = vmatprep.subr.mxu0 %v1987_v49  ;;  %v1704_v48 = vsel %vm659_vm6, %v6831_v45, %v6830_v19  ;;  %v1708_v62 = vsel %vm659_vm6, %v4896_v2, %v6831_v45  ;;  %v1702_v49 = vsel %vm659_vm6, %v1678_v29, %v5503_v6 }
 0x5f7   :  { %2162 = vmatpush1.msra.mxu1 %v1709_v25  ;;  %2261 = vmatpush1.msra.mxu0 %v1991_v16  ;;  %v6834_v25 = vld [vmem:[#allocation15_spill] sm:$0xff]  ;;  %v6835_v16 = vld [vmem:[#allocation98_spill] sm:$0xff] }
 0x5f8   :  { %2163 = vmatprep.subr.mxu1 %v1704_v48  ;;  %2294 = vmatprep.mubr.f32.mxu0 %v6832_v37  ;;  %v5654_v12 = vpop.permute.xlu0 %1833  ;;  %v1697_v6 = vsel %vm659_vm6, %v6835_v16, %v5019_v13  ;;  %v1707_v45 = vsel %vm659_vm6, %v4639_v27, %v6834_v25  ;;  %v1701_v48 = vsel %vm659_vm6, %v6826_v24, %v6835_v16  ;;  %v6836_v13 = vld [vmem:[#allocation64_spill] sm:$0xff]  ;;  %v6840_v16 = vld [vmem:[#allocation66_spill] sm:$0xff] }
 0x5f9   :  { %2301 = vmatprep.subr.mxu0 %v1698_v54  ;;  %v1598_v33 = vpop.permute.xlu1 %1597  ;;  %2164 = vmatpush1.msra.mxu1 %v1708_v62  ;;  %v1703_v54 = vsel %vm659_vm6, %v6834_v25, %v6833_v43  ;;  %v1696_v62 = vsel %vm659_vm6, %v6836_v13, %v4790_v47  ;;  %v1700_v27 = vsel %vm659_vm6, %v6830_v19, %v6836_v13  ;;  %v6838_v24 = vld [vmem:[#allocation84_spill] sm:$0xff]  ;;  %v6842_v13 = vld [vmem:[#allocation45_spill] sm:$0xff] }
 0x5fa   :  { %2937 = vmatmul.mubr.msk.f32.vlgmr.msra.gmra.mxu0 %vm2013_vm11, %v5584_v56  ;;  %v1634_v2 = vsel %vm622_vm7, %v1598_v33, %v5523_v11  ;;  %2165 = vmatprep.subr.mxu1 %v1703_v54  ;;  %v1638_v29 = vsel %vm622_vm7, %v5272_v36, %v1598_v33  ;;  %v6839_v47 = vld [vmem:[#allocation44_spill] sm:$0xff] }
 0x5fb   :  { %2302 = vmatpush1.msra.mxu0 %v1702_v49  ;;  %2166 = vmatpush1.msra.mxu1 %v1707_v45  ;;  %v6837_v49 = vld [vmem:[#allocation100_spill] sm:$0xff]  ;;  %v1695_v54 = vsel %vm659_vm6, %v6839_v47, %v4650_v38  ;;  %v1699_v19 = vsel %vm659_vm6, %v6833_v43, %v6839_v47  ;;  %v1626_v38 = vsel %vm622_vm7, %v5537_v34, %v5166_v9 }
 0x5fc   :  { %2303 = vmatprep.subr.mxu0 %v1697_v6  ;;  %2167 = vmatprep.subr.mxu1 %v1634_v2  ;;  %v5687_v36 = vpop.permute.xlu0 %1461  ;;  %v1633_v25 = vsel %vm622_vm7, %v6838_v24, %v6837_v49  ;;  %v1637_v2 = vsel %vm622_vm7, %v5017_v59, %v6838_v24  ;;  %v6841_v6 = vld [vmem:[#allocation72_spill] sm:$0xff] }
 0x5fd   :  { %2304 = vmatpush1.msra.mxu0 %v1701_v48  ;;  %v5689_v33 = vpop.permute.xlu1 %1823  ;;  %2168 = vmatpush1.msra.mxu1 %v1638_v29  ;;  %v1632_v29 = vsel %vm622_vm7, %v6841_v6, %v6840_v16  ;;  %v1636_v59 = vsel %vm622_vm7, %v4907_v30, %v6841_v6  ;;  %v1630_v48 = vsel %vm622_vm7, %v5523_v11, %v5537_v34  ;;  %v6844_v30 = vld [vmem:[#allocation101_spill] sm:$0xff] }
 0x5fe   :  { %2305 = vmatprep.subr.mxu0 %v1696_v62  ;;  %2169 = vmatprep.subr.mxu1 %v1633_v25  ;;  %v6843_v62 = vld [vmem:[#allocation31_spill] sm:$0xff]  ;;  %v1625_v24 = vsel %vm622_vm7, %v6844_v30, %v5037_v31  ;;  %v1629_v25 = vsel %vm622_vm7, %v6837_v49, %v6844_v30  ;;  %v6845_v31 = vld [vmem:[#allocation69_spill] sm:$0xff] }
 0x5ff   :  { %2306 = vmatpush1.msra.mxu0 %v1700_v27  ;;  %2170 = vmatpush1.msra.mxu1 %v1637_v2  ;;  %v1631_v9 = vsel %vm622_vm7, %v6843_v62, %v6842_v13  ;;  %v1635_v34 = vsel %vm622_vm7, %v4648_v50, %v6843_v62  ;;  %v1624_v47 = vsel %vm622_vm7, %v6845_v31, %v4808_v44  ;;  %v6846_v2 = vld [vmem:[#allocation102_spill] sm:$0xff]  ;;  %v6847_v49 = vld [vmem:[#allocation87_spill] sm:$0xff] }
 0x600   :  { %2307 = vmatprep.subr.mxu0 %v1695_v54  ;;  %2171 = vmatprep.subr.mxu1 %v1632_v29  ;;  %v5723_v45 = vpop.permute.xlu0 %1469  ;;  %v1628_v50 = vsel %vm622_vm7, %v6840_v16, %v6845_v31  ;;  %v6848_v44 = vld [vmem:[#allocation46_spill] sm:$0xff]  ;;  %v1565_v29 = vsel %vm585_vm8, %v5025_v8, %v6847_v49  ;;  %v1558_v62 = vsel %vm585_vm8, %v5586_v28, %v5621_v51  ;;  %v6855_v31 = vld [vmem:[#allocation105_spill] sm:$0xff] }
 0x601   :  { %2308 = vmatpush1.msra.mxu0 %v1699_v19  ;;  %v1526_v43 = vpop.permute.xlu1 %1525  ;;  %2172 = vmatpush1.msra.mxu1 %v1636_v59  ;;  %v1561_v19 = vsel %vm585_vm8, %v6847_v49, %v6846_v2  ;;  %v1623_v6 = vsel %vm622_vm7, %v6848_v44, %v4669_v26  ;;  %v1627_v16 = vsel %vm622_vm7, %v6842_v13, %v6848_v44  ;;  %v6850_v59 = vld [vmem:[#allocation74_spill] sm:$0xff]  ;;  %v6858_v44 = vld [vmem:[#allocation75_spill] sm:$0xff] }
 0x602   :  { %2309 = vmatprep.subr.mxu0 %v1626_v38  ;;  %v1562_v27 = vsel %vm585_vm8, %v1526_v43, %v5586_v28  ;;  %2173 = vmatprep.subr.mxu1 %v1631_v9  ;;  %v1566_v11 = vsel %vm585_vm8, %v5323_v60, %v1526_v43  ;;  %v6849_v38 = vld [vmem:[#allocation71_spill] sm:$0xff]  ;;  %v1554_v26 = vsel %vm585_vm8, %v5621_v51, %v5190_v5 }
 0x603   :  { %2310 = vmatpush1.msra.mxu0 %v1630_v48  ;;  %2174 = vmatpush1.msra.mxu1 %v1635_v34  ;;  %v1560_v43 = vsel %vm585_vm8, %v6850_v59, %v6849_v38  ;;  %v1564_v8 = vsel %vm585_vm8, %v4915_v63, %v6850_v59  ;;  %v6851_v9 = vld [vmem:[#allocation47_spill] sm:$0xff]  ;;  %v6853_v63 = vld [vmem:[#allocation104_spill] sm:$0xff]  ;;  %v1486_v59 = vsel %vm548_vm9, %v5687_v36, %v5723_v45 }
 0x604   :  { %2311 = vmatprep.subr.mxu0 %v1625_v24  ;;  %2175 = vmatprep.subr.mxu1 %v1562_v27  ;;  %v5755_v60 = vpop.permute.xlu0 %1893  ;;  %v6852_v27 = vld [vmem:[#allocation33_spill] sm:$0xff]  ;;  %v1553_v24 = vsel %vm585_vm8, %v6853_v63, %v5059_v23 }
 0x605   :  { %2312 = vmatpush1.msra.mxu0 %v1629_v25  ;;  %v5757_v54 = vpop.permute.xlu1 %1835  ;;  %2176 = vmatpush1.msra.mxu1 %v1566_v11  ;;  %v1559_v5 = vsel %vm585_vm8, %v6852_v27, %v6851_v9  ;;  %v1563_v51 = vsel %vm585_vm8, %v4659_v7, %v6852_v27  ;;  %v1557_v11 = vsel %vm585_vm8, %v6846_v2, %v6853_v63  ;;  %v6854_v23 = vld [vmem:[#allocation73_spill] sm:$0xff]  ;;  %v6863_v27 = vld [vmem:[#allocation95_spill] sm:$0xff] }
 0x606   :  { %2313 = vmatprep.subr.mxu0 %v1624_v47  ;;  %2177 = vmatprep.subr.mxu1 %v1561_v19  ;;  %v1552_v34 = vsel %vm585_vm8, %v6854_v23, %v4827_v55  ;;  %v1556_v7 = vsel %vm585_vm8, %v6849_v38, %v6854_v23  ;;  %v6856_v47 = vld [vmem:[#allocation89_spill] sm:$0xff] }
 0x607   :  { %2314 = vmatpush1.msra.mxu0 %v1628_v50  ;;  %2178 = vmatpush1.msra.mxu1 %v1565_v29  ;;  %v1489_v50 = vsel %vm548_vm9, %v6856_v47, %v6855_v31  ;;  %v6857_v2 = vld [vmem:[#allocation49_spill] sm:$0xff]  ;;  %v1493_v49 = vsel %vm548_vm9, %v5035_v1, %v6856_v47 }
 0x608   :  { %2315 = vmatprep.subr.mxu0 %v1623_v6  ;;  %2179 = vmatprep.subr.mxu1 %v1560_v43  ;;  %v5791_v48 = vpop.permute.xlu0 %1753  ;;  %v1551_v55 = vsel %vm585_vm8, %v6857_v2, %v4689_v35  ;;  %v1555_v19 = vsel %vm585_vm8, %v6851_v9, %v6857_v2  ;;  %v6859_v6 = vld [vmem:[#allocation76_spill] sm:$0xff]  ;;  %v1482_v35 = vsel %vm548_vm9, %v5723_v45, %v5214_v22  ;;  %v6868_v47 = vld [vmem:[#allocation85_spill] sm:$0xff] }
 0x609   :  { %2316 = vmatpush1.msra.mxu0 %v1627_v16  ;;  %v1454_v13 = vpop.permute.xlu1 %1453  ;;  %2180 = vmatpush1.msra.mxu1 %v1564_v8  ;;  %v1488_v29 = vsel %vm548_vm9, %v6859_v6, %v6858_v44  ;;  %v1492_v1 = vsel %vm548_vm9, %v4923_v10, %v6859_v6  ;;  %v6860_v43 = vld [vmem:[#allocation52_spill] sm:$0xff]  ;;  %v1481_v10 = vsel %vm548_vm9, %v5248_v40, %v5079_v15  ;;  %v6862_v15 = vld [vmem:[#allocation91_spill] sm:$0xff]  ;;  %v6870_v2 = vld [vmem:[#allocation29_spill] sm:$0xff] }
 0x60a   :  { %2317 = vmatprep.subr.mxu0 %v1554_v26  ;;  %v1490_v30 = vsel %vm548_vm9, %v1454_v13, %v5687_v36  ;;  %2181 = vmatprep.subr.mxu1 %v1559_v5  ;;  %v1494_v28 = vsel %vm548_vm9, %v5368_v32, %v1454_v13  ;;  %v6861_v26 = vld [vmem:[#allocation35_spill] sm:$0xff]  ;;  %v1485_v45 = vsel %vm548_vm9, %v6855_v31, %v5248_v40 }
 0x60b   :  { %2318 = vmatpush1.msra.mxu0 %v1558_v62  ;;  %2182 = vmatpush1.msra.mxu1 %v1563_v51  ;;  %v1487_v22 = vsel %vm548_vm9, %v6861_v26, %v6860_v43  ;;  %v1491_v36 = vsel %vm548_vm9, %v4667_v3, %v6861_v26  ;;  %v1922_v13 = vsel %vm770_vm3, %v5409_v20, %v5755_v60  ;;  %v6873_v6 = vld [vmem:[#allocation51_spill] sm:$0xff] }
 0x60c   :  { %2319 = vmatprep.subr.mxu0 %v1553_v24  ;;  %2183 = vmatprep.subr.mxu1 %v1490_v30  ;;  %v1910_v32 = vpop.permute.xlu0 %1909  ;;  %v1480_v62 = vsel %vm548_vm9, %v6862_v15, %v4848_v18  ;;  %v1484_v40 = vsel %vm548_vm9, %v6858_v44, %v6862_v15  ;;  %v1917_v20 = vsel %vm770_vm3, %v5296_v53, %v6863_v27  ;;  %v6864_v30 = vld [vmem:[#allocation99_spill] sm:$0xff]  ;;  %v6872_v44 = vld [vmem:[#allocation110_spill] sm:$0xff] }
 0x60d   :  { %2320 = vmatpush1.msra.mxu0 %v1557_v11  ;;  %v5823_v25 = vpop.permute.xlu1 %1755  ;;  %2184 = vmatpush1.msra.mxu1 %v1494_v28  ;;  %v1479_v18 = vsel %vm548_vm9, %v5345_v39, %v4712_v42  ;;  %v1483_v5 = vsel %vm548_vm9, %v6860_v43, %v5345_v39  ;;  %v1916_v63 = vsel %vm770_vm3, %v6864_v30, %v5388_v57  ;;  %v6865_v28 = vld [vmem:[#allocation103_spill] sm:$0xff] }
 0x60e   :  { %2321 = vmatprep.subr.mxu0 %v1552_v34  ;;  %2185 = vmatprep.subr.mxu1 %v1489_v50  ;;  %v1934_v42 = vsel %vm770_vm3, %v1910_v32, %v5228_v41  ;;  %v1915_v51 = vsel %vm770_vm3, %v6865_v28, %v5429_v46  ;;  %v1919_v23 = vsel %vm770_vm3, %v6777_v21, %v6865_v28  ;;  %v6869_v50 = vld [vmem:[#allocation107_spill] sm:$0xff] }
 0x60f   :  { %2322 = vmatpush1.msra.mxu0 %v1556_v7  ;;  %2186 = vmatpush1.msra.mxu1 %v1493_v49  ;;  %v1913_v34 = vsel %vm770_vm3, %v6863_v27, %v5469_v17  ;;  %v6871_v49 = vld [vmem:[#allocation78_spill] sm:$0xff]  ;;  %v1841_v15 = vsel %vm733_vm4, %v6868_v47, %v5757_v54  ;;  %v1840_v27 = vsel %vm733_vm4, %v6872_v44, %v5654_v12 }
 0x610   :  { %2323 = vmatprep.subr.mxu0 %v1551_v55  ;;  %2187 = vmatprep.subr.mxu1 %v1488_v29  ;;  %v5857_v16 = vpop.permute.xlu0 %1829  ;;  %v1931_v55 = vsel %vm770_vm3, %v5627_v4, %v6870_v2  ;;  %v1844_v29 = vsel %vm733_vm4, %v6873_v6, %v6872_v44  ;;  %v6897_v44 = vld [vmem:[#allocation8_spill] sm:$0xff] }
 0x611   :  { %2324 = vmatpush1.msra.mxu0 %v1555_v19  ;;  %v1902_v38 = vpop.permute.xlu1 %1901  ;;  %2188 = vmatpush1.msra.mxu1 %v1492_v1  ;;  %v1849_v19 = vsel %vm733_vm4, %v6871_v49, %v6869_v50  ;;  %v6894_v49 = vld [vmem:[#allocation9_spill] sm:$0xff] }
 0x612   :  { %2325 = vmatprep.subr.mxu0 %v1482_v35  ;;  %v1918_v8 = vsel %vm770_vm3, %v5755_v60, %v1902_v38  ;;  %2189 = vmatprep.subr.mxu1 %v1487_v22  ;;  %v1921_v60 = vsel %vm770_vm3, %v5044_v52, %v5296_v53  ;;  %v1920_v52 = vsel %vm770_vm3, %v4931_v61, %v6864_v30  ;;  %v6874_v35 = vld [vmem:[#allocation108_spill] sm:$0xff]  ;;  %v6883_v30 = vld [vmem:[#allocation34_spill] sm:$0xff] }
 0x613   :  { %2326 = vmatpush1.msra.mxu0 %v1486_v59  ;;  %2190 = vmatpush1.msra.mxu1 %v1491_v36  ;;  %v1914_v39 = vsel %vm770_vm3, %v1902_v38, %v1910_v32  ;;  %v1933_v61 = vsel %vm770_vm3, %v5469_v17, %v5097_v0  ;;  %v6866_v32 = vld [vmem:[#allocation48_spill] sm:$0xff]  ;;  %v6867_v0 = vld [vmem:[#allocation109_spill] sm:$0xff]  ;;  %v1845_v17 = vsel %vm733_vm4, %v6869_v50, %v6868_v47  ;;  %v6892_v50 = vld [vmem:[#allocation38_spill] sm:$0xff] }
 0x614   :  { %2327 = vmatprep.subr.mxu0 %v1481_v10  ;;  %2191 = vmatprep.subr.mxu1 %v1918_v8  ;;  %v1838_v3 = vpop.permute.xlu0 %1837  ;;  %v1932_v7 = vsel %vm770_vm3, %v6867_v0, %v6866_v32  ;;  %v1912_v21 = vsel %vm770_vm3, %v5388_v57, %v6867_v0  ;;  %v1911_v57 = vsel %vm770_vm3, %v5429_v46, %v5627_v4  ;;  %v6875_v38 = vld [vmem:[#allocation61_spill] sm:$0xff]  ;;  %v6876_v4 = vld [vmem:[#allocation23_spill] sm:$0xff]  ;;  %v6877_v8 = vld [vmem:[#allocation24_spill] sm:$0xff] }
 0x615   :  { %2328 = vmatpush1.msra.mxu0 %v1485_v45  ;;  %v5890_v9 = vpop.permute.xlu1 %1745  ;;  %2192 = vmatpush2.msra.mxu1 %v1922_v13  ;;  %v1862_v1 = vsel %vm733_vm4, %v1838_v3, %v6874_v35  ;;  %v1848_v59 = vsel %vm733_vm4, %v6875_v38, %v6873_v6  ;;  %v1842_v46 = vsel %vm733_vm4, %v5857_v16, %v1838_v3  ;;  %v6878_v36 = vld [vmem:[#allocation88_spill] sm:$0xff]  ;;  %v6880_v3 = vld [vmem:[#allocation54_spill] sm:$0xff]  ;;  %v6889_v0 = vld [vmem:[#allocation57_spill] sm:$0xff] }
 0x616   :  { %2329 = vmatprep.subr.mxu0 %v1480_v62  ;;  %2193 = vmatprep.subr.mxu1 %v1917_v20  ;;  %v1843_v26 = vsel %vm733_vm4, %v6876_v4, %v5689_v33  ;;  %v1847_v10 = vsel %vm733_vm4, %v6877_v8, %v6876_v4  ;;  %v6879_v45 = vld [vmem:[#allocation20_spill] sm:$0xff]  ;;  %v6888_v32 = vld [vmem:[#allocation86_spill] sm:$0xff]  ;;  %v2996_v6 = vld [vmem:[%s6443_s6 + $0x8] sm:$0xff] }
 0x617   :  { %2330 = vmatpush1.msra.mxu0 %v1484_v40  ;;  %2194 = vmatpush2.msra.mxu1 %v1921_v60  ;;  %v1860_v40 = vsel %vm733_vm4, %v5654_v12, %v6880_v3  ;;  %v6881_v20 = vld [vmem:[#allocation32_spill] sm:$0xff]  ;;  %v6882_v60 = vld [vmem:[#allocation79_spill] sm:$0xff]  ;;  %v6901_v38 = vld [vmem:[#allocation30_spill] sm:$0xff] }
 0x618   :  { %2331 = vmatprep.subr.mxu0 %v1479_v18  ;;  %2195 = vmatprep.subr.mxu1 %v1916_v63  ;;  %v5923_v53 = vpop.permute.xlu0 %1757  ;;  %v6899_v35 = vld [vmem:[#allocation80_spill] sm:$0xff]  ;;  %v6905_v8 = vld [vmem:[#allocation22_spill] sm:$0xff]  ;;  %v6910_v3 = vld [vmem:[#allocation59_spill] sm:$0xff] }
 0x619   :  { %2332 = vmatpush1.msra.mxu0 %v1483_v5  ;;  %v1822_v24 = vpop.permute.xlu1 %1821  ;;  %2196 = vmatpush2.msra.mxu1 %v1920_v52  ;;  %v1777_v5 = vsel %vm696_vm5, %v6882_v60, %v6881_v20  ;;  %v6884_v52 = vld [vmem:[#allocation63_spill] sm:$0xff] }
 0x61a   :  { %2333 = vmatprep.subr.mxu0 %v1934_v42  ;;  %v1846_v41 = vsel %vm733_vm4, %v1822_v24, %v5857_v16  ;;  %2197 = vmatprep.subr.mxu1 %v1915_v51  ;;  %v1850_v11 = vsel %vm733_vm4, %v5449_v58, %v1822_v24  ;;  %v1861_v16 = vsel %vm733_vm4, %v5757_v54, %v6878_v36 }
 0x61b   :  { %2334 = vmatpush2.msra.mxu0 %v1914_v39  ;;  %2198 = vmatpush2.msra.mxu1 %v1919_v23  ;;  %v1773_v54 = vsel %vm696_vm5, %v6881_v20, %v5823_v25  ;;  %v1772_v42 = vsel %vm696_vm5, %v5890_v9, %v5791_v48  ;;  %v1776_v24 = vsel %vm696_vm5, %v6884_v52, %v5890_v9  ;;  %v6885_v39 = vld [vmem:[#allocation111_spill] sm:$0xff] }
 0x61c   :  { %2335 = vmatprep.subr.mxu0 %v1933_v61  ;;  %2199 = vmatprep.subr.mxu1 %v1846_v41  ;;  %v1744_v31 = vpop.permute.xlu0 %1743 }
 0x61d   :  { %2336 = vmatpush2.msra.mxu0 %v1913_v34  ;;  %v1832_v58 = vpop.permute.xlu1 %1831  ;;  %2200 = vmatpush2.msra.mxu1 %v1850_v11  ;;  %v6886_v11 = vld [vmem:[#allocation19_spill] sm:$0xff]  ;;  %v6887_v34 = vld [vmem:[#allocation92_spill] sm:$0xff] }
 0x61e   :  { %2337 = vmatprep.subr.mxu0 %v1932_v7  ;;  %2201 = vmatprep.subr.mxu1 %v1845_v17  ;;  %v1859_v63 = vsel %vm733_vm4, %v1832_v58, %v6883_v30  ;;  %v1839_v12 = vsel %vm733_vm4, %v5689_v33, %v1832_v58  ;;  %v1775_v9 = vsel %vm696_vm5, %v6886_v11, %v1744_v31 }
 0x61f   :  { %2338 = vmatpush2.msra.mxu0 %v1912_v21  ;;  %2202 = vmatpush2.msra.mxu1 %v1849_v19  ;;  %v6890_v21 = vld [vmem:[#allocation77_spill] sm:$0xff]  ;;  %v6896_v19 = vld [vmem:[#allocation50_spill] sm:$0xff] }
 0x620   :  { %2339 = vmatprep.subr.mxu0 %v1931_v55  ;;  %2203 = vmatprep.subr.mxu1 %v1844_v29  ;;  %v1766_v62 = vpop.permute.xlu0 %1765  ;;  %v6893_v55 = vld [vmem:[#allocation37_spill] sm:$0xff] }
 0x621   :  { %2340 = vmatpush2.msra.mxu0 %v1911_v57  ;;  %v1750_v43 = vpop.permute.xlu1 %1749  ;;  %2204 = vmatpush2.msra.mxu1 %v1848_v59  ;;  %v1790_v28 = vsel %vm696_vm5, %v1766_v62, %v6885_v39  ;;  %v1770_v33 = vsel %vm696_vm5, %v5923_v53, %v1766_v62  ;;  %v6898_v29 = vld [vmem:[#allocation21_spill] sm:$0xff]  ;;  %v6902_v59 = vld [vmem:[#allocation112_spill] sm:$0xff]  ;;  %v6909_v62 = vld [vmem:[#allocation11_spill] sm:$0xff] }
 0x622   :  { %2341 = vmatprep.subr.mxu0 %v1862_v1  ;;  %v1774_v22 = vsel %vm696_vm5, %v1750_v43, %v5923_v53  ;;  %2205 = vmatprep.subr.mxu1 %v1843_v26  ;;  %v1778_v13 = vsel %vm696_vm5, %v6879_v45, %v1750_v43  ;;  %v6900_v1 = vld [vmem:[#allocation90_spill] sm:$0xff] }
 0x623   :  { %2342 = vmatpush2.msra.mxu0 %v1842_v46  ;;  %2206 = vmatpush2.msra.mxu1 %v1847_v10  ;;  %v6903_v46 = vld [vmem:[#allocation113_spill] sm:$0xff]  ;;  %v6906_v10 = vld [vmem:[#allocation94_spill] sm:$0xff] }
 0x624   :  { %2343 = vmatprep.subr.mxu0 %v1861_v16  ;;  %2207 = vmatprep.subr.mxu1 %v1774_v22  ;;  %v1762_v51 = vpop.permute.xlu0 %1761  ;;  %v6904_v22 = vld [vmem:[#allocation55_spill] sm:$0xff]  ;;  %v6907_v16 = vld [vmem:[#allocation96_spill] sm:$0xff] }
 0x625   :  { %2344 = vmatpush2.msra.mxu0 %v1841_v15  ;;  %2208 = vmatpush2.msra.mxu1 %v1778_v13  ;;  %v1752_v18 = vpop.permute.xlu1 %1751  ;;  %v1788_v7 = vsel %vm696_vm5, %v1762_v51, %v6889_v0  ;;  %v1768_v58 = vsel %vm696_vm5, %v5791_v48, %v1762_v51  ;;  %v6895_v48 = vld [vmem:[#allocation10_spill] sm:$0xff] }
 0x626   :  { %2345 = vmatprep.subr.mxu0 %v1860_v40  ;;  %2209 = vmatprep.subr.mxu1 %v1773_v54  ;;  %v1771_v41 = vsel %vm696_vm5, %v1744_v31, %v1752_v18  ;;  %v6891_v31 = vld [vmem:[#allocation42_spill] sm:$0xff]  ;;  %v6912_v54 = vld [vmem:[#allocation17_spill] sm:$0xff] }
 0x627   :  { %2346 = vmatpush2.msra.mxu0 %v1840_v27  ;;  %2210 = vmatpush2.msra.mxu1 %v1777_v5  ;;  %v6908_v15 = vld [vmem:[#allocation18_spill] sm:$0xff]  ;;  %v6911_v27 = vld [vmem:[#allocation67_spill] sm:$0xff]  ;;  %v6914_v5 = vld [vmem:[#allocation41_spill] sm:$0xff] }
 0x628   :  { %2347 = vmatprep.subr.mxu0 %v1859_v63  ;;  %2211 = vmatprep.subr.mxu1 %v1772_v42  ;;  %v1982_v2 = vpop.permute.xlu0 %1981 }
 0x629   :  { %2348 = vmatpush2.msra.mxu0 %v1839_v12  ;;  %2212 = vmatpush2.msra.mxu1 %v1776_v24  ;;  %v1764_v61 = vpop.permute.xlu1 %1763  ;;  %v2006_v43 = vsel %vm807_vm10, %v1982_v2, %v6902_v59  ;;  %v1986_v4 = vsel %vm807_vm10, %v6903_v46, %v1982_v2 }
 0x62a   :  { %2349 = vmatprep.subr.mxu0 %v1790_v28  ;;  %2213 = vmatprep.subr.mxu1 %v1771_v41  ;;  %v1769_v23 = vsel %vm696_vm5, %v5823_v25, %v1764_v61  ;;  %v1789_v53 = vsel %vm696_vm5, %v1764_v61, %v6887_v34  ;;  %v6915_v34 = vld [vmem:[#allocation4_spill] sm:$0xff] }
 0x62b   :  { %2350 = vmatpush2.msra.mxu0 %v1770_v33  ;;  %2214 = vmatpush2.msra.mxu1 %v1775_v9 }
 0x62c   :  { %2351 = vmatprep.subr.mxu0 %v1789_v53  ;;  %2215 = vmatprep.subr.mxu1 %v6888_v32  ;;  %v1978_v26 = vpop.permute.xlu0 %1977 }
 0x62d   :  { %2352 = vmatpush2.msra.mxu0 %v1769_v23  ;;  %2216 = vmatpush2.msra.mxu1 %v6890_v21  ;;  %v1760_v25 = vpop.permute.xlu1 %1759  ;;  %v2004_v40 = vsel %vm807_vm10, %v1978_v26, %v6910_v3  ;;  %v1984_v20 = vsel %vm807_vm10, %v6911_v27, %v1978_v26 }
 0x62e   :  { %2353 = vmatprep.subr.mxu0 %v1788_v7  ;;  %2217 = vmatprep.subr.mxu1 %v6891_v31  ;;  %v1767_v47 = vsel %vm696_vm5, %v1752_v18, %v1760_v25  ;;  %v1787_v17 = vsel %vm696_vm5, %v1760_v25, %v6892_v50  ;;  %v6913_v18 = vld [vmem:[#allocation40_spill] sm:$0xff]  ;;  %v6916_v7 = vld [vmem:[#allocation2_spill] sm:$0xff]  ;;  %v6917_v50 = vld [vmem:[#allocation3_spill] sm:$0xff] }
 0x62f   :  { %2354 = vmatpush2.msra.mxu0 %v1768_v58  ;;  %2218 = vmatpush2.msra.mxu1 %v6893_v55 }
 0x630   :  { %2355 = vmatprep.subr.mxu0 %v1787_v17  ;;  %2219 = vmatprep.subr.mxu1 %v6894_v49 }
 0x631   :  { %2356 = vmatpush2.msra.mxu0 %v1767_v47  ;;  %2220 = vmatpush2.msra.mxu1 %v6895_v48  ;;  %v1980_v57 = vpop.permute.xlu1 %1979 }
 0x632   :  { %2357 = vmatprep.subr.mxu0 %v6896_v19  ;;  %2221 = vmatprep.subr.mxu1 %v6897_v44  ;;  %v2005_v36 = vsel %vm807_vm10, %v1980_v57, %v6906_v10  ;;  %v1985_v45 = vsel %vm807_vm10, %v6907_v16, %v1980_v57  ;;  %v6918_v44 = vld [vmem:[#allocation5_spill] sm:$0xff]  ;;  %v6919_v10 = vld [vmem:[#allocation6_spill] sm:$0xff] }
 0x633   :  { %2223 = vmatprep.mubr.f32.mxu1 %v2996_v6  ;;  %2222 = vmatpush2.msra.mxu1 %v6898_v29 }
 0x634   :  { %2358 = vmatpush2.msra.mxu0 %v6899_v35  ;;  %2224 = vmatmul.mubr.f32.vlgmr.msra.gmra.mxu1 %v6900_v1 }
 0x635   :  { %2359 = vmatprep.subr.mxu0 %v6901_v38  ;;  %2396 = vmatprep.subr.mxu1 %v2006_v43  ;;  %v1976_v13 = vpop.permute.xlu1 %1975 }
 0x636   :  { %2360 = vmatpush2.msra.mxu0 %v6904_v22  ;;  %2397 = vmatpush1.msra.mxu1 %v1986_v4  ;;  %v2003_v60 = vsel %vm807_vm10, %v1976_v13, %v6913_v18  ;;  %v1983_v30 = vsel %vm807_vm10, %v6914_v5, %v1976_v13  ;;  %v6921_v5 = vmov 0  }
 0x637   :  { %2361 = vmatprep.subr.mxu0 %v6905_v8  ;;  %2398 = vmatprep.subr.mxu1 %v2005_v36 }
 0x638   :  { %2362 = vmatpush2.msra.mxu0 %v6908_v15  ;;  %2399 = vmatpush1.msra.mxu1 %v1985_v45  ;;  %v6920_v15 = vld [vmem:[#allocation7_spill] sm:$0xff] }
 0x639   :  { %2363 = vmatprep.subr.mxu0 %v6909_v62  ;;  %2400 = vmatprep.subr.mxu1 %v2004_v40  ;;  %v2011_v52 = vpop.permute.xlu0 %2010 }
 0x63a   :  { %2364 = vmatpush2.msra.mxu0 %v6912_v54  ;;  %2365 = vmatprep.mubr.f32.mxu0 %v2996_v6 }
 0x63b   :  { %2401 = vmatpush1.msra.mxu1 %v1984_v20  ;;  %2366 = vmatmul.mubr.f32.vlgmr.msra.gmra.mxu0 %v6900_v1 }
 0x63c   :  { %2402 = vmatprep.subr.mxu1 %v2003_v60  ;;  %2436 = vmatprep.mubr.f32.mxu1 %v6832_v37  ;;  %v2997_v60 = vld [vmem:[%s6444_s7] sm:$0xff] }
 0x63d   :  { %2403 = vmatpush1.msra.mxu1 %v1983_v30  ;;  %2880 = vmatprep.mubr.f32.mxu0 %v6832_v37 }
 0x63e   :  { %2938 = vmatmul.mubr.msk.f32.vlgmr.msra.gmra.mxu1 %vm2013_vm11, %v5584_v56 }
 0x63f   :  { %2738 = vmatprep.mubr.f32.mxu1 %v6832_v37 }
 0x642   :  { %v2495_v30 = vpop.permute.xlu1 %2494 }
 0x6af   :  { %v2083_v63 = vpop.f32.mrf.mxu0 }
 0x6b0   :  { %v2084_v28 = vadd.f32 %v2083_v63, %v2011_v52 }
 0x6b1   :  { %v2085_v42 = vpop.f32.mrf.mxu0 }
 0x6b2   :  { %v2086_v39 = vadd.f32 %v2085_v42, %v2011_v52 }
 0x6b3   :  { %v2154_v12 = vpop.f32.mrf.mxu1 }
 0x6b4   :  { %v2155_v51 = vadd.f32 %v2154_v12, %v2084_v28 }
 0x6b5   :  { %v2156_v24 = vpop.f32.mrf.mxu1 }
 0x6b6   :  { %v2157_v33 = vadd.f32 %v2156_v24, %v2086_v39  ;;  %v2443_v61 = vmax.f32 %v2155_v51, 0.0 }
 0x6b8   :  { %v2444_v41 = vmax.f32 %v2157_v33, 0.0  ;;  %v2449_v58 = vmul.f32 %v2443_v61, %v6916_v7 }
 0x6ba   :  { %v2296_v11 = vpop.f32.mrf.mxu0  ;;  %v2450_v56 = vmul.f32 %v2444_v41, %v6915_v34  ;;  %v2463_v49 = vmul.f32 %v2449_v58, %v2449_v58 }
 0x6bc   :  { %v2298_v21 = vpop.f32.mrf.mxu0  ;;  %v2464_v47 = vmul.f32 %v2450_v56, %v2450_v56  ;;  %v2455_v48 = vadd.f32 %v2450_v56, %v2449_v58 }
 0x6be   :  { %v2469_v1 = vadd.f32 %v2464_v47, %v2463_v49 }
 0x6f4   :  { %v2225_v9 = vpop.f32.mrf.mxu1 }
 0x6f5   :  { %v2226_v23 = vadd.f32 %v2225_v9, %v2011_v52 }
 0x6f6   :  { %v2227_v53 = vpop.f32.mrf.mxu1 }
 0x6f7   :  { %v2297_v32 = vadd.f32 %v2296_v11, %v2226_v23  ;;  %v2228_v0 = vadd.f32 %v2227_v53, %v2011_v52 }
 0x6f9   :  { %v2445_v25 = vmax.f32 %v2297_v32, 0.0  ;;  %v2299_v31 = vadd.f32 %v2298_v21, %v2228_v0 }
 0x6fb   :  { %v2451_v17 = vmul.f32 %v2445_v25, %v6917_v50  ;;  %v2446_v2 = vmax.f32 %v2299_v31, 0.0  ;;  %v2367_v55 = vpop.f32.mrf.mxu0 }
 0x6fc   :  { %v2368_v19 = vadd.f32 %v2367_v55, %v2011_v52 }
 0x6fd   :  { %v2465_v57 = vmul.f32 %v2451_v17, %v2451_v17  ;;  %v6121_v6 = vmul.f32 %v2446_v2, %v6918_v44  ;;  %v2369_v29 = vpop.f32.mrf.mxu0  ;;  %v2456_v38 = vadd.f32 %v2455_v48, %v2451_v17 }
 0x6fe   :  { %v2438_v35 = vpop.f32.mrf.mxu1  ;;  %v2370_v59 = vadd.f32 %v2369_v29, %v2011_v52 }
 0x6ff   :  { %v2439_v43 = vadd.f32 %v2438_v35, %v2368_v19  ;;  %v2466_v4 = vmul.f32 %v6121_v6, %v6121_v6  ;;  %v2470_v8 = vadd.f32 %v2469_v1, %v2465_v57  ;;  %v2457_v45 = vadd.f32 %v2456_v38, %v6121_v6 }
 0x700   :  { %v2440_v46 = vpop.f32.mrf.mxu1 }
 0x701   :  { %v2447_v26 = vmax.f32 %v2439_v43, 0.0  ;;  %v2441_v22 = vadd.f32 %v2440_v46, %v2370_v59  ;;  %v2471_v40 = vadd.f32 %v2470_v8, %v2466_v4 }
 0x703   :  { %v2453_v36 = vmul.f32 %v2447_v26, %v6919_v10  ;;  %v2448_v16 = vmax.f32 %v2441_v22, 0.0 }
 0x705   :  { %v2467_v13 = vmul.f32 %v2453_v36, %v2453_v36  ;;  %v2454_v62 = vmul.f32 %v2448_v16, %v6920_v15  ;;  %v2458_v3 = vadd.f32 %v2457_v45, %v2453_v36 }
 0x707   :  { %v2459_v27 = vadd.f32 %v2458_v3, %v2454_v62  ;;  %v2468_v20 = vmul.f32 %v2454_v62, %v2454_v62  ;;  %v2472_v54 = vadd.f32 %v2471_v40, %v2467_v13 }
 0x709   :  { %2460 = vadd.xlane.f32.xlu1 %v2459_v27  ;;  %v2473_v18 = vadd.f32 %v2472_v54, %v2468_v20 }
 0x70b   :  { %2474 = vadd.xlane.f32.xlu0 %v2473_v18 }
 0x721   :  { %2504 = vperm.xlu0 %2967, %v2997_v60  }
 0x725   :  { %2969 = vset.pattern.permute.xlu0 %v6921_v5 }
 0x792   :  { %v2461_v63 = vpop.xlane.xlu1 %2460 }
 0x793   :  { %v2462_v12 = vmul.f32 0.001953125, %v2461_v63 }
 0x794   :  { %v2475_v42 = vpop.xlane.xlu0 %2474 }
 0x795   :  { %v2476_v52 = vmul.f32 0.001953125, %v2475_v42  ;;  %v2477_v24 = vmul.f32 %v2462_v12, %v2462_v12  ;;  %v2480_v33 = vsub.f32 %v2450_v56, %v2462_v12  ;;  %v2481_v51 = vsub.f32 %v2451_v17, %v2462_v12 }
 0x796   :  { %v2479_v61 = vsub.f32 %v2449_v58, %v2462_v12  ;;  %v2484_v58 = vsub.f32 %v2454_v62, %v2462_v12  ;;  %v2483_v49 = vsub.f32 %v2453_v36, %v2462_v12  ;;  %v2482_v19 = vsub.f32 %v6121_v6, %v2462_v12 }
 0x797   :  { %v2478_v39 = vsub.f32 %v2476_v52, %v2477_v24 }
 0x799   :  { %v2485_v28 = vadd.f32 1e-05, %v2478_v39 }
 0x79b   :  { %2982 = vrsqrt.f32 %v2485_v28 }
 0x79c   :  { %v2505_v23 = vpop.permute.xlu0 %2504 }
 0x7a8   :  { %v2983_v41 = vpop.eup %2982 }
 0x7a9   :  { %v2488_v11 = vmul.f32 %v2983_v41, %v2480_v33  ;;  %v2489_v9 = vmul.f32 %v2983_v41, %v2481_v51  ;;  %v2487_v53 = vmul.f32 %v2983_v41, %v2479_v61  ;;  %v2492_v17 = vmul.f32 %v2983_v41, %v2484_v58 }
 0x7aa   :  { %v2491_v48 = vmul.f32 %v2983_v41, %v2483_v49  ;;  %v2490_v57 = vmul.f32 %v2983_v41, %v2482_v19 }
 0x7ab   :  { %v2498_v32 = vmul.f32 %v2495_v30, %v2488_v11  ;;  %v2499_v0 = vmul.f32 %v2495_v30, %v2489_v9  ;;  %v2497_v31 = vmul.f32 %v2495_v30, %v2487_v53 }
 0x7ac   :  { %v2501_v29 = vmul.f32 %v2495_v30, %v2491_v48  ;;  %v2500_v35 = vmul.f32 %v2495_v30, %v2490_v57 }
 0x7ad   :  { %v2508_v21 = vadd.f32 %v2505_v23, %v2498_v32  ;;  %v2509_v25 = vadd.f32 %v2505_v23, %v2499_v0  ;;  %v2507_v56 = vadd.f32 %v2505_v23, %v2497_v31 }
 0x7ae   :  { %v2511_v1 = vadd.f32 %v2505_v23, %v2501_v29  ;;  %v2510_v6 = vadd.f32 %v2505_v23, %v2500_v35 }
 0x7af   :  { %v6133_v47 = vmul.f32 %v2508_v21, %v6915_v34  ;;  %v6136_v2 = vmul.f32 %v2509_v25, %v6917_v50  ;;  %v6147_v34 = vmul.f32 %v2507_v56, %v6916_v7  ;;  %v2502_v50 = vmul.f32 %v2495_v30, %v2492_v17  ;;  %v6332_v56 = vld [vmem:[%s6446_s8] sm:$0x7] }
 0x7b0   :  { %v6182_v38 = vmul.f32 %v2511_v1, %v6919_v10  ;;  %v6189_v59 = vmul.f32 %v2510_v6, %v6918_v44  ;;  %v2664_v44 = vld [vmem:[%s6445_s9] sm:$0x7] }
 0x7b1   :  { %2614 = vrot.lane.b32.xlu0 %v6136_v2, %s3002_s1  ;;  %2648 = vrot.lane.b32.xlu1 %v6133_v47, %s3009_s14  ;;  %v2512_v55 = vadd.f32 %v2505_v23, %v2502_v50 }
 0x7b3   :  { %v6162_v7 = vmul.f32 %v2512_v55, %v6920_v15 }
 0x7b5   :  { %2594 = vrot.lane.b32.xlu0 %v6133_v47, %s3004_s29  ;;  %2650 = vrot.lane.b32.xlu1 %v6136_v2, %s3009_s14 }
 0x7b9   :  { %2592 = vrot.lane.b32.xlu0 %v6147_v34, %s3004_s29  ;;  %2646 = vrot.lane.b32.xlu1 %v6147_v34, %s3009_s14 }
 0x7bd   :  { %2576 = vrot.lane.b32.xlu0 %v6133_v47, %s3005_s30  ;;  %2630 = vrot.lane.b32.xlu1 %v6133_v47, %s3003_s28 }
 0x7c1   :  { %2556 = vrot.lane.b32.xlu0 %v6147_v34, %s3006_s11  ;;  %2632 = vrot.lane.b32.xlu1 %v6136_v2, %s3003_s28 }
 0x7c5   :  { %2566 = vrot.lane.b32.xlu0 %v6162_v7, %s3006_s11  ;;  %2628 = vrot.lane.b32.xlu1 %v6147_v34, %s3003_s28 }
 0x7c9   :  { %2540 = vrot.lane.b32.xlu0 %v6133_v47, %s3007_s12  ;;  %2612 = vrot.lane.b32.xlu1 %v6133_v47, %s3002_s1 }
 0x7cd   :  { %2520 = vrot.lane.b32.xlu0 %v6147_v34, %s3008_s13  ;;  %2610 = vrot.lane.b32.xlu1 %v6147_v34, %s3002_s1 }
 0x7d1   :  { %2530 = vrot.lane.b32.xlu0 %v6162_v7, %s3008_s13  ;;  %2596 = vrot.lane.b32.xlu1 %v6136_v2, %s3004_s29 }
 0x7d5   :  { %2654 = vrot.lane.b32.xlu0 %v6182_v38, %s3009_s14  ;;  %2574 = vrot.lane.b32.xlu1 %v6147_v34, %s3005_s30 }
 0x7d9   :  { %2634 = vrot.lane.b32.xlu0 %v6189_v59, %s3003_s28  ;;  %2584 = vrot.lane.b32.xlu1 %v6162_v7, %s3005_s30 }
 0x7dd   :  { %2638 = vrot.lane.b32.xlu0 %v6162_v7, %s3003_s28  ;;  %2558 = vrot.lane.b32.xlu1 %v6133_v47, %s3006_s11 }
 0x7e1   :  { %2618 = vrot.lane.b32.xlu0 %v6182_v38, %s3002_s1  ;;  %2538 = vrot.lane.b32.xlu1 %v6147_v34, %s3007_s12 }
 0x7e5   :  { %2598 = vrot.lane.b32.xlu0 %v6189_v59, %s3004_s29  ;;  %2548 = vrot.lane.b32.xlu1 %v6162_v7, %s3007_s12 }
 0x7e9   :  { %2602 = vrot.lane.b32.xlu0 %v6162_v7, %s3004_s29  ;;  %2522 = vrot.lane.b32.xlu1 %v6133_v47, %s3008_s13 }
 0x7ed   :  { %2580 = vrot.lane.b32.xlu0 %v6189_v59, %s3005_s30  ;;  %2652 = vrot.lane.b32.xlu1 %v6189_v59, %s3009_s14 }
 0x7f1   :  { %2560 = vrot.lane.b32.xlu0 %v6136_v2, %s3006_s11  ;;  %2656 = vrot.lane.b32.xlu1 %v6162_v7, %s3009_s14 }
 0x7f5   :  { %2564 = vrot.lane.b32.xlu0 %v6182_v38, %s3006_s11  ;;  %2636 = vrot.lane.b32.xlu1 %v6182_v38, %s3003_s28 }
 0x7f9   :  { %2544 = vrot.lane.b32.xlu0 %v6189_v59, %s3007_s12  ;;  %2616 = vrot.lane.b32.xlu1 %v6189_v59, %s3002_s1 }
 0x7fd   :  { %2524 = vrot.lane.b32.xlu0 %v6136_v2, %s3008_s13  ;;  %2620 = vrot.lane.b32.xlu1 %v6162_v7, %s3002_s1 }
 0x801   :  { %2528 = vrot.lane.b32.xlu0 %v6182_v38, %s3008_s13  ;;  %2600 = vrot.lane.b32.xlu1 %v6182_v38, %s3004_s29 }
 0x805   :  { %2578 = vrot.lane.b32.xlu1 %v6136_v2, %s3005_s30 }
 0x809   :  { %2582 = vrot.lane.b32.xlu1 %v6182_v38, %s3005_s30 }
 0x80d   :  { %2562 = vrot.lane.b32.xlu1 %v6189_v59, %s3006_s11 }
 0x811   :  { %2542 = vrot.lane.b32.xlu1 %v6136_v2, %s3007_s12 }
 0x815   :  { %2546 = vrot.lane.b32.xlu1 %v6182_v38, %s3007_s12 }
 0x819   :  { %2526 = vrot.lane.b32.xlu1 %v6189_v59, %s3008_s13 }
 0x81d   :  { %2667 = vperm.xlu1 %2968, %v2664_v44  }
 0x823   :  { %v6250_v43 = vpop.permute.xlu0 %2614  ;;  %v2649_v46 = vpop.permute.xlu1 %2648 }
 0x827   :  { %v2595_v4 = vpop.permute.xlu0 %2594  ;;  %v6252_v26 = vpop.permute.xlu1 %2650 }
 0x828   :  { %v2661_v22 = vsel %vm807_vm10, %v2649_v46, %v6252_v26 }
 0x829   :  { %2688 = vmatprep.subr.mxu1 %v2661_v22 }
 0x82b   :  { %v6257_v8 = vpop.permute.xlu0 %2592  ;;  %v6259_v10 = vpop.permute.xlu1 %2646 }
 0x82c   :  { %v2662_v36 = vsel %vm807_vm10, %v6259_v10, %v2649_v46  ;;  %v2608_v52 = vsel %vm696_vm5, %v6257_v8, %v2595_v4 }
 0x82d   :  { %2689 = vmatpush1.msra.mxu1 %v2662_v36 }
 0x82f   :  { %v6264_v16 = vpop.permute.xlu0 %2576  ;;  %v2631_v45 = vpop.permute.xlu1 %2630 }
 0x833   :  { %v2557_v13 = vpop.permute.xlu0 %2556  ;;  %v6266_v15 = vpop.permute.xlu1 %2632 }
 0x834   :  { %v2643_v62 = vsel %vm770_vm3, %v2631_v45, %v6266_v15 }
 0x835   :  { %2690 = vmatprep.subr.mxu1 %v2643_v62 }
 0x837   :  { %v6271_v3 = vpop.permute.xlu0 %2566  ;;  %v6273_v40 = vpop.permute.xlu1 %2628 }
 0x838   :  { %v2644_v27 = vsel %vm770_vm3, %v6273_v40, %v2631_v45  ;;  %v2573_v9 = vsel %vm622_vm7, %v6271_v3, %v2557_v13 }
 0x839   :  { %2691 = vmatpush1.msra.mxu1 %v2644_v27 }
 0x83b   :  { %v6278_v20 = vpop.permute.xlu0 %2540  ;;  %v2613_v54 = vpop.permute.xlu1 %2612 }
 0x83c   :  { %v2625_v18 = vsel %vm733_vm4, %v2613_v54, %v6250_v43 }
 0x83d   :  { %2692 = vmatprep.subr.mxu1 %v2625_v18 }
 0x83f   :  { %v2521_v60 = vpop.permute.xlu0 %2520  ;;  %v6283_v5 = vpop.permute.xlu1 %2610 }
 0x840   :  { %v2626_v30 = vsel %vm733_vm4, %v6283_v5, %v2613_v54 }
 0x841   :  { %2693 = vmatpush1.msra.mxu1 %v2626_v30 }
 0x843   :  { %v6288_v63 = vpop.permute.xlu0 %2530  ;;  %v6290_v12 = vpop.permute.xlu1 %2596 }
 0x844   :  { %v2607_v42 = vsel %vm696_vm5, %v2595_v4, %v6290_v12  ;;  %v2537_v58 = vsel %vm548_vm9, %v6288_v63, %v2521_v60 }
 0x845   :  { %2694 = vmatprep.subr.mxu1 %v2607_v42 }
 0x846   :  { %2695 = vmatpush1.msra.mxu1 %v2608_v52 }
 0x847   :  { %v2655_v24 = vpop.permute.xlu0 %2654  ;;  %2696 = vmatprep.subr.mxu1 %v6133_v47  ;;  %v2575_v39 = vpop.permute.xlu1 %2574 }
 0x848   :  { %2697 = vmatpush1.msra.mxu1 %v6147_v34  ;;  %v2590_v28 = vsel %vm659_vm6, %v2575_v39, %v6264_v16 }
 0x849   :  { %2698 = vmatprep.subr.mxu1 %v2590_v28 }
 0x84b   :  { %v2635_v33 = vpop.permute.xlu0 %2634  ;;  %v6303_v51 = vpop.permute.xlu1 %2584 }
 0x84c   :  { %v2591_v41 = vsel %vm659_vm6, %v6303_v51, %v2575_v39  ;;  %v2642_v6 = vsel %vm770_vm3, %v6266_v15, %v2635_v33 }
 0x84d   :  { %2699 = vmatpush1.msra.mxu1 %v2591_v41 }
 0x84f   :  { %v6308_v61 = vpop.permute.xlu1 %2558  ;;  %v2639_v23 = vpop.permute.xlu0 %2638 }
 0x850   :  { %v2572_v11 = vsel %vm622_vm7, %v2557_v13, %v6308_v61  ;;  %v2645_v29 = vsel %vm770_vm3, %v2639_v23, %v6273_v40 }
 0x851   :  { %2700 = vmatprep.subr.mxu1 %v2572_v11 }
 0x852   :  { %2701 = vmatpush1.msra.mxu1 %v2573_v9 }
 0x853   :  { %v2539_v53 = vpop.permute.xlu1 %2538  ;;  %v2619_v0 = vpop.permute.xlu0 %2618 }
 0x854   :  { %v2554_v32 = vsel %vm585_vm8, %v2539_v53, %v6278_v20 }
 0x855   :  { %2702 = vmatprep.subr.mxu1 %v2554_v32 }
 0x857   :  { %v6319_v21 = vpop.permute.xlu1 %2548  ;;  %v2599_v17 = vpop.permute.xlu0 %2598 }
 0x858   :  { %v2555_v25 = vsel %vm585_vm8, %v6319_v21, %v2539_v53  ;;  %v2606_v40 = vsel %vm696_vm5, %v6290_v12, %v2599_v17 }
 0x859   :  { %2703 = vmatpush1.msra.mxu1 %v2555_v25 }
 0x85b   :  { %v6324_v31 = vpop.permute.xlu1 %2522  ;;  %v2603_v49 = vpop.permute.xlu0 %2602 }
 0x85c   :  { %v2536_v47 = vsel %vm548_vm9, %v2521_v60, %v6324_v31 }
 0x85d   :  { %2704 = vmatprep.subr.mxu1 %v2536_v47 }
 0x85e   :  { %2705 = vmatpush1.msra.mxu1 %v2537_v58 }
 0x85f   :  { %v2653_v34 = vpop.permute.xlu1 %2652  ;;  %2939 = vmatmul.mubr.msk.f32.vlgmr.msra.gmra.mxu1 %vm2670_vm12, %v6332_v56  ;;  %v2581_v44 = vpop.permute.xlu0 %2580 }
 0x860   :  { %v2660_v50 = vsel %vm807_vm10, %v6252_v26, %v2653_v34  ;;  %v2659_v55 = vsel %vm807_vm10, %v2653_v34, %v2655_v24  ;;  %2809 = vmatprep.mubr.f32.mxu1 %v6832_v37 }
 0x861   :  { %2759 = vmatprep.subr.mxu1 %v2659_v55 }
 0x862   :  { %2760 = vmatpush1.msra.mxu1 %v2660_v50 }
 0x863   :  { %v2657_v48 = vpop.permute.xlu1 %2656  ;;  %v2561_v22 = vpop.permute.xlu0 %2560 }
 0x864   :  { %v2658_v19 = vsel %vm807_vm10, %v2655_v24, %v2657_v48  ;;  %v2663_v57 = vsel %vm807_vm10, %v2657_v48, %v6259_v10  ;;  %v2571_v12 = vsel %vm622_vm7, %v6308_v61, %v2561_v22 }
 0x865   :  { %2830 = vmatprep.subr.mxu0 %v2663_v57 }
 0x866   :  { %2831 = vmatpush1.msra.mxu0 %v2658_v19 }
 0x867   :  { %2832 = vmatprep.subr.mxu0 %v2645_v29  ;;  %v2637_v35 = vpop.permute.xlu1 %2636  ;;  %v2565_v27 = vpop.permute.xlu0 %2564 }
 0x868   :  { %v2640_v37 = vsel %vm770_vm3, %v2637_v35, %v2639_v23  ;;  %v2641_v1 = vsel %vm770_vm3, %v2635_v33, %v2637_v35 }
 0x869   :  { %2761 = vmatprep.subr.mxu1 %v2641_v1  ;;  %2833 = vmatpush1.msra.mxu0 %v2640_v37 }
 0x86a   :  { %2762 = vmatpush1.msra.mxu1 %v2642_v6 }
 0x86b   :  { %v2617_v46 = vpop.permute.xlu1 %2616  ;;  %v2545_v60 = vpop.permute.xlu0 %2544 }
 0x86c   :  { %v2624_v4 = vsel %vm733_vm4, %v6250_v43, %v2617_v46  ;;  %v2623_v26 = vsel %vm733_vm4, %v2617_v46, %v2619_v0  ;;  %v2609_v43 = vsel %vm696_vm5, %v2603_v49, %v6257_v8 }
 0x86d   :  { %2763 = vmatprep.subr.mxu1 %v2623_v26 }
 0x86e   :  { %2764 = vmatpush1.msra.mxu1 %v2624_v4 }
 0x86f   :  { %v2621_v10 = vpop.permute.xlu1 %2620  ;;  %v2525_v42 = vpop.permute.xlu0 %2524 }
 0x870   :  { %v2622_v36 = vsel %vm733_vm4, %v2619_v0, %v2621_v10  ;;  %v2627_v45 = vsel %vm733_vm4, %v2621_v10, %v6283_v5  ;;  %v2535_v9 = vsel %vm548_vm9, %v6324_v31, %v2525_v42 }
 0x871   :  { %2834 = vmatprep.subr.mxu0 %v2627_v45 }
 0x872   :  { %2835 = vmatpush1.msra.mxu0 %v2622_v36 }
 0x873   :  { %2836 = vmatprep.subr.mxu0 %v2609_v43  ;;  %v2601_v13 = vpop.permute.xlu1 %2600  ;;  %v2529_v39 = vpop.permute.xlu0 %2528 }
 0x874   :  { %v2604_v15 = vsel %vm696_vm5, %v2601_v13, %v2603_v49  ;;  %v2605_v62 = vsel %vm696_vm5, %v2599_v17, %v2601_v13 }
 0x875   :  { %2765 = vmatprep.subr.mxu1 %v2605_v62  ;;  %2837 = vmatpush1.msra.mxu0 %v2604_v15 }
 0x876   :  { %2766 = vmatpush1.msra.mxu1 %v2606_v40  ;;  %2838 = vmatprep.subr.mxu0 %v6162_v7 }
 0x877   :  { %2767 = vmatprep.subr.mxu1 %v6189_v59  ;;  %2839 = vmatpush1.msra.mxu0 %v6182_v38  ;;  %v2579_v8 = vpop.permute.xlu1 %2578 }
 0x878   :  { %v2589_v54 = vsel %vm659_vm6, %v6264_v16, %v2579_v8  ;;  %2768 = vmatpush1.msra.mxu1 %v6136_v2  ;;  %v2588_v18 = vsel %vm659_vm6, %v2579_v8, %v2581_v44  ;;  %v2568_v2 = vsel %vm622_vm7, %v2565_v27, %v6271_v3 }
 0x879   :  { %2769 = vmatprep.subr.mxu1 %v2588_v18 }
 0x87a   :  { %2770 = vmatpush1.msra.mxu1 %v2589_v54 }
 0x87b   :  { %v2583_v5 = vpop.permute.xlu1 %2582 }
 0x87c   :  { %v2587_v7 = vsel %vm659_vm6, %v2581_v44, %v2583_v5  ;;  %v2586_v38 = vsel %vm659_vm6, %v2583_v5, %v6303_v51 }
 0x87d   :  { %2840 = vmatprep.subr.mxu0 %v2586_v38 }
 0x87e   :  { %2841 = vmatpush1.msra.mxu0 %v2587_v7 }
 0x87f   :  { %2842 = vmatprep.subr.mxu0 %v2568_v2  ;;  %v2563_v59 = vpop.permute.xlu1 %2562 }
 0x880   :  { %v2569_v16 = vsel %vm622_vm7, %v2563_v59, %v2565_v27  ;;  %v2570_v30 = vsel %vm622_vm7, %v2561_v22, %v2563_v59 }
 0x881   :  { %2771 = vmatprep.subr.mxu1 %v2570_v30  ;;  %2843 = vmatpush1.msra.mxu0 %v2569_v16 }
 0x882   :  { %2772 = vmatpush1.msra.mxu1 %v2571_v12 }
 0x883   :  { %v2543_v52 = vpop.permute.xlu1 %2542 }
 0x884   :  { %v2553_v3 = vsel %vm585_vm8, %v6278_v20, %v2543_v52  ;;  %v2552_v24 = vsel %vm585_vm8, %v2543_v52, %v2545_v60  ;;  %v2532_v20 = vsel %vm548_vm9, %v2529_v39, %v6288_v63 }
 0x885   :  { %2773 = vmatprep.subr.mxu1 %v2552_v24 }
 0x886   :  { %2774 = vmatpush1.msra.mxu1 %v2553_v3 }
 0x887   :  { %v2547_v28 = vpop.permute.xlu1 %2546 }
 0x888   :  { %v2551_v33 = vsel %vm585_vm8, %v2545_v60, %v2547_v28  ;;  %v2550_v51 = vsel %vm585_vm8, %v2547_v28, %v6319_v21 }
 0x889   :  { %2844 = vmatprep.subr.mxu0 %v2550_v51 }
 0x88a   :  { %2845 = vmatpush1.msra.mxu0 %v2551_v33 }
 0x88b   :  { %2846 = vmatprep.subr.mxu0 %v2532_v20  ;;  %v2527_v41 = vpop.permute.xlu1 %2526 }
 0x88c   :  { %v2533_v61 = vsel %vm548_vm9, %v2527_v41, %v2529_v39  ;;  %v2534_v11 = vsel %vm548_vm9, %v2525_v42, %v2527_v41 }
 0x88d   :  { %2775 = vmatprep.subr.mxu1 %v2534_v11  ;;  %2847 = vmatpush1.msra.mxu0 %v2533_v61 }
 0x88e   :  { %2776 = vmatpush1.msra.mxu1 %v2535_v9  ;;  %2941 = vmatmul.mubr.msk.f32.vlgmr.msra.gmra.mxu0 %vm2670_vm12, %v6332_v56 }
 0x88f   :  { %2940 = vmatmul.mubr.msk.f32.vlgmr.msra.gmra.mxu1 %vm2670_vm12, %v6332_v56 }
 0x898   :  { %v2668_v63 = vpop.permute.xlu1 %2667 }
 0x91f   :  { %v2740_v23 = vpop.f32.mrf.mxu1 }
 0x920   :  { %v2741_v53 = vadd.f32 %v2740_v23, %v2668_v63 }
 0x921   :  { %v2742_v32 = vpop.f32.mrf.mxu1 }
 0x922   :  { %v2743_v0 = vadd.f32 %v2742_v32, %v2668_v63  ;;  %2984 = vtanh.f32 %v2741_v53 }
 0x924   :  { %2986 = vtanh.f32 %v2743_v0 }
 0x92f   :  { %v2985_v21 = vpop.eup %2984 }
 0x931   :  { %v2987_v25 = vpop.eup %2986 }
 0x932   :  { %v2899_v14 = vcombine.low %v2985_v21, %v2987_v25 }
 0x934   :  { %2905 = vst [vmem:[%s6447_s10] sm:$0x77] %v2899_v14 }
 0x94e   :  { %v2882_v31 = vpop.f32.mrf.mxu0 }
 0x94f   :  { %v2811_v47 = vpop.f32.mrf.mxu1  ;;  %v2883_v58 = vadd.f32 %v2882_v31, %v2668_v63 }
 0x950   :  { %v2812_v17 = vadd.f32 %v2811_v47, %v2668_v63  ;;  %v2884_v34 = vpop.f32.mrf.mxu0 }
 0x951   :  { %2988 = vtanh.f32 %v2883_v58  ;;  %v2813_v56 = vpop.f32.mrf.mxu1  ;;  %v2885_v50 = vadd.f32 %v2884_v34, %v2668_v63 }
 0x952   :  { %2990 = vtanh.f32 %v2812_v17  ;;  %v2814_v55 = vadd.f32 %v2813_v56, %v2668_v63 }
 0x953   :  { %2992 = vtanh.f32 %v2885_v50 }
 0x954   :  { %2994 = vtanh.f32 %v2814_v55 }
 0x95e   :  { %v2989_v49 = vpop.eup %2988 }
 0x95f   :  { %v2991_v48 = vpop.eup %2990 }
 0x960   :  { %v2993_v19 = vpop.eup %2992 }
 0x961   :  { %v2995_v57 = vpop.eup %2994  ;;  %v2901_v29 = vcombine.low %v2989_v49, %v2993_v19 }
 0x962   :  { %v2900_v35 = vcombine.low %v2991_v48, %v2995_v57 }
 0x963   :  { %2907 = vst [vmem:[%s6447_s10 + $0x10] sm:$0x77] %v2901_v29 }
 0x964   :  { %2906 = vst [vmem:[%s6447_s10 + $0x8] sm:$0x77] %v2900_v35 }

</bundles_post_ra>
